<compile_context>
chip_gen: v5e
topology: v5e:2x2
jax: 0.10.0
libtpu: 0.0.40
codegen_flags: <defaults>
</compile_context>

<pallas_src>
import jax
import jax.numpy as jnp
from jax import lax
from jax.experimental import pallas as pl
from jax.experimental.pallas import tpu as pltpu

SIGMA_H = 0.5                               # RNNCell.sigma_h (variance)
SIGMA_Y = 0.5                               # OneLayerRNN.sigma_y
NOISE_SCALE = float(SIGMA_H ** 0.5)         # reference: sigma ** (1/2) * eps
NEG_HALF_INV_SIGMA_Y = float(-1.0 / (2.0 * SIGMA_Y))


def _tensorcores_per_device():
    """Best-effort TensorCore count per device (v7x / megacore chips -> 2)."""
    try:
        kind = jax.devices()[0].device_kind.lower()
    except Exception:
        return 1
    if any(tag in kind for tag in ("7", "v4", "v5p")):
        return 2
    return 1


def _make_kernel(P):
    """One grid block == Bc folded batch elements; full time loop inside."""

    def kernel(act_ref, y_ref, u_ref, w0_ref, tri_ref, blk_ref, loc_ref,
               whh_ref, wfc_ref, bfc_ref, ht_ref, hy_ref):
        S = act_ref.shape[1]
        R = act_ref.shape[2]          # R = Bc * P folded particle rows
        H = act_ref.shape[3]

        # ---- loop-invariant loads (hoisted; JAX does not CSE these) --------
        tri = tri_ref[...]            # (R,R) block-diag inclusive lower tri
        blk = blk_ref[...]            # (R,R) same-batch-block mask
        loc = loc_ref[...]            # (R,1) local particle index (f32)
        whh = whh_ref[...]            # (H,H)   W_hh^T
        wfc = wfc_ref[...]            # (H,Out) W_fc^T
        bfc = bfc_ref[...]            # (1,Out)

        hx0 = jnp.zeros((R, H), jnp.float32)     # hx = new_zeros(...)
        e0 = w0_ref[0]                            # (R,1) init weights

        def step(t, carry):
            hx, e = carry             # (R,H), (R,1) unnormalized weights

            act = act_ref[0, t]       # (R,H)  hoisted x@Wih^T + bias + noise
            y = y_ref[0, t]           # (R,Out)
            u = u_ref[0, t]           # (1,R)  U[0,1) multinomial draws

            # --- It = multinomial(w, P) per batch block (inverse CDF) ------
            cumw = jnp.dot(tri, e, preferred_element_type=jnp.float32)  # (R,1)
            tot = jnp.dot(blk, e, preferred_element_type=jnp.float32)   # (R,1)
            # count i in the same block with cumw[i] <= u[p] * block_total
            cmp = blk * (cumw <= u * tot).astype(jnp.float32)           # (R,R)
            cnt = jnp.sum(cmp, axis=0, keepdims=True)                   # (1,R)
            cnt = jnp.minimum(cnt, float(P - 1))                        # guard
            onehot = blk * (loc == cnt).astype(jnp.float32)             # (R,R)

            # resampled_h[p,:] = hx[block(p)*P + It_local[p], :]
            h_res = lax.dot_general(onehot, hx, (((0,), (0,)), ((), ())),
                                    preferred_element_type=jnp.float32)

            # --- RNNCell: only the recurrent matmul stays on the chain -----
            hy = jnp.tanh(act + jnp.dot(h_res, whh,
                                        preferred_element_type=jnp.float32))
            ht_ref[0, t] = hy                                  # stack(ht, 1)

            # --- fc head + compute_w_regression (unnormalized carry) -------
            pred = jnp.dot(hy, wfc, preferred_element_type=jnp.float32) + bfc
            mu = y - pred                                      # (R,Out)
            log_w = NEG_HALF_INV_SIGMA_Y * jnp.sum(mu * mu, axis=-1,
                                                   keepdims=True)   # (R,1)
            m = jnp.max(log_w, axis=0, keepdims=True)          # stability shift
            e_new = jnp.exp(log_w - m)                         # (R,1) unnorm.
            return hy, e_new

        hx_fin, _ = lax.fori_loop(0, S, step, (hx0, e0), unroll=True)
        hy_ref[0] = hx_fin

    return kernel


def one_layer_rnn_forward(inp, target, params, noise, uniforms, w0,
                          num_particles, grid_blocks=None):
    """Mirrors OneLayerRNN.forward -> (stack(ht, dim=1), final hidden)."""
    if inp.shape[1] == 1:
        inp = jnp.tile(inp, (1, num_particles, 1, 1))
    if target.shape[1] == 1:
        target = jnp.tile(target, (1, num_particles, 1, 1))

    B, P, S, IN = inp.shape
    OUT = target.shape[-1]
    H = params['w_hh'].shape[0]
    f32 = jnp.float32

    if grid_blocks is None:
        g = _tensorcores_per_device()
        grid_blocks = g if (B % g == 0) else 1
    G = grid_blocks
    Bc = B // G
    R = Bc * P

    # ---- hoisted input projection + bias + noise (perf review item 1) -----
    x_t = jnp.transpose(inp, (0, 2, 1, 3)).astype(f32)          # (B,S,P,IN)
    y_t = jnp.transpose(target, (0, 2, 1, 3)).astype(f32)       # (B,S,P,OUT)
    act_pre = (jnp.einsum('bspi,hi->bsph', x_t, params['w_ih'].astype(f32))
               + (params['b_ih'] + params['b_hh']).astype(f32)
               + NOISE_SCALE * noise.astype(f32))               # (B,S,P,H)

    # ---- fold batch onto sublanes: (B,S,P,F) -> (G,S,Bc*P,F) --------------
    def fold(a):
        F = a.shape[-1]
        a = a.reshape(G, Bc, S, P, F)
        a = jnp.transpose(a, (0, 2, 1, 3, 4))
        return a.reshape(G, S, R, F)

    act_f = fold(act_pre)
    y_f = fold(y_t)
    u_f = uniforms.astype(f32).reshape(G, Bc, S, P)
    u_f = jnp.transpose(u_f, (0, 2, 1, 3)).reshape(G, S, 1, R)
    w0_f = w0.astype(f32).reshape(G, R, 1)

    # ---- block-diagonal resampling constants (built once, host side) ------
    r = jnp.arange(R)
    same = (r[:, None] // P) == (r[None, :] // P)
    blocktri = (same & (r[None, :] <= r[:, None])).astype(f32)  # (R,R)
    blockmask = same.astype(f32)                                # (R,R)
    localidx = (r % P).astype(f32)[:, None]                     # (R,1)

    whh_t = params['w_hh'].T.astype(f32)                        # (H,H)
    wfc_t = params['w_fc'].T.astype(f32)                        # (H,OUT)
    bfc = params['b_fc'].reshape(1, OUT).astype(f32)

    def per_block(shape):
        return pl.BlockSpec((1,) + tuple(shape[1:]),
                            lambda g, s=shape: (g,) + (0,) * (len(s) - 1))

    def full(shape):
        return pl.BlockSpec(tuple(shape), lambda g, s=shape: (0,) * len(s))

    grid_spec = pltpu.PrefetchScalarGridSpec(
        num_scalar_prefetch=0,
        grid=(G,),
        in_specs=[
            per_block((G, S, R, H)),          # act_pre (hoisted projection)
            per_block((G, S, R, OUT)),        # targets
            per_block((G, S, 1, R)),          # uniforms (multinomial)
            per_block((G, R, 1)),             # initial resampling weights
            full((R, R)),                     # block lower-tri (cumsum)
            full((R, R)),                     # block mask (totals / gather)
            full((R, 1)),                     # local particle indices
            full((H, H)),                     # W_hh^T
            full((H, OUT)),                   # W_fc^T
            full((1, OUT)),                   # b_fc
        ],
        out_specs=[
            per_block((G, S, R, H)),          # stacked hidden states
            per_block((G, R, H)),             # final hidden state
        ],
    )

    ht_f, hy_f = pl.pallas_call(
        _make_kernel(P),
        out_shape=(jax.ShapeDtypeStruct((G, S, R, H), f32),
                   jax.ShapeDtypeStruct((G, R, H), f32)),
        grid_spec=grid_spec,
        compiler_params=pltpu.CompilerParams(
            dimension_semantics=("parallel",)),
    )(act_f, y_f, u_f, w0_f, blocktri, blockmask, localidx,
      whh_t, wfc_t, bfc)

    # ---- unfold back to the reference layouts -----------------------------
    ht = ht_f.reshape(G, S, Bc, P, H)
    ht = jnp.transpose(ht, (0, 2, 1, 3, 4)).reshape(B, S, P, H)
    hy = hy_f.reshape(B, P, H)
    return ht, hy


if __name__ == "__main__":
    B, P, S = 2, 10, 8
    IN, H, OUT = 4, 32, 3

    key = jax.random.PRNGKey(0)
    ks = jax.random.split(key, 11)
    bound = 1.0 / float(H ** 0.5)

    # Deterministic synthetic parameters (PyTorch-style U(-1/sqrt(H), 1/sqrt(H))).
    params = {
        'w_ih': jax.random.uniform(ks[0], (H, IN), jnp.float32, -bound, bound),
        'w_hh': jax.random.uniform(ks[1], (H, H), jnp.float32, -bound, bound),
        'b_ih': jax.random.uniform(ks[2], (H,), jnp.float32, -bound, bound),
        'b_hh': jax.random.uniform(ks[3], (H,), jnp.float32, -bound, bound),
        'w_fc': jax.random.uniform(ks[4], (OUT, H), jnp.float32, -bound, bound),
        'b_fc': jax.random.uniform(ks[5], (OUT,), jnp.float32, -bound, bound),
    }

    # Module inputs: (B, 1, S, F), repeated over particles inside forward.
    inp = jax.random.normal(ks[6], (B, 1, S, IN), jnp.float32)
    tgt = jax.random.normal(ks[7], (B, 1, S, OUT), jnp.float32)

    # Stochastic draws of the PyTorch model, made deterministic here.
    noise = jax.random.normal(ks[8], (B, S, P, H), jnp.float32)      # add_noise
    uniforms = jax.random.uniform(ks[9], (B, S, P), jnp.float32)     # multinomial
    w0 = jax.nn.softmax(jax.random.normal(ks[10], (B, P), jnp.float32), axis=-1)

    ht, hy = one_layer_rnn_forward(inp, tgt, params, noise, uniforms, w0, P)
    jax.block_until_ready((ht, hy))
    assert ht.shape == (B, S, P, H), ht.shape
    assert hy.shape == (B, P, H), hy.shape
    assert bool(jnp.all(jnp.isfinite(ht))) and bool(jnp.all(jnp.isfinite(hy)))
    print("KERNEL_OK")
</pallas_src>

<mosaic_0001>
module attributes {stable_mosaic.version = 11 : i64} {
  func.func @kernel(%arg0: i32, %arg1: memref<1x8x20x32xf32, #tpu.memory_space<vmem>>, %arg2: memref<1x8x20x3xf32, #tpu.memory_space<vmem>>, %arg3: memref<1x8x1x20xf32, #tpu.memory_space<vmem>>, %arg4: memref<1x20x1xf32, #tpu.memory_space<vmem>>, %arg5: memref<20x20xf32, #tpu.memory_space<vmem>>, %arg6: memref<20x20xf32, #tpu.memory_space<vmem>>, %arg7: memref<20x1xf32, #tpu.memory_space<vmem>>, %arg8: memref<32x32xf32, #tpu.memory_space<vmem>>, %arg9: memref<32x3xf32, #tpu.memory_space<vmem>>, %arg10: memref<1x3xf32, #tpu.memory_space<vmem>>, %arg11: memref<1x8x20x32xf32, #tpu.memory_space<vmem>>, %arg12: memref<1x20x32xf32, #tpu.memory_space<vmem>>) attributes {dimension_semantics = [#tpu.dimension_semantics<parallel>], iteration_bounds = array<i64: 1>, scalar_prefetch = 0 : i64, scratch_operands = 0 : i64, tpu.core_type = #tpu.core_type<tc>, window_params = [{transform_indices = @transform_0, window_bounds = array<i64: 1, 8, 20, 32>}, {transform_indices = @transform_1, window_bounds = array<i64: 1, 8, 20, 3>}, {transform_indices = @transform_2, window_bounds = array<i64: 1, 8, 1, 20>}, {transform_indices = @transform_3, window_bounds = array<i64: 1, 20, 1>}, {pipeline_mode = #tpu.pipeline_mode<synchronous>, transform_indices = @transform_4, window_bounds = array<i64: 20, 20>}, {pipeline_mode = #tpu.pipeline_mode<synchronous>, transform_indices = @transform_5, window_bounds = array<i64: 20, 20>}, {pipeline_mode = #tpu.pipeline_mode<synchronous>, transform_indices = @transform_6, window_bounds = array<i64: 20, 1>}, {pipeline_mode = #tpu.pipeline_mode<synchronous>, transform_indices = @transform_7, window_bounds = array<i64: 32, 32>}, {pipeline_mode = #tpu.pipeline_mode<synchronous>, transform_indices = @transform_8, window_bounds = array<i64: 32, 3>}, {pipeline_mode = #tpu.pipeline_mode<synchronous>, transform_indices = @transform_9, window_bounds = array<i64: 1, 3>}, {transform_indices = @transform_10, window_bounds = array<i64: 1, 8, 20, 32>}, {transform_indices = @transform_11, window_bounds = array<i64: 1, 20, 32>}]} {
    %c0 = arith.constant 0 : index
    %c0_0 = arith.constant 0 : index
    %0 = vector.load %arg5[%c0, %c0_0] : memref<20x20xf32, #tpu.memory_space<vmem>>, vector<20x20xf32>
    %c0_1 = arith.constant 0 : index
    %c0_2 = arith.constant 0 : index
    %1 = vector.load %arg6[%c0_1, %c0_2] : memref<20x20xf32, #tpu.memory_space<vmem>>, vector<20x20xf32>
    %c0_3 = arith.constant 0 : index
    %c0_4 = arith.constant 0 : index
    %2 = vector.load %arg7[%c0_3, %c0_4] : memref<20x1xf32, #tpu.memory_space<vmem>>, vector<20x1xf32>
    %c0_5 = arith.constant 0 : index
    %c0_6 = arith.constant 0 : index
    %3 = vector.load %arg8[%c0_5, %c0_6] : memref<32x32xf32, #tpu.memory_space<vmem>>, vector<32x32xf32>
    %c0_7 = arith.constant 0 : index
    %c0_8 = arith.constant 0 : index
    %4 = vector.load %arg9[%c0_7, %c0_8] : memref<32x3xf32, #tpu.memory_space<vmem>>, vector<32x3xf32>
    %c0_9 = arith.constant 0 : index
    %c0_10 = arith.constant 0 : index
    %5 = vector.load %arg10[%c0_9, %c0_10] : memref<1x3xf32, #tpu.memory_space<vmem>>, vector<1x3xf32>
    %cst = arith.constant 0.000000e+00 : f32
    %6 = vector.broadcast %cst : f32 to vector<20x32xf32>
    %c0_11 = arith.constant 0 : index
    %c0_12 = arith.constant 0 : index
    %c0_13 = arith.constant 0 : index
    %7 = vector.load %arg4[%c0_11, %c0_12, %c0_13] : memref<1x20x1xf32, #tpu.memory_space<vmem>>, vector<1x20x1xf32>
    %8 = vector.shape_cast %7 : vector<1x20x1xf32> to vector<20x1xf32>
    %c0_i32 = arith.constant 0 : i32
    %c0_14 = arith.constant 0 : index
    %9 = arith.index_cast %c0_i32 : i32 to index
    %c0_15 = arith.constant 0 : index
    %c0_16 = arith.constant 0 : index
    %10 = vector.load %arg1[%c0_14, %9, %c0_15, %c0_16] : memref<1x8x20x32xf32, #tpu.memory_space<vmem>>, vector<1x1x20x32xf32>
    %11 = vector.shape_cast %10 : vector<1x1x20x32xf32> to vector<20x32xf32>
    %c0_17 = arith.constant 0 : index
    %12 = arith.index_cast %c0_i32 : i32 to index
    %c0_18 = arith.constant 0 : index
    %c0_19 = arith.constant 0 : index
    %13 = vector.load %arg2[%c0_17, %12, %c0_18, %c0_19] : memref<1x8x20x3xf32, #tpu.memory_space<vmem>>, vector<1x1x20x3xf32>
    %14 = vector.shape_cast %13 : vector<1x1x20x3xf32> to vector<20x3xf32>
    %c0_20 = arith.constant 0 : index
    %15 = arith.index_cast %c0_i32 : i32 to index
    %c0_21 = arith.constant 0 : index
    %c0_22 = arith.constant 0 : index
    %16 = vector.load %arg3[%c0_20, %15, %c0_21, %c0_22] : memref<1x8x1x20xf32, #tpu.memory_space<vmem>>, vector<1x1x1x20xf32>
    %17 = vector.shape_cast %16 : vector<1x1x1x20xf32> to vector<1x20xf32>
    %cst_23 = arith.constant dense<0.000000e+00> : vector<20x1xf32>
    %18 = tpu.matmul %0, %8, %cst_23 {dimension_numbers = #tpu.dot_dimension_numbers<[1], [0], [0], [1], [0, 0, 1, 1], [], []>} : vector<20x20xf32>, vector<20x1xf32>, vector<20x1xf32> -> vector<20x1xf32>
    %cst_24 = arith.constant dense<0.000000e+00> : vector<20x1xf32>
    %19 = tpu.matmul %1, %8, %cst_24 {dimension_numbers = #tpu.dot_dimension_numbers<[1], [0], [0], [1], [0, 0, 1, 1], [], []>} : vector<20x20xf32>, vector<20x1xf32>, vector<20x1xf32> -> vector<20x1xf32>
    %20 = vector.broadcast %17 : vector<1x20xf32> to vector<20x20xf32>
    %21 = vector.broadcast %19 : vector<20x1xf32> to vector<20x20xf32>
    %22 = arith.mulf %20, %21 : vector<20x20xf32>
    %23 = vector.broadcast %18 : vector<20x1xf32> to vector<20x20xf32>
    %24 = arith.cmpf ole, %23, %22 : vector<20x20xf32>
    %25 = arith.extui %24 : vector<20x20xi1> to vector<20x20xi32>
    %26 = arith.sitofp %25 : vector<20x20xi32> to vector<20x20xf32>
    %27 = arith.mulf %1, %26 : vector<20x20xf32>
    %cst_25 = arith.constant dense<0.000000e+00> : vector<20xf32>
    %28 = vector.multi_reduction <add>, %27, %cst_25 [0] : vector<20x20xf32> to vector<20xf32>
    %29 = vector.shape_cast %28 : vector<20xf32> to vector<1x20xf32>
    %cst_26 = arith.constant 9.000000e+00 : f32
    %30 = vector.broadcast %cst_26 : f32 to vector<1x20xf32>
    %31 = arith.minimumf %29, %30 : vector<1x20xf32>
    %32 = vector.broadcast %2 : vector<20x1xf32> to vector<20x20xf32>
    %33 = vector.broadcast %31 : vector<1x20xf32> to vector<20x20xf32>
    %34 = arith.cmpf oeq, %32, %33 : vector<20x20xf32>
    %35 = arith.extui %34 : vector<20x20xi1> to vector<20x20xi32>
    %36 = arith.sitofp %35 : vector<20x20xi32> to vector<20x20xf32>
    %37 = arith.mulf %1, %36 : vector<20x20xf32>
    %cst_27 = arith.constant dense<0.000000e+00> : vector<20x32xf32>
    %38 = tpu.matmul %37, %6, %cst_27 {dimension_numbers = #tpu.dot_dimension_numbers<[0], [0], [1], [1], [0, 1, 1, 1], [], []>} : vector<20x20xf32>, vector<20x32xf32>, vector<20x32xf32> -> vector<20x32xf32>
    %cst_28 = arith.constant dense<0.000000e+00> : vector<20x32xf32>
    %39 = tpu.matmul %38, %3, %cst_28 {dimension_numbers = #tpu.dot_dimension_numbers<[1], [0], [0], [1], [0, 0, 1, 1], [], []>} : vector<20x32xf32>, vector<32x32xf32>, vector<20x32xf32> -> vector<20x32xf32>
    %40 = arith.addf %11, %39 : vector<20x32xf32>
    %41 = math.tanh %40 : vector<20x32xf32>
    %c0_29 = arith.constant 0 : index
    %42 = arith.index_cast %c0_i32 : i32 to index
    %c0_30 = arith.constant 0 : index
    %c0_31 = arith.constant 0 : index
    %43 = vector.load %arg11[%c0_29, %42, %c0_30, %c0_31] : memref<1x8x20x32xf32, #tpu.memory_space<vmem>>, vector<1x1x20x32xf32>
    %44 = vector.shape_cast %43 : vector<1x1x20x32xf32> to vector<20x32xf32>
    %45 = vector.shape_cast %41 : vector<20x32xf32> to vector<1x1x20x32xf32>
    tpu.vector_store %arg11[%c0_29, %42, %c0_30, %c0_31], %45 {strides = array<i32>} : memref<1x8x20x32xf32, #tpu.memory_space<vmem>>, vector<1x1x20x32xf32>,
    %cst_32 = arith.constant dense<0.000000e+00> : vector<20x3xf32>
    %46 = tpu.matmul %41, %4, %cst_32 {dimension_numbers = #tpu.dot_dimension_numbers<[1], [0], [0], [1], [0, 0, 1, 1], [], []>} : vector<20x32xf32>, vector<32x3xf32>, vector<20x3xf32> -> vector<20x3xf32>
    %47 = vector.broadcast %5 : vector<1x3xf32> to vector<20x3xf32>
    %48 = arith.addf %46, %47 : vector<20x3xf32>
    %49 = arith.subf %14, %48 : vector<20x3xf32>
    %50 = arith.mulf %49, %49 : vector<20x3xf32>
    %cst_33 = arith.constant dense<0.000000e+00> : vector<20xf32>
    %51 = vector.multi_reduction <add>, %50, %cst_33 [1] : vector<20x3xf32> to vector<20xf32>
    %52 = vector.shape_cast %51 : vector<20xf32> to vector<20x1xf32>
    %cst_34 = arith.constant -1.000000e+00 : f32
    %53 = vector.broadcast %cst_34 : f32 to vector<20x1xf32>
    %54 = arith.mulf %53, %52 : vector<20x1xf32>
    %cst_35 = arith.constant dense<0xFF800000> : vector<1xf32>
    %55 = vector.multi_reduction <maximumf>, %54, %cst_35 [0] : vector<20x1xf32> to vector<1xf32>
    %56 = vector.shape_cast %55 : vector<1xf32> to vector<1x1xf32>
    %57 = vector.broadcast %56 : vector<1x1xf32> to vector<20x1xf32>
    %58 = arith.subf %54, %57 : vector<20x1xf32>
    %59 = math.exp %58 : vector<20x1xf32>
    %c1_i32 = arith.constant 1 : i32
    %c0_36 = arith.constant 0 : index
    %60 = arith.index_cast %c1_i32 : i32 to index
    %c0_37 = arith.constant 0 : index
    %c0_38 = arith.constant 0 : index
    %61 = vector.load %arg1[%c0_36, %60, %c0_37, %c0_38] : memref<1x8x20x32xf32, #tpu.memory_space<vmem>>, vector<1x1x20x32xf32>
    %62 = vector.shape_cast %61 : vector<1x1x20x32xf32> to vector<20x32xf32>
    %c0_39 = arith.constant 0 : index
    %63 = arith.index_cast %c1_i32 : i32 to index
    %c0_40 = arith.constant 0 : index
    %c0_41 = arith.constant 0 : index
    %64 = vector.load %arg2[%c0_39, %63, %c0_40, %c0_41] : memref<1x8x20x3xf32, #tpu.memory_space<vmem>>, vector<1x1x20x3xf32>
    %65 = vector.shape_cast %64 : vector<1x1x20x3xf32> to vector<20x3xf32>
    %c0_42 = arith.constant 0 : index
    %66 = arith.index_cast %c1_i32 : i32 to index
    %c0_43 = arith.constant 0 : index
    %c0_44 = arith.constant 0 : index
    %67 = vector.load %arg3[%c0_42, %66, %c0_43, %c0_44] : memref<1x8x1x20xf32, #tpu.memory_space<vmem>>, vector<1x1x1x20xf32>
    %68 = vector.shape_cast %67 : vector<1x1x1x20xf32> to vector<1x20xf32>
    %cst_45 = arith.constant dense<0.000000e+00> : vector<20x1xf32>
    %69 = tpu.matmul %0, %59, %cst_45 {dimension_numbers = #tpu.dot_dimension_numbers<[1], [0], [0], [1], [0, 0, 1, 1], [], []>} : vector<20x20xf32>, vector<20x1xf32>, vector<20x1xf32> -> vector<20x1xf32>
    %cst_46 = arith.constant dense<0.000000e+00> : vector<20x1xf32>
    %70 = tpu.matmul %1, %59, %cst_46 {dimension_numbers = #tpu.dot_dimension_numbers<[1], [0], [0], [1], [0, 0, 1, 1], [], []>} : vector<20x20xf32>, vector<20x1xf32>, vector<20x1xf32> -> vector<20x1xf32>
    %71 = vector.broadcast %68 : vector<1x20xf32> to vector<20x20xf32>
    %72 = vector.broadcast %70 : vector<20x1xf32> to vector<20x20xf32>
    %73 = arith.mulf %71, %72 : vector<20x20xf32>
    %74 = vector.broadcast %69 : vector<20x1xf32> to vector<20x20xf32>
    %75 = arith.cmpf ole, %74, %73 : vector<20x20xf32>
    %76 = arith.extui %75 : vector<20x20xi1> to vector<20x20xi32>
    %77 = arith.sitofp %76 : vector<20x20xi32> to vector<20x20xf32>
    %78 = arith.mulf %1, %77 : vector<20x20xf32>
    %cst_47 = arith.constant dense<0.000000e+00> : vector<20xf32>
    %79 = vector.multi_reduction <add>, %78, %cst_47 [0] : vector<20x20xf32> to vector<20xf32>
    %80 = vector.shape_cast %79 : vector<20xf32> to vector<1x20xf32>
    %cst_48 = arith.constant 9.000000e+00 : f32
    %81 = vector.broadcast %cst_48 : f32 to vector<1x20xf32>
    %82 = arith.minimumf %80, %81 : vector<1x20xf32>
    %83 = vector.broadcast %2 : vector<20x1xf32> to vector<20x20xf32>
    %84 = vector.broadcast %82 : vector<1x20xf32> to vector<20x20xf32>
    %85 = arith.cmpf oeq, %83, %84 : vector<20x20xf32>
    %86 = arith.extui %85 : vector<20x20xi1> to vector<20x20xi32>
    %87 = arith.sitofp %86 : vector<20x20xi32> to vector<20x20xf32>
    %88 = arith.mulf %1, %87 : vector<20x20xf32>
    %cst_49 = arith.constant dense<0.000000e+00> : vector<20x32xf32>
    %89 = tpu.matmul %88, %41, %cst_49 {dimension_numbers = #tpu.dot_dimension_numbers<[0], [0], [1], [1], [0, 1, 1, 1], [], []>} : vector<20x20xf32>, vector<20x32xf32>, vector<20x32xf32> -> vector<20x32xf32>
    %cst_50 = arith.constant dense<0.000000e+00> : vector<20x32xf32>
    %90 = tpu.matmul %89, %3, %cst_50 {dimension_numbers = #tpu.dot_dimension_numbers<[1], [0], [0], [1], [0, 0, 1, 1], [], []>} : vector<20x32xf32>, vector<32x32xf32>, vector<20x32xf32> -> vector<20x32xf32>
    %91 = arith.addf %62, %90 : vector<20x32xf32>
    %92 = math.tanh %91 : vector<20x32xf32>
    %c0_51 = arith.constant 0 : index
    %93 = arith.index_cast %c1_i32 : i32 to index
    %c0_52 = arith.constant 0 : index
    %c0_53 = arith.constant 0 : index
    %94 = vector.load %arg11[%c0_51, %93, %c0_52, %c0_53] : memref<1x8x20x32xf32, #tpu.memory_space<vmem>>, vector<1x1x20x32xf32>
    %95 = vector.shape_cast %94 : vector<1x1x20x32xf32> to vector<20x32xf32>
    %96 = vector.shape_cast %92 : vector<20x32xf32> to vector<1x1x20x32xf32>
    tpu.vector_store %arg11[%c0_51, %93, %c0_52, %c0_53], %96 {strides = array<i32>} : memref<1x8x20x32xf32, #tpu.memory_space<vmem>>, vector<1x1x20x32xf32>,
    %cst_54 = arith.constant dense<0.000000e+00> : vector<20x3xf32>
    %97 = tpu.matmul %92, %4, %cst_54 {dimension_numbers = #tpu.dot_dimension_numbers<[1], [0], [0], [1], [0, 0, 1, 1], [], []>} : vector<20x32xf32>, vector<32x3xf32>, vector<20x3xf32> -> vector<20x3xf32>
    %98 = vector.broadcast %5 : vector<1x3xf32> to vector<20x3xf32>
    %99 = arith.addf %97, %98 : vector<20x3xf32>
    %100 = arith.subf %65, %99 : vector<20x3xf32>
    %101 = arith.mulf %100, %100 : vector<20x3xf32>
    %cst_55 = arith.constant dense<0.000000e+00> : vector<20xf32>
    %102 = vector.multi_reduction <add>, %101, %cst_55 [1] : vector<20x3xf32> to vector<20xf32>
    %103 = vector.shape_cast %102 : vector<20xf32> to vector<20x1xf32>
    %cst_56 = arith.constant -1.000000e+00 : f32
    %104 = vector.broadcast %cst_56 : f32 to vector<20x1xf32>
    %105 = arith.mulf %104, %103 : vector<20x1xf32>
    %cst_57 = arith.constant dense<0xFF800000> : vector<1xf32>
    %106 = vector.multi_reduction <maximumf>, %105, %cst_57 [0] : vector<20x1xf32> to vector<1xf32>
    %107 = vector.shape_cast %106 : vector<1xf32> to vector<1x1xf32>
    %108 = vector.broadcast %107 : vector<1x1xf32> to vector<20x1xf32>
    %109 = arith.subf %105, %108 : vector<20x1xf32>
    %110 = math.exp %109 : vector<20x1xf32>
    %c2_i32 = arith.constant 2 : i32
    %c0_58 = arith.constant 0 : index
    %111 = arith.index_cast %c2_i32 : i32 to index
    %c0_59 = arith.constant 0 : index
    %c0_60 = arith.constant 0 : index
    %112 = vector.load %arg1[%c0_58, %111, %c0_59, %c0_60] : memref<1x8x20x32xf32, #tpu.memory_space<vmem>>, vector<1x1x20x32xf32>
    %113 = vector.shape_cast %112 : vector<1x1x20x32xf32> to vector<20x32xf32>
    %c0_61 = arith.constant 0 : index
    %114 = arith.index_cast %c2_i32 : i32 to index
    %c0_62 = arith.constant 0 : index
    %c0_63 = arith.constant 0 : index
    %115 = vector.load %arg2[%c0_61, %114, %c0_62, %c0_63] : memref<1x8x20x3xf32, #tpu.memory_space<vmem>>, vector<1x1x20x3xf32>
    %116 = vector.shape_cast %115 : vector<1x1x20x3xf32> to vector<20x3xf32>
    %c0_64 = arith.constant 0 : index
    %117 = arith.index_cast %c2_i32 : i32 to index
    %c0_65 = arith.constant 0 : index
    %c0_66 = arith.constant 0 : index
    %118 = vector.load %arg3[%c0_64, %117, %c0_65, %c0_66] : memref<1x8x1x20xf32, #tpu.memory_space<vmem>>, vector<1x1x1x20xf32>
    %119 = vector.shape_cast %118 : vector<1x1x1x20xf32> to vector<1x20xf32>
    %cst_67 = arith.constant dense<0.000000e+00> : vector<20x1xf32>
    %120 = tpu.matmul %0, %110, %cst_67 {dimension_numbers = #tpu.dot_dimension_numbers<[1], [0], [0], [1], [0, 0, 1, 1], [], []>} : vector<20x20xf32>, vector<20x1xf32>, vector<20x1xf32> -> vector<20x1xf32>
    %cst_68 = arith.constant dense<0.000000e+00> : vector<20x1xf32>
    %121 = tpu.matmul %1, %110, %cst_68 {dimension_numbers = #tpu.dot_dimension_numbers<[1], [0], [0], [1], [0, 0, 1, 1], [], []>} : vector<20x20xf32>, vector<20x1xf32>, vector<20x1xf32> -> vector<20x1xf32>
    %122 = vector.broadcast %119 : vector<1x20xf32> to vector<20x20xf32>
    %123 = vector.broadcast %121 : vector<20x1xf32> to vector<20x20xf32>
    %124 = arith.mulf %122, %123 : vector<20x20xf32>
    %125 = vector.broadcast %120 : vector<20x1xf32> to vector<20x20xf32>
    %126 = arith.cmpf ole, %125, %124 : vector<20x20xf32>
    %127 = arith.extui %126 : vector<20x20xi1> to vector<20x20xi32>
    %128 = arith.sitofp %127 : vector<20x20xi32> to vector<20x20xf32>
    %129 = arith.mulf %1, %128 : vector<20x20xf32>
    %cst_69 = arith.constant dense<0.000000e+00> : vector<20xf32>
    %130 = vector.multi_reduction <add>, %129, %cst_69 [0] : vector<20x20xf32> to vector<20xf32>
    %131 = vector.shape_cast %130 : vector<20xf32> to vector<1x20xf32>
    %cst_70 = arith.constant 9.000000e+00 : f32
    %132 = vector.broadcast %cst_70 : f32 to vector<1x20xf32>
    %133 = arith.minimumf %131, %132 : vector<1x20xf32>
    %134 = vector.broadcast %2 : vector<20x1xf32> to vector<20x20xf32>
    %135 = vector.broadcast %133 : vector<1x20xf32> to vector<20x20xf32>
    %136 = arith.cmpf oeq, %134, %135 : vector<20x20xf32>
    %137 = arith.extui %136 : vector<20x20xi1> to vector<20x20xi32>
    %138 = arith.sitofp %137 : vector<20x20xi32> to vector<20x20xf32>
    %139 = arith.mulf %1, %138 : vector<20x20xf32>
    %cst_71 = arith.constant dense<0.000000e+00> : vector<20x32xf32>
    %140 = tpu.matmul %139, %92, %cst_71 {dimension_numbers = #tpu.dot_dimension_numbers<[0], [0], [1], [1], [0, 1, 1, 1], [], []>} : vector<20x20xf32>, vector<20x32xf32>, vector<20x32xf32> -> vector<20x32xf32>
    %cst_72 = arith.constant dense<0.000000e+00> : vector<20x32xf32>
    %141 = tpu.matmul %140, %3, %cst_72 {dimension_numbers = #tpu.dot_dimension_numbers<[1], [0], [0], [1], [0, 0, 1, 1], [], []>} : vector<20x32xf32>, vector<32x32xf32>, vector<20x32xf32> -> vector<20x32xf32>
    %142 = arith.addf %113, %141 : vector<20x32xf32>
    %143 = math.tanh %142 : vector<20x32xf32>
    %c0_73 = arith.constant 0 : index
    %144 = arith.index_cast %c2_i32 : i32 to index
    %c0_74 = arith.constant 0 : index
    %c0_75 = arith.constant 0 : index
    %145 = vector.load %arg11[%c0_73, %144, %c0_74, %c0_75] : memref<1x8x20x32xf32, #tpu.memory_space<vmem>>, vector<1x1x20x32xf32>
    %146 = vector.shape_cast %145 : vector<1x1x20x32xf32> to vector<20x32xf32>
    %147 = vector.shape_cast %143 : vector<20x32xf32> to vector<1x1x20x32xf32>
    tpu.vector_store %arg11[%c0_73, %144, %c0_74, %c0_75], %147 {strides = array<i32>} : memref<1x8x20x32xf32, #tpu.memory_space<vmem>>, vector<1x1x20x32xf32>,
    %cst_76 = arith.constant dense<0.000000e+00> : vector<20x3xf32>
    %148 = tpu.matmul %143, %4, %cst_76 {dimension_numbers = #tpu.dot_dimension_numbers<[1], [0], [0], [1], [0, 0, 1, 1], [], []>} : vector<20x32xf32>, vector<32x3xf32>, vector<20x3xf32> -> vector<20x3xf32>
    %149 = vector.broadcast %5 : vector<1x3xf32> to vector<20x3xf32>
    %150 = arith.addf %148, %149 : vector<20x3xf32>
    %151 = arith.subf %116, %150 : vector<20x3xf32>
    %152 = arith.mulf %151, %151 : vector<20x3xf32>
    %cst_77 = arith.constant dense<0.000000e+00> : vector<20xf32>
    %153 = vector.multi_reduction <add>, %152, %cst_77 [1] : vector<20x3xf32> to vector<20xf32>
    %154 = vector.shape_cast %153 : vector<20xf32> to vector<20x1xf32>
    %cst_78 = arith.constant -1.000000e+00 : f32
    %155 = vector.broadcast %cst_78 : f32 to vector<20x1xf32>
    %156 = arith.mulf %155, %154 : vector<20x1xf32>
    %cst_79 = arith.constant dense<0xFF800000> : vector<1xf32>
    %157 = vector.multi_reduction <maximumf>, %156, %cst_79 [0] : vector<20x1xf32> to vector<1xf32>
    %158 = vector.shape_cast %157 : vector<1xf32> to vector<1x1xf32>
    %159 = vector.broadcast %158 : vector<1x1xf32> to vector<20x1xf32>
    %160 = arith.subf %156, %159 : vector<20x1xf32>
    %161 = math.exp %160 : vector<20x1xf32>
    %c3_i32 = arith.constant 3 : i32
    %c0_80 = arith.constant 0 : index
    %162 = arith.index_cast %c3_i32 : i32 to index
    %c0_81 = arith.constant 0 : index
    %c0_82 = arith.constant 0 : index
    %163 = vector.load %arg1[%c0_80, %162, %c0_81, %c0_82] : memref<1x8x20x32xf32, #tpu.memory_space<vmem>>, vector<1x1x20x32xf32>
    %164 = vector.shape_cast %163 : vector<1x1x20x32xf32> to vector<20x32xf32>
    %c0_83 = arith.constant 0 : index
    %165 = arith.index_cast %c3_i32 : i32 to index
    %c0_84 = arith.constant 0 : index
    %c0_85 = arith.constant 0 : index
    %166 = vector.load %arg2[%c0_83, %165, %c0_84, %c0_85] : memref<1x8x20x3xf32, #tpu.memory_space<vmem>>, vector<1x1x20x3xf32>
    %167 = vector.shape_cast %166 : vector<1x1x20x3xf32> to vector<20x3xf32>
    %c0_86 = arith.constant 0 : index
    %168 = arith.index_cast %c3_i32 : i32 to index
    %c0_87 = arith.constant 0 : index
    %c0_88 = arith.constant 0 : index
    %169 = vector.load %arg3[%c0_86, %168, %c0_87, %c0_88] : memref<1x8x1x20xf32, #tpu.memory_space<vmem>>, vector<1x1x1x20xf32>
    %170 = vector.shape_cast %169 : vector<1x1x1x20xf32> to vector<1x20xf32>
    %cst_89 = arith.constant dense<0.000000e+00> : vector<20x1xf32>
    %171 = tpu.matmul %0, %161, %cst_89 {dimension_numbers = #tpu.dot_dimension_numbers<[1], [0], [0], [1], [0, 0, 1, 1], [], []>} : vector<20x20xf32>, vector<20x1xf32>, vector<20x1xf32> -> vector<20x1xf32>
    %cst_90 = arith.constant dense<0.000000e+00> : vector<20x1xf32>
    %172 = tpu.matmul %1, %161, %cst_90 {dimension_numbers = #tpu.dot_dimension_numbers<[1], [0], [0], [1], [0, 0, 1, 1], [], []>} : vector<20x20xf32>, vector<20x1xf32>, vector<20x1xf32> -> vector<20x1xf32>
    %173 = vector.broadcast %170 : vector<1x20xf32> to vector<20x20xf32>
    %174 = vector.broadcast %172 : vector<20x1xf32> to vector<20x20xf32>
    %175 = arith.mulf %173, %174 : vector<20x20xf32>
    %176 = vector.broadcast %171 : vector<20x1xf32> to vector<20x20xf32>
    %177 = arith.cmpf ole, %176, %175 : vector<20x20xf32>
    %178 = arith.extui %177 : vector<20x20xi1> to vector<20x20xi32>
    %179 = arith.sitofp %178 : vector<20x20xi32> to vector<20x20xf32>
    %180 = arith.mulf %1, %179 : vector<20x20xf32>
    %cst_91 = arith.constant dense<0.000000e+00> : vector<20xf32>
    %181 = vector.multi_reduction <add>, %180, %cst_91 [0] : vector<20x20xf32> to vector<20xf32>
    %182 = vector.shape_cast %181 : vector<20xf32> to vector<1x20xf32>
    %cst_92 = arith.constant 9.000000e+00 : f32
    %183 = vector.broadcast %cst_92 : f32 to vector<1x20xf32>
    %184 = arith.minimumf %182, %183 : vector<1x20xf32>
    %185 = vector.broadcast %2 : vector<20x1xf32> to vector<20x20xf32>
    %186 = vector.broadcast %184 : vector<1x20xf32> to vector<20x20xf32>
    %187 = arith.cmpf oeq, %185, %186 : vector<20x20xf32>
    %188 = arith.extui %187 : vector<20x20xi1> to vector<20x20xi32>
    %189 = arith.sitofp %188 : vector<20x20xi32> to vector<20x20xf32>
    %190 = arith.mulf %1, %189 : vector<20x20xf32>
    %cst_93 = arith.constant dense<0.000000e+00> : vector<20x32xf32>
    %191 = tpu.matmul %190, %143, %cst_93 {dimension_numbers = #tpu.dot_dimension_numbers<[0], [0], [1], [1], [0, 1, 1, 1], [], []>} : vector<20x20xf32>, vector<20x32xf32>, vector<20x32xf32> -> vector<20x32xf32>
    %cst_94 = arith.constant dense<0.000000e+00> : vector<20x32xf32>
    %192 = tpu.matmul %191, %3, %cst_94 {dimension_numbers = #tpu.dot_dimension_numbers<[1], [0], [0], [1], [0, 0, 1, 1], [], []>} : vector<20x32xf32>, vector<32x32xf32>, vector<20x32xf32> -> vector<20x32xf32>
    %193 = arith.addf %164, %192 : vector<20x32xf32>
    %194 = math.tanh %193 : vector<20x32xf32>
    %c0_95 = arith.constant 0 : index
    %195 = arith.index_cast %c3_i32 : i32 to index
    %c0_96 = arith.constant 0 : index
    %c0_97 = arith.constant 0 : index
    %196 = vector.load %arg11[%c0_95, %195, %c0_96, %c0_97] : memref<1x8x20x32xf32, #tpu.memory_space<vmem>>, vector<1x1x20x32xf32>
    %197 = vector.shape_cast %196 : vector<1x1x20x32xf32> to vector<20x32xf32>
    %198 = vector.shape_cast %194 : vector<20x32xf32> to vector<1x1x20x32xf32>
    tpu.vector_store %arg11[%c0_95, %195, %c0_96, %c0_97], %198 {strides = array<i32>} : memref<1x8x20x32xf32, #tpu.memory_space<vmem>>, vector<1x1x20x32xf32>,
    %cst_98 = arith.constant dense<0.000000e+00> : vector<20x3xf32>
    %199 = tpu.matmul %194, %4, %cst_98 {dimension_numbers = #tpu.dot_dimension_numbers<[1], [0], [0], [1], [0, 0, 1, 1], [], []>} : vector<20x32xf32>, vector<32x3xf32>, vector<20x3xf32> -> vector<20x3xf32>
    %200 = vector.broadcast %5 : vector<1x3xf32> to vector<20x3xf32>
    %201 = arith.addf %199, %200 : vector<20x3xf32>
    %202 = arith.subf %167, %201 : vector<20x3xf32>
    %203 = arith.mulf %202, %202 : vector<20x3xf32>
    %cst_99 = arith.constant dense<0.000000e+00> : vector<20xf32>
    %204 = vector.multi_reduction <add>, %203, %cst_99 [1] : vector<20x3xf32> to vector<20xf32>
    %205 = vector.shape_cast %204 : vector<20xf32> to vector<20x1xf32>
    %cst_100 = arith.constant -1.000000e+00 : f32
    %206 = vector.broadcast %cst_100 : f32 to vector<20x1xf32>
    %207 = arith.mulf %206, %205 : vector<20x1xf32>
    %cst_101 = arith.constant dense<0xFF800000> : vector<1xf32>
    %208 = vector.multi_reduction <maximumf>, %207, %cst_101 [0] : vector<20x1xf32> to vector<1xf32>
    %209 = vector.shape_cast %208 : vector<1xf32> to vector<1x1xf32>
    %210 = vector.broadcast %209 : vector<1x1xf32> to vector<20x1xf32>
    %211 = arith.subf %207, %210 : vector<20x1xf32>
    %212 = math.exp %211 : vector<20x1xf32>
    %c4_i32 = arith.constant 4 : i32
    %c0_102 = arith.constant 0 : index
    %213 = arith.index_cast %c4_i32 : i32 to index
    %c0_103 = arith.constant 0 : index
    %c0_104 = arith.constant 0 : index
    %214 = vector.load %arg1[%c0_102, %213, %c0_103, %c0_104] : memref<1x8x20x32xf32, #tpu.memory_space<vmem>>, vector<1x1x20x32xf32>
    %215 = vector.shape_cast %214 : vector<1x1x20x32xf32> to vector<20x32xf32>
    %c0_105 = arith.constant 0 : index
    %216 = arith.index_cast %c4_i32 : i32 to index
    %c0_106 = arith.constant 0 : index
    %c0_107 = arith.constant 0 : index
    %217 = vector.load %arg2[%c0_105, %216, %c0_106, %c0_107] : memref<1x8x20x3xf32, #tpu.memory_space<vmem>>, vector<1x1x20x3xf32>
    %218 = vector.shape_cast %217 : vector<1x1x20x3xf32> to vector<20x3xf32>
    %c0_108 = arith.constant 0 : index
    %219 = arith.index_cast %c4_i32 : i32 to index
    %c0_109 = arith.constant 0 : index
    %c0_110 = arith.constant 0 : index
    %220 = vector.load %arg3[%c0_108, %219, %c0_109, %c0_110] : memref<1x8x1x20xf32, #tpu.memory_space<vmem>>, vector<1x1x1x20xf32>
    %221 = vector.shape_cast %220 : vector<1x1x1x20xf32> to vector<1x20xf32>
    %cst_111 = arith.constant dense<0.000000e+00> : vector<20x1xf32>
    %222 = tpu.matmul %0, %212, %cst_111 {dimension_numbers = #tpu.dot_dimension_numbers<[1], [0], [0], [1], [0, 0, 1, 1], [], []>} : vector<20x20xf32>, vector<20x1xf32>, vector<20x1xf32> -> vector<20x1xf32>
    %cst_112 = arith.constant dense<0.000000e+00> : vector<20x1xf32>
    %223 = tpu.matmul %1, %212, %cst_112 {dimension_numbers = #tpu.dot_dimension_numbers<[1], [0], [0], [1], [0, 0, 1, 1], [], []>} : vector<20x20xf32>, vector<20x1xf32>, vector<20x1xf32> -> vector<20x1xf32>
    %224 = vector.broadcast %221 : vector<1x20xf32> to vector<20x20xf32>
    %225 = vector.broadcast %223 : vector<20x1xf32> to vector<20x20xf32>
    %226 = arith.mulf %224, %225 : vector<20x20xf32>
    %227 = vector.broadcast %222 : vector<20x1xf32> to vector<20x20xf32>
    %228 = arith.cmpf ole, %227, %226 : vector<20x20xf32>
    %229 = arith.extui %228 : vector<20x20xi1> to vector<20x20xi32>
    %230 = arith.sitofp %229 : vector<20x20xi32> to vector<20x20xf32>
    %231 = arith.mulf %1, %230 : vector<20x20xf32>
    %cst_113 = arith.constant dense<0.000000e+00> : vector<20xf32>
    %232 = vector.multi_reduction <add>, %231, %cst_113 [0] : vector<20x20xf32> to vector<20xf32>
    %233 = vector.shape_cast %232 : vector<20xf32> to vector<1x20xf32>
    %cst_114 = arith.constant 9.000000e+00 : f32
    %234 = vector.broadcast %cst_114 : f32 to vector<1x20xf32>
    %235 = arith.minimumf %233, %234 : vector<1x20xf32>
    %236 = vector.broadcast %2 : vector<20x1xf32> to vector<20x20xf32>
    %237 = vector.broadcast %235 : vector<1x20xf32> to vector<20x20xf32>
    %238 = arith.cmpf oeq, %236, %237 : vector<20x20xf32>
    %239 = arith.extui %238 : vector<20x20xi1> to vector<20x20xi32>
    %240 = arith.sitofp %239 : vector<20x20xi32> to vector<20x20xf32>
    %241 = arith.mulf %1, %240 : vector<20x20xf32>
    %cst_115 = arith.constant dense<0.000000e+00> : vector<20x32xf32>
    %242 = tpu.matmul %241, %194, %cst_115 {dimension_numbers = #tpu.dot_dimension_numbers<[0], [0], [1], [1], [0, 1, 1, 1], [], []>} : vector<20x20xf32>, vector<20x32xf32>, vector<20x32xf32> -> vector<20x32xf32>
    %cst_116 = arith.constant dense<0.000000e+00> : vector<20x32xf32>
    %243 = tpu.matmul %242, %3, %cst_116 {dimension_numbers = #tpu.dot_dimension_numbers<[1], [0], [0], [1], [0, 0, 1, 1], [], []>} : vector<20x32xf32>, vector<32x32xf32>, vector<20x32xf32> -> vector<20x32xf32>
    %244 = arith.addf %215, %243 : vector<20x32xf32>
    %245 = math.tanh %244 : vector<20x32xf32>
    %c0_117 = arith.constant 0 : index
    %246 = arith.index_cast %c4_i32 : i32 to index
    %c0_118 = arith.constant 0 : index
    %c0_119 = arith.constant 0 : index
    %247 = vector.load %arg11[%c0_117, %246, %c0_118, %c0_119] : memref<1x8x20x32xf32, #tpu.memory_space<vmem>>, vector<1x1x20x32xf32>
    %248 = vector.shape_cast %247 : vector<1x1x20x32xf32> to vector<20x32xf32>
    %249 = vector.shape_cast %245 : vector<20x32xf32> to vector<1x1x20x32xf32>
    tpu.vector_store %arg11[%c0_117, %246, %c0_118, %c0_119], %249 {strides = array<i32>} : memref<1x8x20x32xf32, #tpu.memory_space<vmem>>, vector<1x1x20x32xf32>,
    %cst_120 = arith.constant dense<0.000000e+00> : vector<20x3xf32>
    %250 = tpu.matmul %245, %4, %cst_120 {dimension_numbers = #tpu.dot_dimension_numbers<[1], [0], [0], [1], [0, 0, 1, 1], [], []>} : vector<20x32xf32>, vector<32x3xf32>, vector<20x3xf32> -> vector<20x3xf32>
    %251 = vector.broadcast %5 : vector<1x3xf32> to vector<20x3xf32>
    %252 = arith.addf %250, %251 : vector<20x3xf32>
    %253 = arith.subf %218, %252 : vector<20x3xf32>
    %254 = arith.mulf %253, %253 : vector<20x3xf32>
    %cst_121 = arith.constant dense<0.000000e+00> : vector<20xf32>
    %255 = vector.multi_reduction <add>, %254, %cst_121 [1] : vector<20x3xf32> to vector<20xf32>
    %256 = vector.shape_cast %255 : vector<20xf32> to vector<20x1xf32>
    %cst_122 = arith.constant -1.000000e+00 : f32
    %257 = vector.broadcast %cst_122 : f32 to vector<20x1xf32>
    %258 = arith.mulf %257, %256 : vector<20x1xf32>
    %cst_123 = arith.constant dense<0xFF800000> : vector<1xf32>
    %259 = vector.multi_reduction <maximumf>, %258, %cst_123 [0] : vector<20x1xf32> to vector<1xf32>
    %260 = vector.shape_cast %259 : vector<1xf32> to vector<1x1xf32>
    %261 = vector.broadcast %260 : vector<1x1xf32> to vector<20x1xf32>
    %262 = arith.subf %258, %261 : vector<20x1xf32>
    %263 = math.exp %262 : vector<20x1xf32>
    %c5_i32 = arith.constant 5 : i32
    %c0_124 = arith.constant 0 : index
    %264 = arith.index_cast %c5_i32 : i32 to index
    %c0_125 = arith.constant 0 : index
    %c0_126 = arith.constant 0 : index
    %265 = vector.load %arg1[%c0_124, %264, %c0_125, %c0_126] : memref<1x8x20x32xf32, #tpu.memory_space<vmem>>, vector<1x1x20x32xf32>
    %266 = vector.shape_cast %265 : vector<1x1x20x32xf32> to vector<20x32xf32>
    %c0_127 = arith.constant 0 : index
    %267 = arith.index_cast %c5_i32 : i32 to index
    %c0_128 = arith.constant 0 : index
    %c0_129 = arith.constant 0 : index
    %268 = vector.load %arg2[%c0_127, %267, %c0_128, %c0_129] : memref<1x8x20x3xf32, #tpu.memory_space<vmem>>, vector<1x1x20x3xf32>
    %269 = vector.shape_cast %268 : vector<1x1x20x3xf32> to vector<20x3xf32>
    %c0_130 = arith.constant 0 : index
    %270 = arith.index_cast %c5_i32 : i32 to index
    %c0_131 = arith.constant 0 : index
    %c0_132 = arith.constant 0 : index
    %271 = vector.load %arg3[%c0_130, %270, %c0_131, %c0_132] : memref<1x8x1x20xf32, #tpu.memory_space<vmem>>, vector<1x1x1x20xf32>
    %272 = vector.shape_cast %271 : vector<1x1x1x20xf32> to vector<1x20xf32>
    %cst_133 = arith.constant dense<0.000000e+00> : vector<20x1xf32>
    %273 = tpu.matmul %0, %263, %cst_133 {dimension_numbers = #tpu.dot_dimension_numbers<[1], [0], [0], [1], [0, 0, 1, 1], [], []>} : vector<20x20xf32>, vector<20x1xf32>, vector<20x1xf32> -> vector<20x1xf32>
    %cst_134 = arith.constant dense<0.000000e+00> : vector<20x1xf32>
    %274 = tpu.matmul %1, %263, %cst_134 {dimension_numbers = #tpu.dot_dimension_numbers<[1], [0], [0], [1], [0, 0, 1, 1], [], []>} : vector<20x20xf32>, vector<20x1xf32>, vector<20x1xf32> -> vector<20x1xf32>
    %275 = vector.broadcast %272 : vector<1x20xf32> to vector<20x20xf32>
    %276 = vector.broadcast %274 : vector<20x1xf32> to vector<20x20xf32>
    %277 = arith.mulf %275, %276 : vector<20x20xf32>
    %278 = vector.broadcast %273 : vector<20x1xf32> to vector<20x20xf32>
    %279 = arith.cmpf ole, %278, %277 : vector<20x20xf32>
    %280 = arith.extui %279 : vector<20x20xi1> to vector<20x20xi32>
    %281 = arith.sitofp %280 : vector<20x20xi32> to vector<20x20xf32>
    %282 = arith.mulf %1, %281 : vector<20x20xf32>
    %cst_135 = arith.constant dense<0.000000e+00> : vector<20xf32>
    %283 = vector.multi_reduction <add>, %282, %cst_135 [0] : vector<20x20xf32> to vector<20xf32>
    %284 = vector.shape_cast %283 : vector<20xf32> to vector<1x20xf32>
    %cst_136 = arith.constant 9.000000e+00 : f32
    %285 = vector.broadcast %cst_136 : f32 to vector<1x20xf32>
    %286 = arith.minimumf %284, %285 : vector<1x20xf32>
    %287 = vector.broadcast %2 : vector<20x1xf32> to vector<20x20xf32>
    %288 = vector.broadcast %286 : vector<1x20xf32> to vector<20x20xf32>
    %289 = arith.cmpf oeq, %287, %288 : vector<20x20xf32>
    %290 = arith.extui %289 : vector<20x20xi1> to vector<20x20xi32>
    %291 = arith.sitofp %290 : vector<20x20xi32> to vector<20x20xf32>
    %292 = arith.mulf %1, %291 : vector<20x20xf32>
    %cst_137 = arith.constant dense<0.000000e+00> : vector<20x32xf32>
    %293 = tpu.matmul %292, %245, %cst_137 {dimension_numbers = #tpu.dot_dimension_numbers<[0], [0], [1], [1], [0, 1, 1, 1], [], []>} : vector<20x20xf32>, vector<20x32xf32>, vector<20x32xf32> -> vector<20x32xf32>
    %cst_138 = arith.constant dense<0.000000e+00> : vector<20x32xf32>
    %294 = tpu.matmul %293, %3, %cst_138 {dimension_numbers = #tpu.dot_dimension_numbers<[1], [0], [0], [1], [0, 0, 1, 1], [], []>} : vector<20x32xf32>, vector<32x32xf32>, vector<20x32xf32> -> vector<20x32xf32>
    %295 = arith.addf %266, %294 : vector<20x32xf32>
    %296 = math.tanh %295 : vector<20x32xf32>
    %c0_139 = arith.constant 0 : index
    %297 = arith.index_cast %c5_i32 : i32 to index
    %c0_140 = arith.constant 0 : index
    %c0_141 = arith.constant 0 : index
    %298 = vector.load %arg11[%c0_139, %297, %c0_140, %c0_141] : memref<1x8x20x32xf32, #tpu.memory_space<vmem>>, vector<1x1x20x32xf32>
    %299 = vector.shape_cast %298 : vector<1x1x20x32xf32> to vector<20x32xf32>
    %300 = vector.shape_cast %296 : vector<20x32xf32> to vector<1x1x20x32xf32>
    tpu.vector_store %arg11[%c0_139, %297, %c0_140, %c0_141], %300 {strides = array<i32>} : memref<1x8x20x32xf32, #tpu.memory_space<vmem>>, vector<1x1x20x32xf32>,
    %cst_142 = arith.constant dense<0.000000e+00> : vector<20x3xf32>
    %301 = tpu.matmul %296, %4, %cst_142 {dimension_numbers = #tpu.dot_dimension_numbers<[1], [0], [0], [1], [0, 0, 1, 1], [], []>} : vector<20x32xf32>, vector<32x3xf32>, vector<20x3xf32> -> vector<20x3xf32>
    %302 = vector.broadcast %5 : vector<1x3xf32> to vector<20x3xf32>
    %303 = arith.addf %301, %302 : vector<20x3xf32>
    %304 = arith.subf %269, %303 : vector<20x3xf32>
    %305 = arith.mulf %304, %304 : vector<20x3xf32>
    %cst_143 = arith.constant dense<0.000000e+00> : vector<20xf32>
    %306 = vector.multi_reduction <add>, %305, %cst_143 [1] : vector<20x3xf32> to vector<20xf32>
    %307 = vector.shape_cast %306 : vector<20xf32> to vector<20x1xf32>
    %cst_144 = arith.constant -1.000000e+00 : f32
    %308 = vector.broadcast %cst_144 : f32 to vector<20x1xf32>
    %309 = arith.mulf %308, %307 : vector<20x1xf32>
    %cst_145 = arith.constant dense<0xFF800000> : vector<1xf32>
    %310 = vector.multi_reduction <maximumf>, %309, %cst_145 [0] : vector<20x1xf32> to vector<1xf32>
    %311 = vector.shape_cast %310 : vector<1xf32> to vector<1x1xf32>
    %312 = vector.broadcast %311 : vector<1x1xf32> to vector<20x1xf32>
    %313 = arith.subf %309, %312 : vector<20x1xf32>
    %314 = math.exp %313 : vector<20x1xf32>
    %c6_i32 = arith.constant 6 : i32
    %c0_146 = arith.constant 0 : index
    %315 = arith.index_cast %c6_i32 : i32 to index
    %c0_147 = arith.constant 0 : index
    %c0_148 = arith.constant 0 : index
    %316 = vector.load %arg1[%c0_146, %315, %c0_147, %c0_148] : memref<1x8x20x32xf32, #tpu.memory_space<vmem>>, vector<1x1x20x32xf32>
    %317 = vector.shape_cast %316 : vector<1x1x20x32xf32> to vector<20x32xf32>
    %c0_149 = arith.constant 0 : index
    %318 = arith.index_cast %c6_i32 : i32 to index
    %c0_150 = arith.constant 0 : index
    %c0_151 = arith.constant 0 : index
    %319 = vector.load %arg2[%c0_149, %318, %c0_150, %c0_151] : memref<1x8x20x3xf32, #tpu.memory_space<vmem>>, vector<1x1x20x3xf32>
    %320 = vector.shape_cast %319 : vector<1x1x20x3xf32> to vector<20x3xf32>
    %c0_152 = arith.constant 0 : index
    %321 = arith.index_cast %c6_i32 : i32 to index
    %c0_153 = arith.constant 0 : index
    %c0_154 = arith.constant 0 : index
    %322 = vector.load %arg3[%c0_152, %321, %c0_153, %c0_154] : memref<1x8x1x20xf32, #tpu.memory_space<vmem>>, vector<1x1x1x20xf32>
    %323 = vector.shape_cast %322 : vector<1x1x1x20xf32> to vector<1x20xf32>
    %cst_155 = arith.constant dense<0.000000e+00> : vector<20x1xf32>
    %324 = tpu.matmul %0, %314, %cst_155 {dimension_numbers = #tpu.dot_dimension_numbers<[1], [0], [0], [1], [0, 0, 1, 1], [], []>} : vector<20x20xf32>, vector<20x1xf32>, vector<20x1xf32> -> vector<20x1xf32>
    %cst_156 = arith.constant dense<0.000000e+00> : vector<20x1xf32>
    %325 = tpu.matmul %1, %314, %cst_156 {dimension_numbers = #tpu.dot_dimension_numbers<[1], [0], [0], [1], [0, 0, 1, 1], [], []>} : vector<20x20xf32>, vector<20x1xf32>, vector<20x1xf32> -> vector<20x1xf32>
    %326 = vector.broadcast %323 : vector<1x20xf32> to vector<20x20xf32>
    %327 = vector.broadcast %325 : vector<20x1xf32> to vector<20x20xf32>
    %328 = arith.mulf %326, %327 : vector<20x20xf32>
    %329 = vector.broadcast %324 : vector<20x1xf32> to vector<20x20xf32>
    %330 = arith.cmpf ole, %329, %328 : vector<20x20xf32>
    %331 = arith.extui %330 : vector<20x20xi1> to vector<20x20xi32>
    %332 = arith.sitofp %331 : vector<20x20xi32> to vector<20x20xf32>
    %333 = arith.mulf %1, %332 : vector<20x20xf32>
    %cst_157 = arith.constant dense<0.000000e+00> : vector<20xf32>
    %334 = vector.multi_reduction <add>, %333, %cst_157 [0] : vector<20x20xf32> to vector<20xf32>
    %335 = vector.shape_cast %334 : vector<20xf32> to vector<1x20xf32>
    %cst_158 = arith.constant 9.000000e+00 : f32
    %336 = vector.broadcast %cst_158 : f32 to vector<1x20xf32>
    %337 = arith.minimumf %335, %336 : vector<1x20xf32>
    %338 = vector.broadcast %2 : vector<20x1xf32> to vector<20x20xf32>
    %339 = vector.broadcast %337 : vector<1x20xf32> to vector<20x20xf32>
    %340 = arith.cmpf oeq, %338, %339 : vector<20x20xf32>
    %341 = arith.extui %340 : vector<20x20xi1> to vector<20x20xi32>
    %342 = arith.sitofp %341 : vector<20x20xi32> to vector<20x20xf32>
    %343 = arith.mulf %1, %342 : vector<20x20xf32>
    %cst_159 = arith.constant dense<0.000000e+00> : vector<20x32xf32>
    %344 = tpu.matmul %343, %296, %cst_159 {dimension_numbers = #tpu.dot_dimension_numbers<[0], [0], [1], [1], [0, 1, 1, 1], [], []>} : vector<20x20xf32>, vector<20x32xf32>, vector<20x32xf32> -> vector<20x32xf32>
    %cst_160 = arith.constant dense<0.000000e+00> : vector<20x32xf32>
    %345 = tpu.matmul %344, %3, %cst_160 {dimension_numbers = #tpu.dot_dimension_numbers<[1], [0], [0], [1], [0, 0, 1, 1], [], []>} : vector<20x32xf32>, vector<32x32xf32>, vector<20x32xf32> -> vector<20x32xf32>
    %346 = arith.addf %317, %345 : vector<20x32xf32>
    %347 = math.tanh %346 : vector<20x32xf32>
    %c0_161 = arith.constant 0 : index
    %348 = arith.index_cast %c6_i32 : i32 to index
    %c0_162 = arith.constant 0 : index
    %c0_163 = arith.constant 0 : index
    %349 = vector.load %arg11[%c0_161, %348, %c0_162, %c0_163] : memref<1x8x20x32xf32, #tpu.memory_space<vmem>>, vector<1x1x20x32xf32>
    %350 = vector.shape_cast %349 : vector<1x1x20x32xf32> to vector<20x32xf32>
    %351 = vector.shape_cast %347 : vector<20x32xf32> to vector<1x1x20x32xf32>
    tpu.vector_store %arg11[%c0_161, %348, %c0_162, %c0_163], %351 {strides = array<i32>} : memref<1x8x20x32xf32, #tpu.memory_space<vmem>>, vector<1x1x20x32xf32>,
    %cst_164 = arith.constant dense<0.000000e+00> : vector<20x3xf32>
    %352 = tpu.matmul %347, %4, %cst_164 {dimension_numbers = #tpu.dot_dimension_numbers<[1], [0], [0], [1], [0, 0, 1, 1], [], []>} : vector<20x32xf32>, vector<32x3xf32>, vector<20x3xf32> -> vector<20x3xf32>
    %353 = vector.broadcast %5 : vector<1x3xf32> to vector<20x3xf32>
    %354 = arith.addf %352, %353 : vector<20x3xf32>
    %355 = arith.subf %320, %354 : vector<20x3xf32>
    %356 = arith.mulf %355, %355 : vector<20x3xf32>
    %cst_165 = arith.constant dense<0.000000e+00> : vector<20xf32>
    %357 = vector.multi_reduction <add>, %356, %cst_165 [1] : vector<20x3xf32> to vector<20xf32>
    %358 = vector.shape_cast %357 : vector<20xf32> to vector<20x1xf32>
    %cst_166 = arith.constant -1.000000e+00 : f32
    %359 = vector.broadcast %cst_166 : f32 to vector<20x1xf32>
    %360 = arith.mulf %359, %358 : vector<20x1xf32>
    %cst_167 = arith.constant dense<0xFF800000> : vector<1xf32>
    %361 = vector.multi_reduction <maximumf>, %360, %cst_167 [0] : vector<20x1xf32> to vector<1xf32>
    %362 = vector.shape_cast %361 : vector<1xf32> to vector<1x1xf32>
    %363 = vector.broadcast %362 : vector<1x1xf32> to vector<20x1xf32>
    %364 = arith.subf %360, %363 : vector<20x1xf32>
    %365 = math.exp %364 : vector<20x1xf32>
    %c7_i32 = arith.constant 7 : i32
    %c0_168 = arith.constant 0 : index
    %366 = arith.index_cast %c7_i32 : i32 to index
    %c0_169 = arith.constant 0 : index
    %c0_170 = arith.constant 0 : index
    %367 = vector.load %arg1[%c0_168, %366, %c0_169, %c0_170] : memref<1x8x20x32xf32, #tpu.memory_space<vmem>>, vector<1x1x20x32xf32>
    %368 = vector.shape_cast %367 : vector<1x1x20x32xf32> to vector<20x32xf32>
    %c0_171 = arith.constant 0 : index
    %369 = arith.index_cast %c7_i32 : i32 to index
    %c0_172 = arith.constant 0 : index
    %c0_173 = arith.constant 0 : index
    %370 = vector.load %arg2[%c0_171, %369, %c0_172, %c0_173] : memref<1x8x20x3xf32, #tpu.memory_space<vmem>>, vector<1x1x20x3xf32>
    %371 = vector.shape_cast %370 : vector<1x1x20x3xf32> to vector<20x3xf32>
    %c0_174 = arith.constant 0 : index
    %372 = arith.index_cast %c7_i32 : i32 to index
    %c0_175 = arith.constant 0 : index
    %c0_176 = arith.constant 0 : index
    %373 = vector.load %arg3[%c0_174, %372, %c0_175, %c0_176] : memref<1x8x1x20xf32, #tpu.memory_space<vmem>>, vector<1x1x1x20xf32>
    %374 = vector.shape_cast %373 : vector<1x1x1x20xf32> to vector<1x20xf32>
    %cst_177 = arith.constant dense<0.000000e+00> : vector<20x1xf32>
    %375 = tpu.matmul %0, %365, %cst_177 {dimension_numbers = #tpu.dot_dimension_numbers<[1], [0], [0], [1], [0, 0, 1, 1], [], []>} : vector<20x20xf32>, vector<20x1xf32>, vector<20x1xf32> -> vector<20x1xf32>
    %cst_178 = arith.constant dense<0.000000e+00> : vector<20x1xf32>
    %376 = tpu.matmul %1, %365, %cst_178 {dimension_numbers = #tpu.dot_dimension_numbers<[1], [0], [0], [1], [0, 0, 1, 1], [], []>} : vector<20x20xf32>, vector<20x1xf32>, vector<20x1xf32> -> vector<20x1xf32>
    %377 = vector.broadcast %374 : vector<1x20xf32> to vector<20x20xf32>
    %378 = vector.broadcast %376 : vector<20x1xf32> to vector<20x20xf32>
    %379 = arith.mulf %377, %378 : vector<20x20xf32>
    %380 = vector.broadcast %375 : vector<20x1xf32> to vector<20x20xf32>
    %381 = arith.cmpf ole, %380, %379 : vector<20x20xf32>
    %382 = arith.extui %381 : vector<20x20xi1> to vector<20x20xi32>
    %383 = arith.sitofp %382 : vector<20x20xi32> to vector<20x20xf32>
    %384 = arith.mulf %1, %383 : vector<20x20xf32>
    %cst_179 = arith.constant dense<0.000000e+00> : vector<20xf32>
    %385 = vector.multi_reduction <add>, %384, %cst_179 [0] : vector<20x20xf32> to vector<20xf32>
    %386 = vector.shape_cast %385 : vector<20xf32> to vector<1x20xf32>
    %cst_180 = arith.constant 9.000000e+00 : f32
    %387 = vector.broadcast %cst_180 : f32 to vector<1x20xf32>
    %388 = arith.minimumf %386, %387 : vector<1x20xf32>
    %389 = vector.broadcast %2 : vector<20x1xf32> to vector<20x20xf32>
    %390 = vector.broadcast %388 : vector<1x20xf32> to vector<20x20xf32>
    %391 = arith.cmpf oeq, %389, %390 : vector<20x20xf32>
    %392 = arith.extui %391 : vector<20x20xi1> to vector<20x20xi32>
    %393 = arith.sitofp %392 : vector<20x20xi32> to vector<20x20xf32>
    %394 = arith.mulf %1, %393 : vector<20x20xf32>
    %cst_181 = arith.constant dense<0.000000e+00> : vector<20x32xf32>
    %395 = tpu.matmul %394, %347, %cst_181 {dimension_numbers = #tpu.dot_dimension_numbers<[0], [0], [1], [1], [0, 1, 1, 1], [], []>} : vector<20x20xf32>, vector<20x32xf32>, vector<20x32xf32> -> vector<20x32xf32>
    %cst_182 = arith.constant dense<0.000000e+00> : vector<20x32xf32>
    %396 = tpu.matmul %395, %3, %cst_182 {dimension_numbers = #tpu.dot_dimension_numbers<[1], [0], [0], [1], [0, 0, 1, 1], [], []>} : vector<20x32xf32>, vector<32x32xf32>, vector<20x32xf32> -> vector<20x32xf32>
    %397 = arith.addf %368, %396 : vector<20x32xf32>
    %398 = math.tanh %397 : vector<20x32xf32>
    %c0_183 = arith.constant 0 : index
    %399 = arith.index_cast %c7_i32 : i32 to index
    %c0_184 = arith.constant 0 : index
    %c0_185 = arith.constant 0 : index
    %400 = vector.load %arg11[%c0_183, %399, %c0_184, %c0_185] : memref<1x8x20x32xf32, #tpu.memory_space<vmem>>, vector<1x1x20x32xf32>
    %401 = vector.shape_cast %400 : vector<1x1x20x32xf32> to vector<20x32xf32>
    %402 = vector.shape_cast %398 : vector<20x32xf32> to vector<1x1x20x32xf32>
    tpu.vector_store %arg11[%c0_183, %399, %c0_184, %c0_185], %402 {strides = array<i32>} : memref<1x8x20x32xf32, #tpu.memory_space<vmem>>, vector<1x1x20x32xf32>,
    %cst_186 = arith.constant dense<0.000000e+00> : vector<20x3xf32>
    %403 = tpu.matmul %398, %4, %cst_186 {dimension_numbers = #tpu.dot_dimension_numbers<[1], [0], [0], [1], [0, 0, 1, 1], [], []>} : vector<20x32xf32>, vector<32x3xf32>, vector<20x3xf32> -> vector<20x3xf32>
    %404 = vector.broadcast %5 : vector<1x3xf32> to vector<20x3xf32>
    %405 = arith.addf %403, %404 : vector<20x3xf32>
    %406 = arith.subf %371, %405 : vector<20x3xf32>
    %407 = arith.mulf %406, %406 : vector<20x3xf32>
    %cst_187 = arith.constant dense<0.000000e+00> : vector<20xf32>
    %408 = vector.multi_reduction <add>, %407, %cst_187 [1] : vector<20x3xf32> to vector<20xf32>
    %409 = vector.shape_cast %408 : vector<20xf32> to vector<20x1xf32>
    %cst_188 = arith.constant -1.000000e+00 : f32
    %410 = vector.broadcast %cst_188 : f32 to vector<20x1xf32>
    %411 = arith.mulf %410, %409 : vector<20x1xf32>
    %cst_189 = arith.constant dense<0xFF800000> : vector<1xf32>
    %412 = vector.multi_reduction <maximumf>, %411, %cst_189 [0] : vector<20x1xf32> to vector<1xf32>
    %413 = vector.shape_cast %412 : vector<1xf32> to vector<1x1xf32>
    %414 = vector.broadcast %413 : vector<1x1xf32> to vector<20x1xf32>
    %415 = arith.subf %411, %414 : vector<20x1xf32>
    %416 = math.exp %415 : vector<20x1xf32>
    %c8_i32 = arith.constant 8 : i32
    %c0_190 = arith.constant 0 : index
    %c0_191 = arith.constant 0 : index
    %c0_192 = arith.constant 0 : index
    %417 = vector.load %arg12[%c0_190, %c0_191, %c0_192] : memref<1x20x32xf32, #tpu.memory_space<vmem>>, vector<1x20x32xf32>
    %418 = vector.shape_cast %417 : vector<1x20x32xf32> to vector<20x32xf32>
    %419 = vector.shape_cast %398 : vector<20x32xf32> to vector<1x20x32xf32>
    tpu.vector_store %arg12[%c0_190, %c0_191, %c0_192], %419 {strides = array<i32>} : memref<1x20x32xf32, #tpu.memory_space<vmem>>, vector<1x20x32xf32>,
    return
  }
  func.func @transform_0(%arg0: i32) -> (i32, i32, i32, i32) {
    %c0_i32 = arith.constant 0 : i32
    %c0_i32_0 = arith.constant 0 : i32
    %c0_i32_1 = arith.constant 0 : i32
    %c0_i32_2 = arith.constant 0 : i32
    return %arg0, %c0_i32, %c0_i32_0, %c0_i32_1 : i32, i32, i32, i32
  }
  func.func @transform_1(%arg0: i32) -> (i32, i32, i32, i32) {
    %c0_i32 = arith.constant 0 : i32
    %c0_i32_0 = arith.constant 0 : i32
    %c0_i32_1 = arith.constant 0 : i32
    %c0_i32_2 = arith.constant 0 : i32
    return %arg0, %c0_i32, %c0_i32_0, %c0_i32_1 : i32, i32, i32, i32
  }
  func.func @transform_2(%arg0: i32) -> (i32, i32, i32, i32) {
    %c0_i32 = arith.constant 0 : i32
    %c0_i32_0 = arith.constant 0 : i32
    %c0_i32_1 = arith.constant 0 : i32
    %c0_i32_2 = arith.constant 0 : i32
    return %arg0, %c0_i32, %c0_i32_0, %c0_i32_1 : i32, i32, i32, i32
  }
  func.func @transform_3(%arg0: i32) -> (i32, i32, i32) {
    %c0_i32 = arith.constant 0 : i32
    %c0_i32_0 = arith.constant 0 : i32
    %c0_i32_1 = arith.constant 0 : i32
    return %arg0, %c0_i32, %c0_i32_0 : i32, i32, i32
  }
  func.func @transform_4(%arg0: i32) -> (i32, i32) {
    %c0_i32 = arith.constant 0 : i32
    %c0_i32_0 = arith.constant 0 : i32
    %c0_i32_1 = arith.constant 0 : i32
    return %c0_i32, %c0_i32_0 : i32, i32
  }
  func.func @transform_5(%arg0: i32) -> (i32, i32) {
    %c0_i32 = arith.constant 0 : i32
    %c0_i32_0 = arith.constant 0 : i32
    %c0_i32_1 = arith.constant 0 : i32
    return %c0_i32, %c0_i32_0 : i32, i32
  }
  func.func @transform_6(%arg0: i32) -> (i32, i32) {
    %c0_i32 = arith.constant 0 : i32
    %c0_i32_0 = arith.constant 0 : i32
    %c0_i32_1 = arith.constant 0 : i32
    return %c0_i32, %c0_i32_0 : i32, i32
  }
  func.func @transform_7(%arg0: i32) -> (i32, i32) {
    %c0_i32 = arith.constant 0 : i32
    %c0_i32_0 = arith.constant 0 : i32
    %c0_i32_1 = arith.constant 0 : i32
    return %c0_i32, %c0_i32_0 : i32, i32
  }
  func.func @transform_8(%arg0: i32) -> (i32, i32) {
    %c0_i32 = arith.constant 0 : i32
    %c0_i32_0 = arith.constant 0 : i32
    %c0_i32_1 = arith.constant 0 : i32
    return %c0_i32, %c0_i32_0 : i32, i32
  }
  func.func @transform_9(%arg0: i32) -> (i32, i32) {
    %c0_i32 = arith.constant 0 : i32
    %c0_i32_0 = arith.constant 0 : i32
    %c0_i32_1 = arith.constant 0 : i32
    return %c0_i32, %c0_i32_0 : i32, i32
  }
  func.func @transform_10(%arg0: i32) -> (i32, i32, i32, i32) {
    %c0_i32 = arith.constant 0 : i32
    %c0_i32_0 = arith.constant 0 : i32
    %c0_i32_1 = arith.constant 0 : i32
    %c0_i32_2 = arith.constant 0 : i32
    return %arg0, %c0_i32, %c0_i32_0, %c0_i32_1 : i32, i32, i32, i32
  }
  func.func @transform_11(%arg0: i32) -> (i32, i32, i32) {
    %c0_i32 = arith.constant 0 : i32
    %c0_i32_0 = arith.constant 0 : i32
    %c0_i32_1 = arith.constant 0 : i32
    return %arg0, %c0_i32, %c0_i32_0 : i32, i32, i32
  }
}

</mosaic_0001>

<bundles_post_ra>
// kernel: tpu_custom_call.1
= control target key start
LH: loop header
LB: loop body
LE: loop exit
PB: predicated region body
PF: predicated region fallthrough
CT: control target
= control target key end

     0   :  { %vm75_vm0 = vcmask 1043456   ;;  %v2993_v2 = vmov 0   ;;  %vm65_vm1 = vcmask 162816   ;;  %v2994_v19 = vmov 0.0   ;;  %s3960_s3 = inlined_call_operand.vmem [shape: f32[1,20,1], index: 3, kind: input, shape index: {}]   ;;  %s3961_s5 = inlined_call_operand.vmem [shape: f32[20,20], index: 5, kind: input, shape index: {}]   ;;  %s3962_s4 = inlined_call_operand.vmem [shape: f32[20,20], index: 4, kind: input, shape index: {}]   ;;  %s3963_s2 = inlined_call_operand.vmem [shape: f32[1,8,1,20], index: 2, kind: input, shape index: {}]   ;;  %s3964_s6 = inlined_call_operand.vmem [shape: f32[20,1], index: 6, kind: input, shape index: {}]   ;;  %s3965_s7 = inlined_call_operand.vmem [shape: f32[32,32], index: 7, kind: input, shape index: {}]   ;;  %s3966_s9 = inlined_call_operand.vmem [shape: f32[1,3], index: 9, kind: input, shape index: {}]   ;;  %s3967_s8 = inlined_call_operand.vmem [shape: f32[32,3], index: 8, kind: input, shape index: {}]   ;;  %s3968_s0 = inlined_call_operand.vmem [shape: f32[1,8,20,32], index: 0, kind: input, shape index: {}]   ;;  %s3969_s10 = inlined_call_operand.vmem [shape: f32[1,8,20,32], index: 10, kind: output, shape index: {0}]   ;;  %s3970_s1 = inlined_call_operand.vmem [shape: f32[1,8,20,3], index: 1, kind: input, shape index: {}]   ;;  %s3971_s11 = inlined_call_operand.vmem [shape: f32[1,20,32], index: 11, kind: output, shape index: {1}]  }
   0x1   :  { %v57_v0 = vld [vmem:[%s3960_s3 + $0x10] sm:$0xf]  ;;  %v56_v1 = vld [vmem:[%s3960_s3 + $0x8] sm:$0xff]  ;;  %2870 = vset.pattern.permute.xlu0 %v2993_v2  ;;  %2871 = vset.pattern.permute.xlu1 %v2993_v2  ;;  %v55_v3 = vld [vmem:[%s3960_s3] sm:$0xff]  ;;  %vm191_vm5 = vcmask 158720   ;;  %vm298_vm9 = vcmask 261120  }
   0x2   :  { %2614 = vmatpush.msk.msra.mxu1 %vm75_vm0, %v57_v0  ;;  %2865 = vmatpush.msk.msra.mxu3 %vm75_vm0, %v57_v0  ;;  %v3070_v4 = vld [vmem:[%s3961_s5] sm:$0xff]  ;;  %v3075_v5 = vld [vmem:[%s3962_s4 + $0x8] sm:$0xff]  ;;  %v3096_v8 = vld [vmem:[%s3962_s4 + $0x10] sm:$0xf]  ;;  %vm342_vm10 = vcmask 257024   ;;  %vm388_vm11 = vcmask 23552  }
   0x3   :  { %2610 = vmatpush.msk.msra.mxu0 %vm75_vm0, %v57_v0  ;;  %2872 = vset.pattern.permute.xlu2 %v2993_v2  ;;  %v3080_v6 = vld [vmem:[%s3962_s4] sm:$0xff]  ;;  %v3091_v7 = vld [vmem:[%s3961_s5 + $0x8] sm:$0xff]  ;;  %v3105_v9 = vld [vmem:[%s3961_s5 + $0x10] sm:$0xf]  ;;  %vm395_vm12 = vcmask 19456  }
   0x4   :  { %128 = vmatpush.msra.mxu1 %v56_v1  ;;  %2866 = vmatpush.msra.mxu3 %v56_v1  ;;  %v43_v13 = vld [vmem:[%s3964_s6] sm:$0xff]  ;;  %v45_v16 = vld [vmem:[%s3964_s6 + $0x10] sm:$0xf]  ;;  %v44_v18 = vld [vmem:[%s3964_s6 + $0x8] sm:$0xff] }
   0x5   :  { %93 = vmatpush.msra.mxu0 %v56_v1  ;;  %287 = vmatpush.msra.mxu2 %v2994_v19  ;;  %v2873_v23 = vld [vmem:[%s3963_s2] ss:$0 sm:$0xff]  ;;  %v3149_v57 = vld [vmem:[%s3965_s7 + $0x18] sm:$0xff]  ;;  %v3154_v58 = vld [vmem:[%s3965_s7 + $0x10] sm:$0xff] }
   0x6   :  { %129 = vmatpush.msra.mxu1 %v55_v3  ;;  %2867 = vmatpush.msra.mxu3 %v55_v3  ;;  %v3160_v59 = vld [vmem:[%s3965_s7 + $0x8] sm:$0xff]  ;;  %v3170_v63 = vld [vmem:[%s3965_s7] sm:$0xff] }
   0x7   :  { %2615 = vmatmul.msk.f32.vlgmr.msra.gmra.mxu1 %vm65_vm1, %v3070_v4  ;;  %2612 = vmatmul.msk.f32.vlgmr.msra.gmra.mxu3 %vm65_vm1, %v3075_v5 }
   0x8   :  { %94 = vmatpush.msra.mxu0 %v55_v3  ;;  %320 = vmatpush.msrb.mxu3 %v3149_v57  ;;  %v3179_v3 = vld [vmem:[%s3967_s8 + $0x18] sm:$0xff] }
   0x9   :  { %2611 = vmatmul.msk.f32.vlgmr.msra.gmra.mxu0 %vm65_vm1, %v3080_v6  ;;  %368 = vmatpush.msrb.mxu2 %v3179_v3 }
   0xa   :  { %321 = vmatpush.msrb.mxu3 %v3154_v58 }
   0xc   :  { %322 = vmatpush.msrb.mxu3 %v3160_v59 }
   0xe   :  { %323 = vmatpush.msrb.mxu3 %v3170_v63 }
   0xf   :  { %2616 = vmatmul.msk.f32.gmra.mxu1 %vm65_vm1, %v3091_v7  ;;  %2613 = vmatmul.msk.f32.gmra.mxu3 %vm65_vm1, %v3096_v8 }
  0x17   :  { %2617 = vmatmul.msk.f32.gmra.mxu1 %vm65_vm1, %v3105_v9 }
  0x84   :  { %v131_v10 = vpop.f32.mrf.mxu1 }
  0x85   :  { %145 = vperm.xlu0 %2870, %v131_v10   ;;  %v3185_v10 = vld [vmem:[%s3967_s8 + $0x10] sm:$0xff] }
  0x86   :  { %v96_v17 = vpop.f32.mrf.mxu0  ;;  %369 = vmatpush.msrb.mxu2 %v3185_v10 }
  0x8a   :  { %v99_v11 = vpop.f32.mrf.mxu3 }
  0x8b   :  { %168 = vperm.xlu2 %2872, %v99_v11   ;;  %v3191_v11 = vld [vmem:[%s3967_s8 + $0x8] sm:$0xff] }
  0x8c   :  { %v134_v12 = vpop.f32.mrf.mxu1  ;;  %370 = vmatpush.msrb.mxu2 %v3191_v11 }
  0x8d   :  { %150 = vperm.xlu0 %2870, %v134_v12   ;;  %v3197_v12 = vld [vmem:[%s3967_s8] sm:$0xff] }
  0x8e   :  { %371 = vmatpush.msrb.mxu2 %v3197_v12 }
  0x92   :  { %v102_v14 = vpop.f32.mrf.mxu3 }
  0x93   :  { %173 = vperm.xlu2 %2872, %v102_v14  }
  0x94   :  { %v137_v15 = vpop.f32.mrf.mxu1 }
  0x95   :  { %203 = vperm.xlu0 %2870, %v43_v13   ;;  %155 = vperm.xlu1 %2871, %v137_v15   ;;  %v58_v13 = vld [vmem:[%s3968_s0] sm:$0xff] }
  0x9b   :  { %213 = vperm.xlu2 %2872, %v45_v16   ;;  %v59_v16 = vld [vmem:[%s3968_s0 + $0x8] sm:$0xff] }
  0x9d   :  { %163 = vperm.xlu1 %2871, %v96_v17  }
  0xa5   :  { %208 = vperm.xlu1 %2871, %v44_v18  }
  0xe5   :  { %v169_v21 = vpop.permute.xlu2 %168 }
  0xed   :  { %v174_v27 = vpop.permute.xlu2 %173 }
  0xf5   :  { %v3141_v54 = vpop.permute.xlu2 %213 }
  0xf7   :  { %v146_v20 = vpop.permute.xlu0 %145 }
  0xf8   :  { %v158_v29 = vmul.f32 %v2873_v23, %v146_v20 }
  0xff   :  { %v151_v22 = vpop.permute.xlu0 %150 }
 0x100   :  { %v159_v24 = vmul.f32 %v2873_v23, %v151_v22 }
 0x102   :  { %vm177_vm2 = vcmp.le.f32.partialorder %v169_v21, %v159_v24  ;;  %v60_v21 = vld [vmem:[%s3968_s0 + $0x10] sm:$0xf] }
 0x103   :  { %v2619_v28 = vsel %vm177_vm2, 1.0, %v2994_v19 }
 0x104   :  { %v186_v32 = vmul.f32 %v2619_v28, %v3091_v7  ;;  %v61_v28 = vld [vmem:[%s3970_s1] sm:$0xff] }
 0x106   :  { %v189_v37 = vsel %vm65_vm1, %v186_v32, 0.0 }
 0x107   :  { %v156_v25 = vpop.permute.xlu1 %155  ;;  %v3131_v48 = vpop.permute.xlu0 %203 }
 0x108   :  { %v160_v26 = vmul.f32 %v2873_v23, %v156_v25 }
 0x10a   :  { %vm178_vm3 = vcmp.le.f32.partialorder %v174_v27, %v160_v26  ;;  %v3232_v26 = vld [vmem:[%s3966_s9] ss:$0 sm:$0xff] }
 0x10b   :  { %v2620_v30 = vsel %vm178_vm3, 1.0, %v2994_v19 }
 0x10c   :  { %v187_v34 = vmul.f32 %v2620_v30, %v3105_v9 }
 0x10e   :  { %v192_v39 = vsel %vm191_vm5, %v187_v34, 0.0  ;;  %v62_v34 = vld [vmem:[%s3970_s1 + $0x8] sm:$0xff] }
 0x10f   :  { %v164_v31 = vpop.permute.xlu1 %163 }
 0x110   :  { %vm176_vm4 = vcmp.le.f32.partialorder %v164_v31, %v158_v29 }
 0x111   :  { %v2618_v33 = vsel %vm176_vm4, 1.0, %v2994_v19 }
 0x112   :  { %v185_v35 = vmul.f32 %v2618_v33, %v3070_v4 }
 0x114   :  { %v188_v36 = vsel %vm65_vm1, %v185_v35, 0.0 }
 0x115   :  { %v190_v38 = vadd.f32 %v189_v37, %v188_v36 }
 0x117   :  { %v193_v40 = vadd.f32 %v192_v39, %v190_v38  ;;  %v3136_v51 = vpop.permute.xlu1 %208 }
 0x119   :  { %v194_v41 = vrot.slane %v193_v40, 4 }
 0x11b   :  { %v195_v42 = vadd.f32 %v194_v41, %v193_v40  ;;  %v63_v40 = vld [vmem:[%s3970_s1 + $0x10] sm:$0xf] }
 0x11d   :  { %v196_v43 = vrot.slane %v195_v42, 2 }
 0x11f   :  { %v197_v44 = vadd.f32 %v196_v43, %v195_v42 }
 0x121   :  { %v198_v45 = vrot.slane %v197_v44, 1 }
 0x123   :  { %v199_v46 = vadd.f32 %v198_v45, %v197_v44 }
 0x125   :  { %v200_v47 = vmin.f32 %v199_v46, 9.0 }
 0x127   :  { %vm216_vm6 = vcmp.eq.f32.partialorder %v3131_v48, %v200_v47  ;;  %vm217_vm7 = vcmp.eq.f32.partialorder %v3136_v51, %v200_v47  ;;  %vm218_vm8 = vcmp.eq.f32.partialorder %v3141_v54, %v200_v47 }
 0x128   :  { %v2621_v49 = vsel %vm216_vm6, 1.0, %v2994_v19  ;;  %v2622_v52 = vsel %vm217_vm7, 1.0, %v2994_v19  ;;  %v2623_v55 = vsel %vm218_vm8, 1.0, %v2994_v19 }
 0x129   :  { %v225_v50 = vmul.f32 %v2621_v49, %v3070_v4  ;;  %v226_v53 = vmul.f32 %v2622_v52, %v3091_v7  ;;  %v227_v56 = vmul.f32 %v2623_v55, %v3105_v9 }
 0x12b   :  { %228 = vxpose.xlu0.b32.start [1/3] (short) (narrow) %v225_v50, 24 }
 0x133   :  { %229 = vxpose.xlu0.b32.cont [2/3] (short) (narrow) %v226_v53, 24 }
 0x13b   :  { %230 = vxpose.xlu0.b32.end [3/3] (short) (narrow) %v227_v56, 24 }
 0x1cf   :  { %v244_v60 = vpop.trf.xlu0 }
 0x1d0   :  { %2624 = vmatmul.msk.f32.vlgmr.msra.gmra.mxu2 %vm65_vm1, %v244_v60 }
 0x1d1   :  { %647 = vmatpush.msra.mxu2 %v3149_v57 }
 0x1d3   :  { %648 = vmatpush.msra.mxu2 %v3154_v58 }
 0x1d5   :  { %649 = vmatpush.msra.mxu2 %v3160_v59 }
 0x1d7   :  { %v245_v61 = vpop.trf.xlu0  ;;  %650 = vmatpush.msra.mxu2 %v3170_v63 }
 0x1d8   :  { %2625 = vmatmul.msk.f32.gmra.mxu2 %vm65_vm1, %v245_v61 }
 0x1df   :  { %v246_v62 = vpop.trf.xlu0 }
 0x1e0   :  { %2626 = vmatmul.msk.f32.gmra.mxu2 %vm65_vm1, %v246_v62 }
 0x253   :  { %v289_v0 = vpop.f32.mrf.mxu2 }
 0x254   :  { %2627 = vmatmul.msk.f32.vlgmr.msrb.gmra.mxu3 %vm298_vm9, %v289_v0 }
 0x25b   :  { %v292_v1 = vpop.f32.mrf.mxu2 }
 0x25c   :  { %2628 = vmatmul.msk.f32.gmra.mxu3 %vm298_vm9, %v292_v1 }
 0x263   :  { %v295_v2 = vpop.f32.mrf.mxu2 }
 0x264   :  { %2629 = vmatmul.msk.f32.gmra.mxu3 %vm298_vm9, %v295_v2 }
 0x2d7   :  { %v325_v14 = vpop.f32.mrf.mxu3 }
 0x2d8   :  { %v334_v15 = vadd.f32 %v325_v14, %v58_v13 }
 0x2da   :  { %2882 = vtanh.f32 %v334_v15 }
 0x2df   :  { %v328_v17 = vpop.f32.mrf.mxu3 }
 0x2e0   :  { %v2883_v18 = vpop.eup %2882  ;;  %v335_v20 = vadd.f32 %v328_v17, %v59_v16 }
 0x2e1   :  { %340 = vst.msk [vmem:[%s3969_s10] sm:$0xff] %vm298_vm9, %v2883_v18  ;;  %2630 = vmatmul.msk.f32.vlgmr.msrb.gmra.mxu2 %vm298_vm9, %v2883_v18 }
 0x2e2   :  { %2884 = vtanh.f32 %v335_v20 }
 0x2e7   :  { %v331_v22 = vpop.f32.mrf.mxu3 }
 0x2e8   :  { %v2885_v23 = vpop.eup %2884  ;;  %v336_v24 = vadd.f32 %v331_v22, %v60_v21 }
 0x2e9   :  { %341 = vst.msk [vmem:[%s3969_s10 + $0x8] sm:$0xff] %vm298_vm9, %v2885_v23  ;;  %2631 = vmatmul.msk.f32.gmra.mxu2 %vm298_vm9, %v2885_v23 }
 0x2ea   :  { %2886 = vtanh.f32 %v336_v24 }
 0x2f0   :  { %v2887_v25 = vpop.eup %2886 }
 0x2f1   :  { %343 = vst.msk [vmem:[%s3969_s10 + $0x10] sm:$0xf] %vm342_vm10, %v2887_v25  ;;  %2632 = vmatmul.msk.f32.gmra.mxu2 %vm298_vm9, %v2887_v25  ;;  %2654 = vmatpush.msk.msra.mxu3 %vm75_vm0, %v2887_v25 }
 0x2f3   :  { %614 = vmatpush.msra.mxu3 %v2885_v23 }
 0x2f5   :  { %615 = vmatpush.msra.mxu3 %v2883_v18 }
 0x364   :  { %v373_v27 = vpop.f32.mrf.mxu2 }
 0x365   :  { %v374_v29 = vadd.f32 %v3232_v26, %v373_v27 }
 0x367   :  { %v382_v30 = vsub.f32 %v61_v28, %v374_v29 }
 0x369   :  { %v385_v31 = vmul.f32 %v382_v30, %v382_v30 }
 0x36b   :  { %v389_v32 = vsel %vm388_vm11, %v385_v31, 0.0 }
 0x36c   :  { %v376_v33 = vpop.f32.mrf.mxu2  ;;  %390 = vadd.xlane.f32.xlu1 %v389_v32  ;;  %v2875_v32 = vld [vmem:[%s3963_s2 + $0x1] ss:$0 sm:$0xff] }
 0x36d   :  { %v377_v35 = vadd.f32 %v3232_v26, %v376_v33 }
 0x36f   :  { %v383_v36 = vsub.f32 %v62_v34, %v377_v35 }
 0x371   :  { %v386_v37 = vmul.f32 %v383_v36, %v383_v36 }
 0x373   :  { %v392_v38 = vsel %vm388_vm11, %v386_v37, 0.0 }
 0x374   :  { %v379_v39 = vpop.f32.mrf.mxu2  ;;  %393 = vadd.xlane.f32.xlu2 %v392_v38 }
 0x375   :  { %v380_v41 = vadd.f32 %v3232_v26, %v379_v39 }
 0x377   :  { %v384_v42 = vsub.f32 %v63_v40, %v380_v41 }
 0x379   :  { %v387_v43 = vmul.f32 %v384_v42, %v384_v42 }
 0x37b   :  { %v396_v44 = vsel %vm395_vm12, %v387_v43, 0.0 }
 0x37c   :  { %397 = vadd.xlane.f32.xlu2 %v396_v44 }
 0x3df   :  { %v391_v46 = vpop.xlane.xlu1 %390 }
 0x3e0   :  { %v399_v49 = vmul.f32 -1.0, %v391_v46 }
 0x3e7   :  { %v394_v45 = vpop.xlane.xlu2 %393 }
 0x3e8   :  { %v400_v47 = vmul.f32 -1.0, %v394_v45 }
 0x3ea   :  { %v403_v53 = vmax.f32 %v399_v49, %v400_v47 }
 0x3ef   :  { %v398_v50 = vpop.xlane.xlu2 %397 }
 0x3f0   :  { %v401_v52 = vmul.f32 -1.0, %v398_v50 }
 0x3f2   :  { %v402_v55 = vsel %vm75_vm0, %v401_v52, -inf }
 0x3f3   :  { %v404_v56 = vmax.f32 %v403_v53, %v402_v55 }
 0x3f5   :  { %v405_v60 = vrot.slane %v404_v56, 4 }
 0x3f7   :  { %v406_v61 = vmax.f32 %v404_v56, %v405_v60 }
 0x3f9   :  { %v407_v62 = vrot.slane %v406_v61, 2 }
 0x3fb   :  { %v408_v0 = vmax.f32 %v406_v61, %v407_v62 }
 0x3fd   :  { %v409_v1 = vrot.slane %v408_v0, 1 }
 0x3ff   :  { %v410_v2 = vmax.f32 %v408_v0, %v409_v1 }
 0x401   :  { %v413_v13 = vsub.f32 %v401_v52, %v410_v2  ;;  %v412_v14 = vsub.f32 %v400_v47, %v410_v2  ;;  %v411_v15 = vsub.f32 %v399_v49, %v410_v2 }
 0x403   :  { %v418_v16 = vmul.f32 1.442695, %v413_v13  ;;  %v416_v17 = vmul.f32 1.442695, %v412_v14  ;;  %v414_v18 = vmul.f32 1.442695, %v411_v15 }
 0x405   :  { %2888 = vpow2.f32 %v418_v16 }
 0x406   :  { %2890 = vpow2.f32 %v416_v17 }
 0x407   :  { %2892 = vpow2.f32 %v414_v18 }
 0x40b   :  { %v2889_v20 = vpop.eup %2888 }
 0x40c   :  { %2640 = vmatpush.msk.msrb.mxu0 %vm75_vm0, %v2889_v20  ;;  %2644 = vmatpush.msk.msrb.mxu1 %vm75_vm0, %v2889_v20  ;;  %v2891_v21 = vpop.eup %2890 }
 0x40d   :  { %v2893_v22 = vpop.eup %2892 }
 0x40e   :  { %447 = vmatpush.msrb.mxu0 %v2891_v21  ;;  %473 = vmatpush.msrb.mxu1 %v2891_v21 }
 0x410   :  { %448 = vmatpush.msrb.mxu0 %v2893_v22  ;;  %474 = vmatpush.msrb.mxu1 %v2893_v22 }
 0x411   :  { %2641 = vmatmul.msk.f32.vlgmr.msrb.gmra.mxu0 %vm65_vm1, %v3080_v6  ;;  %2645 = vmatmul.msk.f32.vlgmr.msrb.gmra.mxu1 %vm65_vm1, %v3070_v4 }
 0x412   :  { %692 = vmatpush.msra.mxu0 %v3179_v3 }
 0x414   :  { %693 = vmatpush.msra.mxu0 %v3185_v10 }
 0x416   :  { %694 = vmatpush.msra.mxu0 %v3191_v11 }
 0x418   :  { %695 = vmatpush.msra.mxu0 %v3197_v12 }
 0x419   :  { %2642 = vmatmul.msk.f32.gmra.mxu0 %vm65_vm1, %v3075_v5  ;;  %2646 = vmatmul.msk.f32.gmra.mxu1 %vm65_vm1, %v3091_v7 }
 0x41a   :  { %969 = vmatpush.msrb.mxu0 %v3149_v57 }
 0x41c   :  { %970 = vmatpush.msrb.mxu0 %v3154_v58 }
 0x41e   :  { %971 = vmatpush.msrb.mxu0 %v3160_v59 }
 0x420   :  { %972 = vmatpush.msrb.mxu0 %v3170_v63 }
 0x421   :  { %2643 = vmatmul.msk.f32.gmra.mxu0 %vm65_vm1, %v3096_v8  ;;  %2647 = vmatmul.msk.f32.gmra.mxu1 %vm65_vm1, %v3105_v9 }
 0x48e   :  { %v450_v23 = vpop.f32.mrf.mxu0  ;;  %v476_v24 = vpop.f32.mrf.mxu1 }
 0x48f   :  { %490 = vperm.xlu1 %2871, %v476_v24   ;;  %v2633_v24 = vld [vmem:[%s3968_s0 + $0x18] sm:$0xff] }
 0x496   :  { %v453_v25 = vpop.f32.mrf.mxu0  ;;  %v479_v27 = vpop.f32.mrf.mxu1 }
 0x497   :  { %495 = vperm.xlu2 %2872, %v479_v27   ;;  %508 = vperm.xlu1 %2871, %v450_v23  }
 0x49e   :  { %v456_v28 = vpop.f32.mrf.mxu0  ;;  %v482_v29 = vpop.f32.mrf.mxu1 }
 0x49f   :  { %500 = vperm.xlu0 %2870, %v482_v29   ;;  %513 = vperm.xlu2 %2872, %v453_v25  }
 0x4a0   :  { %518 = vperm.xlu1 %2871, %v456_v28   ;;  %v2634_v28 = vld [vmem:[%s3968_s0 + $0x20] sm:$0xff] }
 0x4f1   :  { %v496_v30 = vpop.permute.xlu2 %495 }
 0x4f2   :  { %v504_v36 = vmul.f32 %v2875_v32, %v496_v30 }
 0x4f9   :  { %v514_v34 = vpop.permute.xlu2 %513 }
 0x4fa   :  { %vm522_vm14 = vcmp.le.f32.partialorder %v514_v34, %v504_v36 }
 0x4fb   :  { %v2649_v38 = vsel %vm522_vm14, 1.0, %v2994_v19 }
 0x4fc   :  { %v531_v41 = vmul.f32 %v2649_v38, %v3091_v7 }
 0x4fe   :  { %v534_v46 = vsel %vm65_vm1, %v531_v41, 0.0 }
 0x501   :  { %v491_v31 = vpop.permute.xlu1 %490 }
 0x502   :  { %v503_v33 = vmul.f32 %v2875_v32, %v491_v31 }
 0x509   :  { %v509_v35 = vpop.permute.xlu1 %508 }
 0x50a   :  { %vm521_vm13 = vcmp.le.f32.partialorder %v509_v35, %v503_v33 }
 0x50b   :  { %v2648_v37 = vsel %vm521_vm13, 1.0, %v2994_v19 }
 0x50c   :  { %v530_v39 = vmul.f32 %v2648_v37, %v3070_v4  ;;  %v2636_v37 = vld [vmem:[%s3970_s1 + $0x18] sm:$0xff] }
 0x50e   :  { %v533_v44 = vsel %vm65_vm1, %v530_v39, 0.0 }
 0x50f   :  { %v535_v49 = vadd.f32 %v534_v46, %v533_v44 }
 0x511   :  { %v501_v40 = vpop.permute.xlu0 %500 }
 0x512   :  { %v505_v42 = vmul.f32 %v2875_v32, %v501_v40  ;;  %v519_v43 = vpop.permute.xlu1 %518  ;;  %v2635_v32 = vld [vmem:[%s3968_s0 + $0x28] sm:$0xf] }
 0x514   :  { %vm523_vm15 = vcmp.le.f32.partialorder %v519_v43, %v505_v42  ;;  %v2637_v43 = vld [vmem:[%s3970_s1 + $0x20] sm:$0xff] }
 0x515   :  { %v2650_v45 = vsel %vm523_vm15, 1.0, %v2994_v19 }
 0x516   :  { %v532_v47 = vmul.f32 %v2650_v45, %v3105_v9 }
 0x518   :  { %v536_v50 = vsel %vm191_vm5, %v532_v47, 0.0 }
 0x519   :  { %v537_v52 = vadd.f32 %v536_v50, %v535_v49  ;;  %v2638_v50 = vld [vmem:[%s3970_s1 + $0x28] sm:$0xf] }
 0x51b   :  { %v538_v53 = vrot.slane %v537_v52, 4 }
 0x51d   :  { %v539_v55 = vadd.f32 %v538_v53, %v537_v52 }
 0x51f   :  { %v540_v56 = vrot.slane %v539_v55, 2 }
 0x521   :  { %v541_v60 = vadd.f32 %v540_v56, %v539_v55 }
 0x523   :  { %v542_v61 = vrot.slane %v541_v60, 1 }
 0x525   :  { %v543_v62 = vadd.f32 %v542_v61, %v541_v60 }
 0x527   :  { %v544_v0 = vmin.f32 %v543_v62, 9.0 }
 0x529   :  { %vm545_vm2 = vcmp.eq.f32.partialorder %v3131_v48, %v544_v0  ;;  %vm546_vm3 = vcmp.eq.f32.partialorder %v3136_v51, %v544_v0  ;;  %vm547_vm4 = vcmp.eq.f32.partialorder %v3141_v54, %v544_v0 }
 0x52a   :  { %v2651_v1 = vsel %vm545_vm2, 1.0, %v2994_v19  ;;  %v2652_v13 = vsel %vm546_vm3, 1.0, %v2994_v19  ;;  %v2653_v15 = vsel %vm547_vm4, 1.0, %v2994_v19 }
 0x52b   :  { %v554_v2 = vmul.f32 %v2651_v1, %v3070_v4  ;;  %v555_v14 = vmul.f32 %v2652_v13, %v3091_v7  ;;  %v556_v16 = vmul.f32 %v2653_v15, %v3105_v9 }
 0x52d   :  { %557 = vxpose.xlu2.b32.start [1/3] (short) (narrow) %v554_v2, 24 }
 0x535   :  { %558 = vxpose.xlu2.b32.cont [2/3] (short) (narrow) %v555_v14, 24 }
 0x53d   :  { %559 = vxpose.xlu2.b32.end [3/3] (short) (narrow) %v556_v16, 24 }
 0x5c6   :  { %v573_v17 = vpop.trf.xlu2 }
 0x5c7   :  { %2655 = vmatmul.msk.f32.vlgmr.msra.gmra.mxu3 %vm65_vm1, %v573_v17 }
 0x5ce   :  { %v574_v18 = vpop.trf.xlu2 }
 0x5cf   :  { %2656 = vmatmul.msk.f32.gmra.mxu3 %vm65_vm1, %v574_v18 }
 0x5d6   :  { %v575_v20 = vpop.trf.xlu2 }
 0x5d7   :  { %2657 = vmatmul.msk.f32.gmra.mxu3 %vm65_vm1, %v575_v20 }
 0x64a   :  { %v617_v21 = vpop.f32.mrf.mxu3 }
 0x64b   :  { %2658 = vmatmul.msk.f32.vlgmr.msra.gmra.mxu2 %vm298_vm9, %v617_v21 }
 0x652   :  { %v620_v22 = vpop.f32.mrf.mxu3 }
 0x653   :  { %2659 = vmatmul.msk.f32.gmra.mxu2 %vm298_vm9, %v620_v22 }
 0x65a   :  { %v623_v23 = vpop.f32.mrf.mxu3 }
 0x65b   :  { %2660 = vmatmul.msk.f32.gmra.mxu2 %vm298_vm9, %v623_v23 }
 0x6ce   :  { %v652_v25 = vpop.f32.mrf.mxu2 }
 0x6cf   :  { %v661_v27 = vadd.f32 %v2633_v24, %v652_v25 }
 0x6d1   :  { %2894 = vtanh.f32 %v661_v27 }
 0x6d6   :  { %v655_v29 = vpop.f32.mrf.mxu2 }
 0x6d7   :  { %v2895_v30 = vpop.eup %2894  ;;  %v662_v31 = vadd.f32 %v2634_v28, %v655_v29 }
 0x6d8   :  { %2661 = vst.msk [vmem:[%s3969_s10 + $0x18] sm:$0xff] %vm298_vm9, %v2895_v30  ;;  %2664 = vmatmul.msk.f32.vlgmr.msra.gmra.mxu0 %vm298_vm9, %v2895_v30 }
 0x6d9   :  { %2896 = vtanh.f32 %v662_v31 }
 0x6de   :  { %v658_v33 = vpop.f32.mrf.mxu2 }
 0x6df   :  { %v2897_v34 = vpop.eup %2896  ;;  %v663_v35 = vadd.f32 %v2635_v32, %v658_v33 }
 0x6e0   :  { %2662 = vst.msk [vmem:[%s3969_s10 + $0x20] sm:$0xff] %vm298_vm9, %v2897_v34  ;;  %2665 = vmatmul.msk.f32.gmra.mxu0 %vm298_vm9, %v2897_v34 }
 0x6e1   :  { %2898 = vtanh.f32 %v663_v35 }
 0x6e7   :  { %v2899_v36 = vpop.eup %2898 }
 0x6e8   :  { %2663 = vst.msk [vmem:[%s3969_s10 + $0x28] sm:$0xf] %vm342_vm10, %v2899_v36  ;;  %2666 = vmatmul.msk.f32.gmra.mxu0 %vm298_vm9, %v2899_v36  ;;  %2688 = vmatpush.msk.msrb.mxu2 %vm75_vm0, %v2899_v36 }
 0x6ea   :  { %936 = vmatpush.msrb.mxu2 %v2897_v34 }
 0x6ec   :  { %937 = vmatpush.msrb.mxu2 %v2895_v30 }
 0x755   :  { %v697_v38 = vpop.f32.mrf.mxu0 }
 0x756   :  { %v698_v39 = vadd.f32 %v3232_v26, %v697_v38 }
 0x758   :  { %v706_v40 = vsub.f32 %v2636_v37, %v698_v39 }
 0x75a   :  { %v709_v41 = vmul.f32 %v706_v40, %v706_v40  ;;  %v2876_v40 = vld [vmem:[%s3963_s2 + $0x2] ss:$0 sm:$0xff] }
 0x75c   :  { %v712_v42 = vsel %vm388_vm11, %v709_v41, 0.0 }
 0x75d   :  { %713 = vadd.xlane.f32.xlu1 %v712_v42  ;;  %v700_v44 = vpop.f32.mrf.mxu0 }
 0x75e   :  { %v701_v45 = vadd.f32 %v3232_v26, %v700_v44 }
 0x760   :  { %v707_v46 = vsub.f32 %v2637_v43, %v701_v45 }
 0x762   :  { %v710_v47 = vmul.f32 %v707_v46, %v707_v46 }
 0x764   :  { %v715_v49 = vsel %vm388_vm11, %v710_v47, 0.0 }
 0x765   :  { %716 = vadd.xlane.f32.xlu1 %v715_v49  ;;  %v703_v52 = vpop.f32.mrf.mxu0 }
 0x766   :  { %v704_v53 = vadd.f32 %v3232_v26, %v703_v52 }
 0x768   :  { %v708_v55 = vsub.f32 %v2638_v50, %v704_v53 }
 0x76a   :  { %v711_v56 = vmul.f32 %v708_v55, %v708_v55 }
 0x76c   :  { %v718_v60 = vsel %vm395_vm12, %v711_v56, 0.0 }
 0x76d   :  { %719 = vadd.xlane.f32.xlu1 %v718_v60 }
 0x7d0   :  { %v714_v61 = vpop.xlane.xlu1 %713 }
 0x7d1   :  { %v721_v1 = vmul.f32 -1.0, %v714_v61 }
 0x7d8   :  { %v717_v62 = vpop.xlane.xlu1 %716 }
 0x7d9   :  { %v722_v0 = vmul.f32 -1.0, %v717_v62 }
 0x7db   :  { %v725_v14 = vmax.f32 %v721_v1, %v722_v0 }
 0x7e0   :  { %v720_v2 = vpop.xlane.xlu1 %719 }
 0x7e1   :  { %v723_v13 = vmul.f32 -1.0, %v720_v2 }
 0x7e3   :  { %v724_v15 = vsel %vm75_vm0, %v723_v13, -inf }
 0x7e4   :  { %v726_v16 = vmax.f32 %v725_v14, %v724_v15 }
 0x7e6   :  { %v727_v17 = vrot.slane %v726_v16, 4 }
 0x7e8   :  { %v728_v18 = vmax.f32 %v726_v16, %v727_v17 }
 0x7ea   :  { %v729_v20 = vrot.slane %v728_v18, 2 }
 0x7ec   :  { %v730_v21 = vmax.f32 %v728_v18, %v729_v20 }
 0x7ee   :  { %v731_v22 = vrot.slane %v730_v21, 1 }
 0x7f0   :  { %v732_v23 = vmax.f32 %v730_v21, %v731_v22 }
 0x7f2   :  { %v734_v24 = vsub.f32 %v722_v0, %v732_v23  ;;  %v735_v25 = vsub.f32 %v723_v13, %v732_v23  ;;  %v733_v27 = vsub.f32 %v721_v1, %v732_v23 }
 0x7f4   :  { %v740_v28 = vmul.f32 1.442695, %v735_v25  ;;  %v738_v29 = vmul.f32 1.442695, %v734_v24  ;;  %v736_v30 = vmul.f32 1.442695, %v733_v27 }
 0x7f6   :  { %2900 = vpow2.f32 %v740_v28 }
 0x7f7   :  { %2902 = vpow2.f32 %v738_v29 }
 0x7f8   :  { %2904 = vpow2.f32 %v736_v30 }
 0x7fc   :  { %v2901_v31 = vpop.eup %2900 }
 0x7fd   :  { %2674 = vmatpush.msk.msra.mxu1 %vm75_vm0, %v2901_v31  ;;  %2678 = vmatpush.msk.msrb.mxu3 %vm75_vm0, %v2901_v31  ;;  %v2903_v32 = vpop.eup %2902 }
 0x7fe   :  { %v2905_v33 = vpop.eup %2904 }
 0x7ff   :  { %769 = vmatpush.msra.mxu1 %v2903_v32  ;;  %795 = vmatpush.msrb.mxu3 %v2903_v32  ;;  %v2668_v32 = vld [vmem:[%s3968_s0 + $0x38] sm:$0xff] }
 0x801   :  { %770 = vmatpush.msra.mxu1 %v2905_v33  ;;  %796 = vmatpush.msrb.mxu3 %v2905_v33 }
 0x802   :  { %2675 = vmatmul.msk.f32.vlgmr.msra.gmra.mxu1 %vm65_vm1, %v3080_v6  ;;  %2679 = vmatmul.msk.f32.vlgmr.msrb.gmra.mxu3 %vm65_vm1, %v3070_v4 }
 0x803   :  { %1014 = vmatpush.msrb.mxu1 %v3179_v3 }
 0x805   :  { %1015 = vmatpush.msrb.mxu1 %v3185_v10 }
 0x807   :  { %1016 = vmatpush.msrb.mxu1 %v3191_v11 }
 0x809   :  { %1017 = vmatpush.msrb.mxu1 %v3197_v12 }
 0x80a   :  { %2680 = vmatmul.msk.f32.gmra.mxu3 %vm65_vm1, %v3091_v7  ;;  %2676 = vmatmul.msk.f32.gmra.mxu1 %vm65_vm1, %v3075_v5 }
 0x80b   :  { %1291 = vmatpush.msra.mxu1 %v3149_v57 }
 0x80d   :  { %1292 = vmatpush.msra.mxu1 %v3154_v58 }
 0x80f   :  { %1293 = vmatpush.msra.mxu1 %v3160_v59 }
 0x811   :  { %1294 = vmatpush.msra.mxu1 %v3170_v63 }
 0x812   :  { %2681 = vmatmul.msk.f32.gmra.mxu3 %vm65_vm1, %v3105_v9  ;;  %2677 = vmatmul.msk.f32.gmra.mxu1 %vm65_vm1, %v3096_v8 }
 0x87f   :  { %v772_v6 = vpop.f32.mrf.mxu1 }
 0x880   :  { %830 = vperm.xlu1 %2871, %v772_v6  }
 0x885   :  { %v798_v34 = vpop.f32.mrf.mxu3 }
 0x886   :  { %812 = vperm.xlu2 %2872, %v798_v34  }
 0x887   :  { %v775_v35 = vpop.f32.mrf.mxu1 }
 0x88d   :  { %v801_v5 = vpop.f32.mrf.mxu3 }
 0x88e   :  { %817 = vperm.xlu1 %2871, %v801_v5  }
 0x88f   :  { %v778_v36 = vpop.f32.mrf.mxu1 }
 0x895   :  { %v804_v37 = vpop.f32.mrf.mxu3 }
 0x896   :  { %822 = vperm.xlu0 %2870, %v804_v37   ;;  %840 = vperm.xlu1 %2871, %v778_v36  }
 0x89e   :  { %835 = vperm.xlu0 %2870, %v775_v35   ;;  %v2669_v35 = vld [vmem:[%s3968_s0 + $0x40] sm:$0xf] }
 0x8e0   :  { %v813_v41 = vpop.permute.xlu2 %812 }
 0x8e1   :  { %v825_v42 = vmul.f32 %v2876_v40, %v813_v41 }
 0x8f2   :  { %v831_v38 = vpop.permute.xlu1 %830 }
 0x8f3   :  { %vm843_vm6 = vcmp.le.f32.partialorder %v831_v38, %v825_v42 }
 0x8f4   :  { %v2682_v45 = vsel %vm843_vm6, 1.0, %v2994_v19 }
 0x8f5   :  { %v852_v50 = vmul.f32 %v2682_v45, %v3070_v4 }
 0x8f7   :  { %v855_v56 = vsel %vm65_vm1, %v852_v50, 0.0 }
 0x900   :  { %v818_v39 = vpop.permute.xlu1 %817 }
 0x901   :  { %v826_v46 = vmul.f32 %v2876_v40, %v818_v39  ;;  %v2670_v39 = vld [vmem:[%s3970_s1 + $0x30] sm:$0xff] }
 0x908   :  { %v823_v8 = vpop.permute.xlu0 %822  ;;  %v841_v44 = vpop.permute.xlu1 %840 }
 0x909   :  { %v827_v43 = vmul.f32 %v2876_v40, %v823_v8 }
 0x90b   :  { %vm845_vm7 = vcmp.le.f32.partialorder %v841_v44, %v827_v43  ;;  %v2671_v44 = vld [vmem:[%s3970_s1 + $0x38] sm:$0xff] }
 0x90c   :  { %v2684_v47 = vsel %vm845_vm7, 1.0, %v2994_v19 }
 0x90d   :  { %v854_v53 = vmul.f32 %v2684_v47, %v3105_v9 }
 0x90f   :  { %v858_v62 = vsel %vm191_vm5, %v854_v53, 0.0 }
 0x910   :  { %v836_v49 = vpop.permute.xlu0 %835 }
 0x911   :  { %vm844_vm8 = vcmp.le.f32.partialorder %v836_v49, %v826_v46 }
 0x912   :  { %v2683_v52 = vsel %vm844_vm8, 1.0, %v2994_v19 }
 0x913   :  { %v853_v55 = vmul.f32 %v2683_v52, %v3091_v7  ;;  %v2672_v52 = vld [vmem:[%s3970_s1 + $0x40] sm:$0xf] }
 0x915   :  { %v856_v60 = vsel %vm65_vm1, %v853_v55, 0.0 }
 0x916   :  { %v857_v61 = vadd.f32 %v856_v60, %v855_v56 }
 0x918   :  { %v859_v0 = vadd.f32 %v858_v62, %v857_v61 }
 0x91a   :  { %v860_v1 = vrot.slane %v859_v0, 4 }
 0x91c   :  { %v861_v2 = vadd.f32 %v860_v1, %v859_v0 }
 0x91e   :  { %v862_v13 = vrot.slane %v861_v2, 2 }
 0x920   :  { %v863_v14 = vadd.f32 %v862_v13, %v861_v2 }
 0x922   :  { %v864_v15 = vrot.slane %v863_v14, 1 }
 0x924   :  { %v865_v16 = vadd.f32 %v864_v15, %v863_v14 }
 0x926   :  { %v866_v17 = vmin.f32 %v865_v16, 9.0 }
 0x928   :  { %vm867_vm13 = vcmp.eq.f32.partialorder %v3131_v48, %v866_v17  ;;  %vm868_vm14 = vcmp.eq.f32.partialorder %v3136_v51, %v866_v17  ;;  %vm869_vm15 = vcmp.eq.f32.partialorder %v3141_v54, %v866_v17 }
 0x929   :  { %v2685_v18 = vsel %vm867_vm13, 1.0, %v2994_v19  ;;  %v2686_v21 = vsel %vm868_vm14, 1.0, %v2994_v19  ;;  %v2687_v23 = vsel %vm869_vm15, 1.0, %v2994_v19 }
 0x92a   :  { %v876_v20 = vmul.f32 %v2685_v18, %v3070_v4  ;;  %v877_v22 = vmul.f32 %v2686_v21, %v3091_v7  ;;  %v878_v24 = vmul.f32 %v2687_v23, %v3105_v9  ;;  %v2667_v9 = vld [vmem:[%s3968_s0 + $0x30] sm:$0xff] }
 0x92c   :  { %879 = vxpose.xlu0.b32.start [1/3] (short) (narrow) %v876_v20, 24 }
 0x934   :  { %880 = vxpose.xlu0.b32.cont [2/3] (short) (narrow) %v877_v22, 24 }
 0x93c   :  { %881 = vxpose.xlu0.b32.end [3/3] (short) (narrow) %v878_v24, 24 }
 0x9d0   :  { %v895_v25 = vpop.trf.xlu0 }
 0x9d1   :  { %2689 = vmatmul.msk.f32.vlgmr.msrb.gmra.mxu2 %vm65_vm1, %v895_v25 }
 0x9d8   :  { %v896_v27 = vpop.trf.xlu0 }
 0x9d9   :  { %2690 = vmatmul.msk.f32.gmra.mxu2 %vm65_vm1, %v896_v27 }
 0x9e0   :  { %v897_v4 = vpop.trf.xlu0 }
 0x9e1   :  { %2691 = vmatmul.msk.f32.gmra.mxu2 %vm65_vm1, %v897_v4 }
 0xa54   :  { %v939_v28 = vpop.f32.mrf.mxu2 }
 0xa55   :  { %2692 = vmatmul.msk.f32.vlgmr.msrb.gmra.mxu0 %vm298_vm9, %v939_v28 }
 0xa5c   :  { %v942_v7 = vpop.f32.mrf.mxu2 }
 0xa5d   :  { %2693 = vmatmul.msk.f32.gmra.mxu0 %vm298_vm9, %v942_v7 }
 0xa64   :  { %v945_v29 = vpop.f32.mrf.mxu2 }
 0xa65   :  { %2694 = vmatmul.msk.f32.gmra.mxu0 %vm298_vm9, %v945_v29 }
 0xad2   :  { %v974_v30 = vpop.f32.mrf.mxu0 }
 0xad3   :  { %v983_v31 = vadd.f32 %v2667_v9, %v974_v30 }
 0xad5   :  { %2906 = vtanh.f32 %v983_v31 }
 0xada   :  { %v977_v33 = vpop.f32.mrf.mxu0 }
 0xadb   :  { %v2907_v6 = vpop.eup %2906  ;;  %v984_v34 = vadd.f32 %v2668_v32, %v977_v33  ;;  %v3435_v32 = vld [vmem:[%s3962_s4] sm:$0xff] }
 0xadc   :  { %2695 = vst.msk [vmem:[%s3969_s10 + $0x30] sm:$0xff] %vm298_vm9, %v2907_v6  ;;  %2698 = vmatmul.msk.f32.vlgmr.msrb.gmra.mxu1 %vm298_vm9, %v2907_v6  ;;  %v3442_v33 = vld [vmem:[%s3961_s5] sm:$0xff] }
 0xadd   :  { %2908 = vtanh.f32 %v984_v34  ;;  %v3460_v34 = vld [vmem:[%s3961_s5 + $0x8] sm:$0xff] }
 0xae2   :  { %v980_v5 = vpop.f32.mrf.mxu0 }
 0xae3   :  { %v2909_v36 = vpop.eup %2908  ;;  %v985_v37 = vadd.f32 %v2669_v35, %v980_v5 }
 0xae4   :  { %2696 = vst.msk [vmem:[%s3969_s10 + $0x38] sm:$0xff] %vm298_vm9, %v2909_v36  ;;  %2699 = vmatmul.msk.f32.gmra.mxu1 %vm298_vm9, %v2909_v36 }
 0xae5   :  { %2910 = vtanh.f32 %v985_v37  ;;  %v2877_v37 = vld [vmem:[%s3963_s2 + $0x3] ss:$0 sm:$0xff] }
 0xaeb   :  { %v2911_v38 = vpop.eup %2910 }
 0xaec   :  { %2697 = vst.msk [vmem:[%s3969_s10 + $0x40] sm:$0xf] %vm342_vm10, %v2911_v38  ;;  %2700 = vmatmul.msk.f32.gmra.mxu1 %vm298_vm9, %v2911_v38  ;;  %2722 = vmatpush.msk.msra.mxu0 %vm75_vm0, %v2911_v38 }
 0xaee   :  { %1258 = vmatpush.msra.mxu0 %v2909_v36 }
 0xaf0   :  { %1259 = vmatpush.msra.mxu0 %v2907_v6  ;;  %v3453_v6 = vld [vmem:[%s3962_s4 + $0x8] sm:$0xff] }
 0xb59   :  { %v1019_v40 = vpop.f32.mrf.mxu1 }
 0xb5a   :  { %v1020_v41 = vadd.f32 %v3232_v26, %v1019_v40 }
 0xb5c   :  { %v1028_v8 = vsub.f32 %v2670_v39, %v1020_v41 }
 0xb5e   :  { %v1031_v42 = vmul.f32 %v1028_v8, %v1028_v8 }
 0xb60   :  { %v1034_v43 = vsel %vm388_vm11, %v1031_v42, 0.0 }
 0xb61   :  { %1035 = vadd.xlane.f32.xlu1 %v1034_v43  ;;  %v1022_v45 = vpop.f32.mrf.mxu1 }
 0xb62   :  { %v1023_v46 = vadd.f32 %v3232_v26, %v1022_v45 }
 0xb64   :  { %v1029_v47 = vsub.f32 %v2671_v44, %v1023_v46 }
 0xb66   :  { %v1032_v49 = vmul.f32 %v1029_v47, %v1029_v47 }
 0xb68   :  { %v1037_v50 = vsel %vm388_vm11, %v1032_v49, 0.0 }
 0xb69   :  { %1038 = vadd.xlane.f32.xlu1 %v1037_v50  ;;  %v1025_v53 = vpop.f32.mrf.mxu1 }
 0xb6a   :  { %v1026_v55 = vadd.f32 %v3232_v26, %v1025_v53 }
 0xb6c   :  { %v1030_v56 = vsub.f32 %v2672_v52, %v1026_v55 }
 0xb6e   :  { %v1033_v60 = vmul.f32 %v1030_v56, %v1030_v56 }
 0xb70   :  { %v1040_v61 = vsel %vm395_vm12, %v1033_v60, 0.0 }
 0xb71   :  { %1041 = vadd.xlane.f32.xlu0 %v1040_v61 }
 0xbd4   :  { %v1036_v62 = vpop.xlane.xlu1 %1035 }
 0xbd5   :  { %v1043_v2 = vmul.f32 -1.0, %v1036_v62 }
 0xbdc   :  { %v1039_v0 = vpop.xlane.xlu1 %1038 }
 0xbdd   :  { %v1044_v1 = vmul.f32 -1.0, %v1039_v0 }
 0xbdf   :  { %v1047_v15 = vmax.f32 %v1043_v2, %v1044_v1 }
 0xbe4   :  { %v1042_v13 = vpop.xlane.xlu0 %1041 }
 0xbe5   :  { %v1045_v14 = vmul.f32 -1.0, %v1042_v13 }
 0xbe7   :  { %v1046_v16 = vsel %vm75_vm0, %v1045_v14, -inf }
 0xbe8   :  { %v1048_v17 = vmax.f32 %v1047_v15, %v1046_v16 }
 0xbea   :  { %v1049_v18 = vrot.slane %v1048_v17, 4 }
 0xbec   :  { %v1050_v20 = vmax.f32 %v1048_v17, %v1049_v18 }
 0xbee   :  { %v1051_v21 = vrot.slane %v1050_v20, 2 }
 0xbf0   :  { %v1052_v22 = vmax.f32 %v1050_v20, %v1051_v21 }
 0xbf2   :  { %v1053_v23 = vrot.slane %v1052_v22, 1 }
 0xbf4   :  { %v1054_v24 = vmax.f32 %v1052_v22, %v1053_v23 }
 0xbf6   :  { %v1056_v25 = vsub.f32 %v1044_v1, %v1054_v24  ;;  %v1057_v27 = vsub.f32 %v1045_v14, %v1054_v24  ;;  %v1055_v4 = vsub.f32 %v1043_v2, %v1054_v24 }
 0xbf8   :  { %v1062_v28 = vmul.f32 1.442695, %v1057_v27  ;;  %v1060_v7 = vmul.f32 1.442695, %v1056_v25  ;;  %v1058_v29 = vmul.f32 1.442695, %v1055_v4 }
 0xbf9   :  { %v2701_v4 = vld [vmem:[%s3968_s0 + $0x48] sm:$0xff] }
 0xbfa   :  { %2912 = vpow2.f32 %v1062_v28 }
 0xbfb   :  { %2914 = vpow2.f32 %v1060_v7 }
 0xbfc   :  { %2916 = vpow2.f32 %v1058_v29  ;;  %v2702_v29 = vld [vmem:[%s3968_s0 + $0x50] sm:$0xff] }
 0xc00   :  { %v2913_v9 = vpop.eup %2912 }
 0xc01   :  { %2708 = vmatpush.msk.msra.mxu3 %vm75_vm0, %v2913_v9  ;;  %2712 = vmatpush.msk.msra.mxu2 %vm75_vm0, %v2913_v9  ;;  %v2915_v30 = vpop.eup %2914 }
 0xc02   :  { %v2917_v31 = vpop.eup %2916 }
 0xc03   :  { %1091 = vmatpush.msra.mxu3 %v2915_v30  ;;  %1117 = vmatpush.msra.mxu2 %v2915_v30 }
 0xc05   :  { %1092 = vmatpush.msra.mxu3 %v2917_v31  ;;  %1118 = vmatpush.msra.mxu2 %v2917_v31 }
 0xc06   :  { %2709 = vmatmul.msk.f32.vlgmr.msra.gmra.mxu3 %vm65_vm1, %v3435_v32  ;;  %2713 = vmatmul.msk.f32.vlgmr.msra.gmra.mxu2 %vm65_vm1, %v3442_v33 }
 0xc07   :  { %1336 = vmatpush.msrb.mxu3 %v3179_v3  ;;  %v3471_v3 = vld [vmem:[%s3961_s5 + $0x10] sm:$0xf] }
 0xc09   :  { %1337 = vmatpush.msrb.mxu3 %v3185_v10  ;;  %v3478_v10 = vld [vmem:[%s3962_s4 + $0x10] sm:$0xf] }
 0xc0b   :  { %1338 = vmatpush.msrb.mxu3 %v3191_v11 }
 0xc0d   :  { %1339 = vmatpush.msrb.mxu3 %v3197_v12 }
 0xc0e   :  { %2710 = vmatmul.msk.f32.gmra.mxu3 %vm65_vm1, %v3453_v6  ;;  %2714 = vmatmul.msk.f32.gmra.mxu2 %vm65_vm1, %v3460_v34 }
 0xc0f   :  { %1613 = vmatpush.msra.mxu3 %v3149_v57 }
 0xc11   :  { %1614 = vmatpush.msra.mxu3 %v3154_v58 }
 0xc13   :  { %1615 = vmatpush.msra.mxu3 %v3160_v59 }
 0xc15   :  { %1616 = vmatpush.msra.mxu3 %v3170_v63 }
 0xc16   :  { %2715 = vmatmul.msk.f32.gmra.mxu2 %vm65_vm1, %v3471_v3  ;;  %2711 = vmatmul.msk.f32.gmra.mxu3 %vm65_vm1, %v3478_v10 }
 0xc89   :  { %v1094_v57 = vpop.f32.mrf.mxu3  ;;  %v1120_v58 = vpop.f32.mrf.mxu2 }
 0xc8a   :  { %1134 = vperm.xlu1 %2871, %v1120_v58   ;;  %1152 = vperm.xlu2 %2872, %v1094_v57   ;;  %v2703_v57 = vld [vmem:[%s3968_s0 + $0x58] sm:$0xf] }
 0xc91   :  { %v1097_v59 = vpop.f32.mrf.mxu3  ;;  %v1123_v63 = vpop.f32.mrf.mxu2 }
 0xc92   :  { %1139 = vperm.xlu2 %2872, %v1123_v63   ;;  %1157 = vperm.xlu1 %2871, %v1097_v59  }
 0xc99   :  { %v1126_v11 = vpop.f32.mrf.mxu2  ;;  %v1100_v12 = vpop.f32.mrf.mxu3 }
 0xc9a   :  { %1144 = vperm.xlu2 %2872, %v1126_v11  }
 0xca2   :  { %1162 = vperm.xlu2 %2872, %v1100_v12   ;;  %v2704_v12 = vld [vmem:[%s3970_s1 + $0x48] sm:$0xff] }
 0xce4   :  { %v1153_v35 = vpop.permute.xlu2 %1152 }
 0xcec   :  { %v1140_v5 = vpop.permute.xlu2 %1139 }
 0xced   :  { %v1148_v42 = vmul.f32 %v2877_v37, %v1140_v5 }
 0xcf4   :  { %v1145_v36 = vpop.permute.xlu2 %1144 }
 0xcf5   :  { %v1149_v41 = vmul.f32 %v2877_v37, %v1145_v36 }
 0xcfc   :  { %v1135_v38 = vpop.permute.xlu1 %1134  ;;  %v1163_v40 = vpop.permute.xlu2 %1162 }
 0xcfd   :  { %v1147_v39 = vmul.f32 %v2877_v37, %v1135_v38  ;;  %vm1167_vm3 = vcmp.le.f32.partialorder %v1163_v40, %v1149_v41 }
 0xcfe   :  { %v2718_v43 = vsel %vm1167_vm3, 1.0, %v2994_v19 }
 0xcff   :  { %vm1165_vm2 = vcmp.le.f32.partialorder %v1153_v35, %v1147_v39  ;;  %v1176_v47 = vmul.f32 %v3471_v3, %v2718_v43  ;;  %v2705_v39 = vld [vmem:[%s3970_s1 + $0x50] sm:$0xff] }
 0xd00   :  { %v2716_v8 = vsel %vm1165_vm2, 1.0, %v2994_v19 }
 0xd01   :  { %v1174_v45 = vmul.f32 %v3442_v33, %v2716_v8  ;;  %v1180_v55 = vsel %vm191_vm5, %v1176_v47, 0.0 }
 0xd03   :  { %v1177_v50 = vsel %vm65_vm1, %v1174_v45, 0.0 }
 0xd04   :  { %v1158_v44 = vpop.permute.xlu1 %1157 }
 0xd05   :  { %vm1166_vm4 = vcmp.le.f32.partialorder %v1158_v44, %v1148_v42  ;;  %v2706_v44 = vld [vmem:[%s3970_s1 + $0x58] sm:$0xf] }
 0xd06   :  { %v2717_v46 = vsel %vm1166_vm4, 1.0, %v2994_v19 }
 0xd07   :  { %v1175_v49 = vmul.f32 %v3460_v34, %v2717_v46 }
 0xd09   :  { %v1178_v52 = vsel %vm65_vm1, %v1175_v49, 0.0 }
 0xd0a   :  { %v1179_v53 = vadd.f32 %v1178_v52, %v1177_v50 }
 0xd0c   :  { %v1181_v56 = vadd.f32 %v1180_v55, %v1179_v53 }
 0xd0e   :  { %v1182_v60 = vrot.slane %v1181_v56, 4 }
 0xd10   :  { %v1183_v61 = vadd.f32 %v1182_v60, %v1181_v56 }
 0xd12   :  { %v1184_v62 = vrot.slane %v1183_v61, 2 }
 0xd14   :  { %v1185_v0 = vadd.f32 %v1184_v62, %v1183_v61 }
 0xd16   :  { %v1186_v1 = vrot.slane %v1185_v0, 1 }
 0xd18   :  { %v1187_v2 = vadd.f32 %v1186_v1, %v1185_v0 }
 0xd1a   :  { %v1188_v13 = vmin.f32 %v1187_v2, 9.0 }
 0xd1c   :  { %vm1189_vm6 = vcmp.eq.f32.partialorder %v3131_v48, %v1188_v13  ;;  %vm1190_vm7 = vcmp.eq.f32.partialorder %v3136_v51, %v1188_v13  ;;  %vm1191_vm8 = vcmp.eq.f32.partialorder %v3141_v54, %v1188_v13 }
 0xd1d   :  { %v2719_v14 = vsel %vm1189_vm6, 1.0, %v2994_v19  ;;  %v2720_v16 = vsel %vm1190_vm7, 1.0, %v2994_v19  ;;  %v2721_v18 = vsel %vm1191_vm8, 1.0, %v2994_v19 }
 0xd1e   :  { %v1198_v15 = vmul.f32 %v3442_v33, %v2719_v14  ;;  %v1199_v17 = vmul.f32 %v3460_v34, %v2720_v16  ;;  %v1200_v20 = vmul.f32 %v3471_v3, %v2721_v18 }
 0xd20   :  { %1201 = vxpose.xlu1.b32.start [1/3] (short) (narrow) %v1198_v15, 24 }
 0xd28   :  { %1202 = vxpose.xlu1.b32.cont [2/3] (short) (narrow) %v1199_v17, 24 }
 0xd30   :  { %1203 = vxpose.xlu1.b32.end [3/3] (short) (narrow) %v1200_v20, 24 }
 0xdc4   :  { %v1217_v21 = vpop.trf.xlu1 }
 0xdc5   :  { %2723 = vmatmul.msk.f32.vlgmr.msra.gmra.mxu0 %vm65_vm1, %v1217_v21 }
 0xdcc   :  { %v1218_v22 = vpop.trf.xlu1 }
 0xdcd   :  { %2724 = vmatmul.msk.f32.gmra.mxu0 %vm65_vm1, %v1218_v22 }
 0xdd4   :  { %v1219_v23 = vpop.trf.xlu1 }
 0xdd5   :  { %2725 = vmatmul.msk.f32.gmra.mxu0 %vm65_vm1, %v1219_v23 }
 0xe42   :  { %v1261_v24 = vpop.f32.mrf.mxu0 }
 0xe43   :  { %2726 = vmatmul.msk.f32.vlgmr.msra.gmra.mxu1 %vm298_vm9, %v1261_v24 }
 0xe4a   :  { %v1264_v25 = vpop.f32.mrf.mxu0 }
 0xe4b   :  { %2727 = vmatmul.msk.f32.gmra.mxu1 %vm298_vm9, %v1264_v25 }
 0xe52   :  { %v1267_v27 = vpop.f32.mrf.mxu0 }
 0xe53   :  { %2728 = vmatmul.msk.f32.gmra.mxu1 %vm298_vm9, %v1267_v27 }
 0xec0   :  { %v1296_v28 = vpop.f32.mrf.mxu1 }
 0xec1   :  { %v1305_v7 = vadd.f32 %v2701_v4, %v1296_v28  ;;  %v3559_v4 = vld [vmem:[%s3967_s8 + $0x18] sm:$0xff]  ;;  %v3565_v28 = vld [vmem:[%s3967_s8 + $0x10] sm:$0xff] }
 0xec3   :  { %2918 = vtanh.f32 %v1305_v7  ;;  %v3571_v7 = vld [vmem:[%s3967_s8 + $0x8] sm:$0xff] }
 0xec8   :  { %v1299_v9 = vpop.f32.mrf.mxu1 }
 0xec9   :  { %v2919_v30 = vpop.eup %2918  ;;  %v1306_v31 = vadd.f32 %v2702_v29, %v1299_v9  ;;  %v3577_v29 = vld [vmem:[%s3967_s8] sm:$0xff]  ;;  %v3587_v9 = vld [vmem:[%s3965_s7 + $0x18] sm:$0xff] }
 0xeca   :  { %2729 = vst.msk [vmem:[%s3969_s10 + $0x48] sm:$0xff] %vm298_vm9, %v2919_v30  ;;  %2732 = vmatmul.msk.f32.vlgmr.msrb.gmra.mxu3 %vm298_vm9, %v2919_v30 }
 0xecb   :  { %2920 = vtanh.f32 %v1306_v31  ;;  %v3599_v31 = vld [vmem:[%s3965_s7 + $0x8] sm:$0xff] }
 0xed0   :  { %v1302_v58 = vpop.f32.mrf.mxu1 }
 0xed1   :  { %v2921_v59 = vpop.eup %2920  ;;  %v1307_v63 = vadd.f32 %v2703_v57, %v1302_v58  ;;  %v3605_v57 = vld [vmem:[%s3965_s7] sm:$0xff] }
 0xed2   :  { %2730 = vst.msk [vmem:[%s3969_s10 + $0x50] sm:$0xff] %vm298_vm9, %v2921_v59  ;;  %2733 = vmatmul.msk.f32.gmra.mxu3 %vm298_vm9, %v2921_v59 }
 0xed3   :  { %2922 = vtanh.f32 %v1307_v63 }
 0xed9   :  { %v2923_v11 = vpop.eup %2922 }
 0xeda   :  { %2731 = vst.msk [vmem:[%s3969_s10 + $0x58] sm:$0xf] %vm342_vm10, %v2923_v11  ;;  %2734 = vmatmul.msk.f32.gmra.mxu3 %vm298_vm9, %v2923_v11  ;;  %2756 = vmatpush.msk.msrb.mxu1 %vm75_vm0, %v2923_v11 }
 0xedc   :  { %1580 = vmatpush.msrb.mxu1 %v2921_v59 }
 0xede   :  { %1581 = vmatpush.msrb.mxu1 %v2919_v30  ;;  %v3593_v30 = vld [vmem:[%s3965_s7 + $0x10] sm:$0xff] }
 0xf4d   :  { %v1341_v35 = vpop.f32.mrf.mxu3 }
 0xf4e   :  { %v1342_v5 = vadd.f32 %v3232_v26, %v1341_v35 }
 0xf50   :  { %v1350_v36 = vsub.f32 %v2704_v12, %v1342_v5 }
 0xf52   :  { %v1353_v37 = vmul.f32 %v1350_v36, %v1350_v36 }
 0xf54   :  { %v1356_v38 = vsel %vm388_vm11, %v1353_v37, 0.0  ;;  %v2878_v37 = vld [vmem:[%s3963_s2 + $0x4] ss:$0 sm:$0xff] }
 0xf55   :  { %1357 = vadd.xlane.f32.xlu2 %v1356_v38  ;;  %v1344_v40 = vpop.f32.mrf.mxu3 }
 0xf56   :  { %v1345_v41 = vadd.f32 %v3232_v26, %v1344_v40 }
 0xf58   :  { %v1351_v8 = vsub.f32 %v2705_v39, %v1345_v41 }
 0xf5a   :  { %v1354_v42 = vmul.f32 %v1351_v8, %v1351_v8 }
 0xf5c   :  { %v1359_v43 = vsel %vm388_vm11, %v1354_v42, 0.0 }
 0xf5d   :  { %1360 = vadd.xlane.f32.xlu2 %v1359_v43  ;;  %v1347_v45 = vpop.f32.mrf.mxu3 }
 0xf5e   :  { %v1348_v46 = vadd.f32 %v3232_v26, %v1347_v45 }
 0xf60   :  { %v1352_v47 = vsub.f32 %v2706_v44, %v1348_v46 }
 0xf62   :  { %v1355_v49 = vmul.f32 %v1352_v47, %v1352_v47 }
 0xf64   :  { %v1362_v50 = vsel %vm395_vm12, %v1355_v49, 0.0 }
 0xf65   :  { %1363 = vadd.xlane.f32.xlu2 %v1362_v50 }
 0xfc8   :  { %v1358_v52 = vpop.xlane.xlu2 %1357 }
 0xfc9   :  { %v1365_v56 = vmul.f32 -1.0, %v1358_v52 }
 0xfd0   :  { %v1361_v53 = vpop.xlane.xlu2 %1360 }
 0xfd1   :  { %v1366_v55 = vmul.f32 -1.0, %v1361_v53 }
 0xfd3   :  { %v1369_v62 = vmax.f32 %v1365_v56, %v1366_v55 }
 0xfd8   :  { %v1364_v60 = vpop.xlane.xlu2 %1363 }
 0xfd9   :  { %v1367_v61 = vmul.f32 -1.0, %v1364_v60 }
 0xfdb   :  { %v1368_v0 = vsel %vm75_vm0, %v1367_v61, -inf }
 0xfdc   :  { %v1370_v1 = vmax.f32 %v1369_v62, %v1368_v0 }
 0xfde   :  { %v1371_v2 = vrot.slane %v1370_v1, 4 }
 0xfe0   :  { %v1372_v13 = vmax.f32 %v1370_v1, %v1371_v2 }
 0xfe2   :  { %v1373_v14 = vrot.slane %v1372_v13, 2 }
 0xfe4   :  { %v1374_v15 = vmax.f32 %v1372_v13, %v1373_v14 }
 0xfe6   :  { %v1375_v26 = vrot.slane %v1374_v15, 1 }
 0xfe8   :  { %v1376_v16 = vmax.f32 %v1374_v15, %v1375_v26 }
 0xfea   :  { %v1378_v17 = vsub.f32 %v1366_v55, %v1376_v16  ;;  %v1379_v18 = vsub.f32 %v1367_v61, %v1376_v16  ;;  %v1377_v20 = vsub.f32 %v1365_v56, %v1376_v16 }
 0xfec   :  { %v1384_v21 = vmul.f32 1.442695, %v1379_v18  ;;  %v1382_v22 = vmul.f32 1.442695, %v1378_v17  ;;  %v1380_v23 = vmul.f32 1.442695, %v1377_v20 }
 0xfee   :  { %2924 = vpow2.f32 %v1384_v21 }
 0xfef   :  { %2926 = vpow2.f32 %v1382_v22 }
 0xff0   :  { %2928 = vpow2.f32 %v1380_v23 }
 0xff4   :  { %v2925_v24 = vpop.eup %2924 }
 0xff5   :  { %2742 = vmatpush.msk.msrb.mxu2 %vm75_vm0, %v2925_v24  ;;  %2746 = vmatpush.msk.msrb.mxu0 %vm75_vm0, %v2925_v24  ;;  %v2927_v25 = vpop.eup %2926 }
 0xff6   :  { %v2929_v27 = vpop.eup %2928 }
 0xff7   :  { %1413 = vmatpush.msrb.mxu2 %v2927_v25  ;;  %1439 = vmatpush.msrb.mxu0 %v2927_v25 }
 0xff9   :  { %1414 = vmatpush.msrb.mxu2 %v2929_v27  ;;  %1440 = vmatpush.msrb.mxu0 %v2929_v27 }
 0xffa   :  { %2743 = vmatmul.msk.f32.vlgmr.msrb.gmra.mxu2 %vm65_vm1, %v3435_v32  ;;  %2747 = vmatmul.msk.f32.vlgmr.msrb.gmra.mxu0 %vm65_vm1, %v3442_v33 }
 0xffb   :  { %1658 = vmatpush.msra.mxu2 %v3559_v4 }
 0xffd   :  { %1659 = vmatpush.msra.mxu2 %v3565_v28 }
 0xfff   :  { %1660 = vmatpush.msra.mxu2 %v3571_v7 }
0x1001   :  { %1661 = vmatpush.msra.mxu2 %v3577_v29 }
0x1002   :  { %2744 = vmatmul.msk.f32.gmra.mxu2 %vm65_vm1, %v3453_v6  ;;  %2748 = vmatmul.msk.f32.gmra.mxu0 %vm65_vm1, %v3460_v34 }
0x1003   :  { %1935 = vmatpush.msrb.mxu2 %v3587_v9 }
0x1005   :  { %1936 = vmatpush.msrb.mxu2 %v3593_v30 }
0x1007   :  { %1937 = vmatpush.msrb.mxu2 %v3599_v31 }
0x1009   :  { %1938 = vmatpush.msrb.mxu2 %v3605_v57 }
0x100a   :  { %2745 = vmatmul.msk.f32.gmra.mxu2 %vm65_vm1, %v3478_v10  ;;  %2749 = vmatmul.msk.f32.gmra.mxu0 %vm65_vm1, %v3471_v3 }
0x1077   :  { %v1442_v58 = vpop.f32.mrf.mxu0 }
0x1078   :  { %1456 = vperm.xlu2 %2872, %v1442_v58   ;;  %v2735_v58 = vld [vmem:[%s3968_s0 + $0x60] sm:$0xff] }
0x107d   :  { %v1416_v59 = vpop.f32.mrf.mxu2 }
0x107f   :  { %v1445_v63 = vpop.f32.mrf.mxu0 }
0x1080   :  { %1461 = vperm.xlu1 %2871, %v1445_v63   ;;  %1474 = vperm.xlu2 %2872, %v1416_v59  }
0x1085   :  { %v1419_v11 = vpop.f32.mrf.mxu2 }
0x1087   :  { %v1448_v12 = vpop.f32.mrf.mxu0 }
0x1088   :  { %1466 = vperm.xlu0 %2870, %v1448_v12  }
0x108d   :  { %v1422_v35 = vpop.f32.mrf.mxu2 }
0x108e   :  { %1484 = vperm.xlu2 %2872, %v1422_v35  }
0x1090   :  { %1479 = vperm.xlu0 %2870, %v1419_v11   ;;  %v2736_v11 = vld [vmem:[%s3968_s0 + $0x68] sm:$0xff] }
0x10d2   :  { %v1457_v5 = vpop.permute.xlu2 %1456 }
0x10d3   :  { %v1469_v39 = vmul.f32 %v2878_v37, %v1457_v5 }
0x10da   :  { %v1475_v36 = vpop.permute.xlu2 %1474 }
0x10db   :  { %vm1487_vm13 = vcmp.le.f32.partialorder %v1475_v36, %v1469_v39  ;;  %v2737_v36 = vld [vmem:[%s3968_s0 + $0x70] sm:$0xf] }
0x10dc   :  { %v2750_v42 = vsel %vm1487_vm13, 1.0, %v2994_v19 }
0x10dd   :  { %v1496_v46 = vmul.f32 %v3442_v33, %v2750_v42  ;;  %v3670_v42 = vld [vmem:[%s3966_s9] ss:$0 sm:$0xff] }
0x10df   :  { %v1499_v52 = vsel %vm65_vm1, %v1496_v46, 0.0 }
0x10e8   :  { %v1485_v41 = vpop.permute.xlu2 %1484 }
0x10f2   :  { %v1462_v8 = vpop.permute.xlu1 %1461 }
0x10f3   :  { %v1470_v43 = vmul.f32 %v2878_v37, %v1462_v8 }
0x10fa   :  { %v1467_v38 = vpop.permute.xlu0 %1466 }
0x10fb   :  { %v1471_v40 = vmul.f32 %v2878_v37, %v1467_v38 }
0x10fd   :  { %vm1489_vm14 = vcmp.le.f32.partialorder %v1485_v41, %v1471_v40  ;;  %v2738_v41 = vld [vmem:[%s3970_s1 + $0x60] sm:$0xff] }
0x10fe   :  { %v2752_v44 = vsel %vm1489_vm14, 1.0, %v2994_v19 }
0x10ff   :  { %v1498_v49 = vmul.f32 %v3471_v3, %v2752_v44 }
0x1101   :  { %v1502_v56 = vsel %vm191_vm5, %v1498_v49, 0.0 }
0x1102   :  { %v1480_v45 = vpop.permute.xlu0 %1479 }
0x1103   :  { %vm1488_vm15 = vcmp.le.f32.partialorder %v1480_v45, %v1470_v43 }
0x1104   :  { %v2751_v47 = vsel %vm1488_vm15, 1.0, %v2994_v19 }
0x1105   :  { %v1497_v50 = vmul.f32 %v3460_v34, %v2751_v47  ;;  %v2739_v47 = vld [vmem:[%s3970_s1 + $0x68] sm:$0xff] }
0x1107   :  { %v1500_v53 = vsel %vm65_vm1, %v1497_v50, 0.0 }
0x1108   :  { %v1501_v55 = vadd.f32 %v1500_v53, %v1499_v52 }
0x110a   :  { %v1503_v60 = vadd.f32 %v1502_v56, %v1501_v55  ;;  %v2740_v56 = vld [vmem:[%s3970_s1 + $0x70] sm:$0xf] }
0x110c   :  { %v1504_v61 = vrot.slane %v1503_v60, 4 }
0x110e   :  { %v1505_v62 = vadd.f32 %v1504_v61, %v1503_v60 }
0x1110   :  { %v1506_v0 = vrot.slane %v1505_v62, 2 }
0x1112   :  { %v1507_v1 = vadd.f32 %v1506_v0, %v1505_v62 }
0x1114   :  { %v1508_v2 = vrot.slane %v1507_v1, 1 }
0x1116   :  { %v1509_v13 = vadd.f32 %v1508_v2, %v1507_v1 }
0x1118   :  { %v1510_v14 = vmin.f32 %v1509_v13, 9.0 }
0x111a   :  { %vm1511_vm2 = vcmp.eq.f32.partialorder %v3131_v48, %v1510_v14  ;;  %vm1512_vm3 = vcmp.eq.f32.partialorder %v3136_v51, %v1510_v14  ;;  %vm1513_vm4 = vcmp.eq.f32.partialorder %v3141_v54, %v1510_v14 }
0x111b   :  { %v2753_v15 = vsel %vm1511_vm2, 1.0, %v2994_v19  ;;  %v2754_v16 = vsel %vm1512_vm3, 1.0, %v2994_v19  ;;  %v2755_v18 = vsel %vm1513_vm4, 1.0, %v2994_v19 }
0x111c   :  { %v1520_v26 = vmul.f32 %v3442_v33, %v2753_v15  ;;  %v1521_v17 = vmul.f32 %v3460_v34, %v2754_v16  ;;  %v1522_v20 = vmul.f32 %v3471_v3, %v2755_v18 }
0x111e   :  { %1523 = vxpose.xlu0.b32.start [1/3] (short) (narrow) %v1520_v26, 24 }
0x1126   :  { %1524 = vxpose.xlu0.b32.cont [2/3] (short) (narrow) %v1521_v17, 24 }
0x112e   :  { %1525 = vxpose.xlu0.b32.end [3/3] (short) (narrow) %v1522_v20, 24 }
0x11c2   :  { %v1539_v21 = vpop.trf.xlu0 }
0x11c3   :  { %2757 = vmatmul.msk.f32.vlgmr.msrb.gmra.mxu1 %vm65_vm1, %v1539_v21 }
0x11ca   :  { %v1540_v22 = vpop.trf.xlu0 }
0x11cb   :  { %2758 = vmatmul.msk.f32.gmra.mxu1 %vm65_vm1, %v1540_v22 }
0x11d2   :  { %v1541_v23 = vpop.trf.xlu0 }
0x11d3   :  { %2759 = vmatmul.msk.f32.gmra.mxu1 %vm65_vm1, %v1541_v23 }
0x1240   :  { %v1583_v24 = vpop.f32.mrf.mxu1 }
0x1241   :  { %2760 = vmatmul.msk.f32.vlgmr.msra.gmra.mxu3 %vm298_vm9, %v1583_v24 }
0x1248   :  { %v1586_v25 = vpop.f32.mrf.mxu1 }
0x1249   :  { %2761 = vmatmul.msk.f32.gmra.mxu3 %vm298_vm9, %v1586_v25 }
0x1250   :  { %v1589_v27 = vpop.f32.mrf.mxu1 }
0x1251   :  { %2762 = vmatmul.msk.f32.gmra.mxu3 %vm298_vm9, %v1589_v27 }
0x12c4   :  { %v1618_v59 = vpop.f32.mrf.mxu3 }
0x12c5   :  { %v1627_v63 = vadd.f32 %v2735_v58, %v1618_v59 }
0x12c7   :  { %2930 = vtanh.f32 %v1627_v63 }
0x12cc   :  { %v1621_v12 = vpop.f32.mrf.mxu3 }
0x12cd   :  { %v2931_v35 = vpop.eup %2930  ;;  %v1628_v5 = vadd.f32 %v2736_v11, %v1621_v12 }
0x12ce   :  { %2763 = vst.msk [vmem:[%s3969_s10 + $0x60] sm:$0xff] %vm298_vm9, %v2931_v35  ;;  %2766 = vmatmul.msk.f32.vlgmr.msra.gmra.mxu2 %vm298_vm9, %v2931_v35 }
0x12cf   :  { %2932 = vtanh.f32 %v1628_v5 }
0x12d4   :  { %v1624_v37 = vpop.f32.mrf.mxu3 }
0x12d5   :  { %v2933_v38 = vpop.eup %2932  ;;  %v1629_v39 = vadd.f32 %v2737_v36, %v1624_v37 }
0x12d6   :  { %2764 = vst.msk [vmem:[%s3969_s10 + $0x68] sm:$0xff] %vm298_vm9, %v2933_v38  ;;  %2767 = vmatmul.msk.f32.gmra.mxu2 %vm298_vm9, %v2933_v38 }
0x12d7   :  { %2934 = vtanh.f32 %v1629_v39 }
0x12dd   :  { %v2935_v40 = vpop.eup %2934 }
0x12de   :  { %2765 = vst.msk [vmem:[%s3969_s10 + $0x70] sm:$0xf] %vm342_vm10, %v2935_v40  ;;  %2768 = vmatmul.msk.f32.gmra.mxu2 %vm298_vm9, %v2935_v40  ;;  %2790 = vmatpush.msk.msrb.mxu3 %vm75_vm0, %v2935_v40 }
0x12e0   :  { %1902 = vmatpush.msrb.mxu3 %v2933_v38 }
0x12e2   :  { %1903 = vmatpush.msrb.mxu3 %v2931_v35 }
0x1351   :  { %v1663_v8 = vpop.f32.mrf.mxu2 }
0x1352   :  { %v1664_v43 = vadd.f32 %v3670_v42, %v1663_v8 }
0x1354   :  { %v1672_v44 = vsub.f32 %v2738_v41, %v1664_v43 }
0x1356   :  { %v1675_v45 = vmul.f32 %v1672_v44, %v1672_v44 }
0x1358   :  { %v1678_v46 = vsel %vm388_vm11, %v1675_v45, 0.0 }
0x1359   :  { %1679 = vadd.xlane.f32.xlu2 %v1678_v46  ;;  %v1666_v49 = vpop.f32.mrf.mxu2 }
0x135a   :  { %v1667_v50 = vadd.f32 %v3670_v42, %v1666_v49 }
0x135c   :  { %v1673_v52 = vsub.f32 %v2739_v47, %v1667_v50  ;;  %v2879_v47 = vld [vmem:[%s3963_s2 + $0x5] ss:$0 sm:$0xff] }
0x135e   :  { %v1676_v53 = vmul.f32 %v1673_v52, %v1673_v52 }
0x1360   :  { %v1681_v55 = vsel %vm388_vm11, %v1676_v53, 0.0 }
0x1361   :  { %1682 = vadd.xlane.f32.xlu2 %v1681_v55  ;;  %v1669_v60 = vpop.f32.mrf.mxu2 }
0x1362   :  { %v1670_v61 = vadd.f32 %v3670_v42, %v1669_v60 }
0x1364   :  { %v1674_v62 = vsub.f32 %v2740_v56, %v1670_v61 }
0x1366   :  { %v1677_v0 = vmul.f32 %v1674_v62, %v1674_v62 }
0x1368   :  { %v1684_v1 = vsel %vm395_vm12, %v1677_v0, 0.0 }
0x1369   :  { %1685 = vadd.xlane.f32.xlu0 %v1684_v1 }
0x13cc   :  { %v1680_v2 = vpop.xlane.xlu2 %1679 }
0x13cd   :  { %v1687_v15 = vmul.f32 -1.0, %v1680_v2 }
0x13d4   :  { %v1683_v13 = vpop.xlane.xlu2 %1682 }
0x13d5   :  { %v1688_v14 = vmul.f32 -1.0, %v1683_v13 }
0x13d7   :  { %v1691_v17 = vmax.f32 %v1687_v15, %v1688_v14 }
0x13dc   :  { %v1686_v26 = vpop.xlane.xlu0 %1685 }
0x13dd   :  { %v1689_v16 = vmul.f32 -1.0, %v1686_v26 }
0x13df   :  { %v1690_v18 = vsel %vm75_vm0, %v1689_v16, -inf }
0x13e0   :  { %v1692_v20 = vmax.f32 %v1691_v17, %v1690_v18 }
0x13e2   :  { %v1693_v21 = vrot.slane %v1692_v20, 4 }
0x13e4   :  { %v1694_v22 = vmax.f32 %v1692_v20, %v1693_v21 }
0x13e6   :  { %v1695_v23 = vrot.slane %v1694_v22, 2 }
0x13e8   :  { %v1696_v24 = vmax.f32 %v1694_v22, %v1695_v23 }
0x13ea   :  { %v1697_v25 = vrot.slane %v1696_v24, 1 }
0x13ec   :  { %v1698_v27 = vmax.f32 %v1696_v24, %v1697_v25 }
0x13ee   :  { %v1700_v58 = vsub.f32 %v1688_v14, %v1698_v27  ;;  %v1701_v59 = vsub.f32 %v1689_v16, %v1698_v27  ;;  %v1699_v63 = vsub.f32 %v1687_v15, %v1698_v27 }
0x13f0   :  { %v1706_v11 = vmul.f32 1.442695, %v1701_v59  ;;  %v1704_v12 = vmul.f32 1.442695, %v1700_v58  ;;  %v1702_v35 = vmul.f32 1.442695, %v1699_v63 }
0x13f2   :  { %2936 = vpow2.f32 %v1706_v11 }
0x13f3   :  { %2938 = vpow2.f32 %v1704_v12 }
0x13f4   :  { %2940 = vpow2.f32 %v1702_v35 }
0x13f8   :  { %v2937_v5 = vpop.eup %2936 }
0x13f9   :  { %2776 = vmatpush.msk.msra.mxu0 %vm75_vm0, %v2937_v5  ;;  %2780 = vmatpush.msk.msra.mxu1 %vm75_vm0, %v2937_v5  ;;  %v2939_v36 = vpop.eup %2938 }
0x13fa   :  { %v2941_v37 = vpop.eup %2940 }
0x13fb   :  { %1735 = vmatpush.msra.mxu0 %v2939_v36  ;;  %1761 = vmatpush.msra.mxu1 %v2939_v36 }
0x13fd   :  { %1736 = vmatpush.msra.mxu0 %v2941_v37  ;;  %1762 = vmatpush.msra.mxu1 %v2941_v37 }
0x13fe   :  { %2777 = vmatmul.msk.f32.vlgmr.msra.gmra.mxu0 %vm65_vm1, %v3435_v32  ;;  %2781 = vmatmul.msk.f32.vlgmr.msra.gmra.mxu1 %vm65_vm1, %v3442_v33 }
0x13ff   :  { %1980 = vmatpush.msrb.mxu0 %v3559_v4 }
0x1401   :  { %1981 = vmatpush.msrb.mxu0 %v3565_v28 }
0x1403   :  { %1982 = vmatpush.msrb.mxu0 %v3571_v7 }
0x1405   :  { %1983 = vmatpush.msrb.mxu0 %v3577_v29 }
0x1406   :  { %2778 = vmatmul.msk.f32.gmra.mxu0 %vm65_vm1, %v3453_v6  ;;  %2782 = vmatmul.msk.f32.gmra.mxu1 %vm65_vm1, %v3460_v34 }
0x1407   :  { %2257 = vmatpush.msra.mxu0 %v3587_v9 }
0x1409   :  { %2258 = vmatpush.msra.mxu0 %v3593_v30 }
0x140b   :  { %2259 = vmatpush.msra.mxu0 %v3599_v31 }
0x140d   :  { %2260 = vmatpush.msra.mxu0 %v3605_v57 }
0x140e   :  { %2783 = vmatmul.msk.f32.gmra.mxu1 %vm65_vm1, %v3471_v3  ;;  %2779 = vmatmul.msk.f32.gmra.mxu0 %vm65_vm1, %v3478_v10 }
0x147b   :  { %v1738_v38 = vpop.f32.mrf.mxu0  ;;  %v1764_v39 = vpop.f32.mrf.mxu1 }
0x147c   :  { %1778 = vperm.xlu2 %2872, %v1764_v39   ;;  %1796 = vperm.xlu1 %2871, %v1738_v38   ;;  %v2769_v39 = vld [vmem:[%s3968_s0 + $0x78] sm:$0xff] }
0x1483   :  { %v1741_v40 = vpop.f32.mrf.mxu0  ;;  %v1767_v41 = vpop.f32.mrf.mxu1 }
0x1484   :  { %1783 = vperm.xlu1 %2871, %v1767_v41   ;;  %1801 = vperm.xlu2 %2872, %v1741_v40  }
0x148b   :  { %v1770_v8 = vpop.f32.mrf.mxu1  ;;  %v1744_v43 = vpop.f32.mrf.mxu0 }
0x148c   :  { %1788 = vperm.xlu1 %2871, %v1770_v8   ;;  %v2770_v8 = vld [vmem:[%s3968_s0 + $0x80] sm:$0xff] }
0x1494   :  { %1806 = vperm.xlu1 %2871, %v1744_v43  }
0x14d6   :  { %v1779_v45 = vpop.permute.xlu2 %1778 }
0x14d7   :  { %v1791_v52 = vmul.f32 %v2879_v47, %v1779_v45 }
0x14de   :  { %v1802_v50 = vpop.permute.xlu2 %1801 }
0x14ee   :  { %v1797_v44 = vpop.permute.xlu1 %1796 }
0x14ef   :  { %vm1809_vm7 = vcmp.le.f32.partialorder %v1797_v44, %v1791_v52 }
0x14f0   :  { %v2784_v56 = vsel %vm1809_vm7, 1.0, %v2994_v19 }
0x14f1   :  { %v1818_v61 = vmul.f32 %v3442_v33, %v2784_v56 }
0x14f3   :  { %v1821_v13 = vsel %vm65_vm1, %v1818_v61, 0.0 }
0x14f6   :  { %v1784_v46 = vpop.permute.xlu1 %1783 }
0x14f7   :  { %v1792_v49 = vmul.f32 %v2879_v47, %v1784_v46  ;;  %v2771_v46 = vld [vmem:[%s3968_s0 + $0x88] sm:$0xf] }
0x14f9   :  { %vm1810_vm6 = vcmp.le.f32.partialorder %v1802_v50, %v1792_v49 }
0x14fa   :  { %v2785_v55 = vsel %vm1810_vm6, 1.0, %v2994_v19 }
0x14fb   :  { %v1819_v60 = vmul.f32 %v3460_v34, %v2785_v55 }
0x14fd   :  { %v1822_v1 = vsel %vm65_vm1, %v1819_v60, 0.0 }
0x14fe   :  { %v1789_v53 = vpop.permute.xlu1 %1788  ;;  %v1823_v15 = vadd.f32 %v1822_v1, %v1821_v13 }
0x14ff   :  { %v1793_v62 = vmul.f32 %v2879_v47, %v1789_v53  ;;  %v2772_v53 = vld [vmem:[%s3970_s1 + $0x78] sm:$0xff] }
0x1506   :  { %v1807_v0 = vpop.permute.xlu1 %1806 }
0x1507   :  { %vm1811_vm8 = vcmp.le.f32.partialorder %v1807_v0, %v1793_v62  ;;  %v2773_v0 = vld [vmem:[%s3970_s1 + $0x80] sm:$0xff] }
0x1508   :  { %v2786_v2 = vsel %vm1811_vm8, 1.0, %v2994_v19 }
0x1509   :  { %v1820_v14 = vmul.f32 %v3471_v3, %v2786_v2 }
0x150b   :  { %v1824_v26 = vsel %vm191_vm5, %v1820_v14, 0.0 }
0x150c   :  { %v1825_v16 = vadd.f32 %v1824_v26, %v1823_v15  ;;  %v2774_v26 = vld [vmem:[%s3970_s1 + $0x88] sm:$0xf] }
0x150e   :  { %v1826_v17 = vrot.slane %v1825_v16, 4 }
0x1510   :  { %v1827_v18 = vadd.f32 %v1826_v17, %v1825_v16 }
0x1512   :  { %v1828_v20 = vrot.slane %v1827_v18, 2 }
0x1514   :  { %v1829_v21 = vadd.f32 %v1828_v20, %v1827_v18 }
0x1516   :  { %v1830_v22 = vrot.slane %v1829_v21, 1 }
0x1518   :  { %v1831_v23 = vadd.f32 %v1830_v22, %v1829_v21 }
0x151a   :  { %v1832_v24 = vmin.f32 %v1831_v23, 9.0 }
0x151c   :  { %vm1833_vm13 = vcmp.eq.f32.partialorder %v3131_v48, %v1832_v24  ;;  %vm1834_vm14 = vcmp.eq.f32.partialorder %v3136_v51, %v1832_v24  ;;  %vm1835_vm15 = vcmp.eq.f32.partialorder %v3141_v54, %v1832_v24 }
0x151d   :  { %v2787_v25 = vsel %vm1833_vm13, 1.0, %v2994_v19  ;;  %v2788_v58 = vsel %vm1834_vm14, 1.0, %v2994_v19  ;;  %v2789_v63 = vsel %vm1835_vm15, 1.0, %v2994_v19 }
0x151e   :  { %v1842_v27 = vmul.f32 %v3442_v33, %v2787_v25  ;;  %v1843_v59 = vmul.f32 %v3460_v34, %v2788_v58  ;;  %v1844_v11 = vmul.f32 %v3471_v3, %v2789_v63 }
0x1520   :  { %1845 = vxpose.xlu2.b32.start [1/3] (short) (narrow) %v1842_v27, 24 }
0x1528   :  { %1846 = vxpose.xlu2.b32.cont [2/3] (short) (narrow) %v1843_v59, 24 }
0x1530   :  { %1847 = vxpose.xlu2.b32.end [3/3] (short) (narrow) %v1844_v11, 24 }
0x15b9   :  { %v1861_v12 = vpop.trf.xlu2 }
0x15ba   :  { %2791 = vmatmul.msk.f32.vlgmr.msrb.gmra.mxu3 %vm65_vm1, %v1861_v12 }
0x15c1   :  { %v1862_v35 = vpop.trf.xlu2 }
0x15c2   :  { %2792 = vmatmul.msk.f32.gmra.mxu3 %vm65_vm1, %v1862_v35 }
0x15c9   :  { %v1863_v5 = vpop.trf.xlu2 }
0x15ca   :  { %2793 = vmatmul.msk.f32.gmra.mxu3 %vm65_vm1, %v1863_v5 }
0x163d   :  { %v1905_v36 = vpop.f32.mrf.mxu3 }
0x163e   :  { %2794 = vmatmul.msk.f32.vlgmr.msrb.gmra.mxu2 %vm298_vm9, %v1905_v36 }
0x1645   :  { %v1908_v37 = vpop.f32.mrf.mxu3 }
0x1646   :  { %2795 = vmatmul.msk.f32.gmra.mxu2 %vm298_vm9, %v1908_v37 }
0x164d   :  { %v1911_v38 = vpop.f32.mrf.mxu3 }
0x164e   :  { %2796 = vmatmul.msk.f32.gmra.mxu2 %vm298_vm9, %v1911_v38 }
0x16c1   :  { %v1940_v40 = vpop.f32.mrf.mxu2 }
0x16c2   :  { %v1949_v41 = vadd.f32 %v2769_v39, %v1940_v40 }
0x16c4   :  { %2942 = vtanh.f32 %v1949_v41 }
0x16c9   :  { %v1943_v43 = vpop.f32.mrf.mxu2 }
0x16ca   :  { %v2943_v44 = vpop.eup %2942  ;;  %v1950_v45 = vadd.f32 %v2770_v8, %v1943_v43 }
0x16cb   :  { %2797 = vst.msk [vmem:[%s3969_s10 + $0x78] sm:$0xff] %vm298_vm9, %v2943_v44  ;;  %2800 = vmatmul.msk.f32.vlgmr.msrb.gmra.mxu0 %vm298_vm9, %v2943_v44 }
0x16cc   :  { %2944 = vtanh.f32 %v1950_v45 }
0x16d1   :  { %v1946_v47 = vpop.f32.mrf.mxu2 }
0x16d2   :  { %v2945_v49 = vpop.eup %2944  ;;  %v1951_v50 = vadd.f32 %v2771_v46, %v1946_v47 }
0x16d3   :  { %2798 = vst.msk [vmem:[%s3969_s10 + $0x80] sm:$0xff] %vm298_vm9, %v2945_v49  ;;  %2801 = vmatmul.msk.f32.gmra.mxu0 %vm298_vm9, %v2945_v49 }
0x16d4   :  { %2946 = vtanh.f32 %v1951_v50 }
0x16da   :  { %v2947_v52 = vpop.eup %2946 }
0x16db   :  { %2799 = vst.msk [vmem:[%s3969_s10 + $0x88] sm:$0xf] %vm342_vm10, %v2947_v52  ;;  %2802 = vmatmul.msk.f32.gmra.mxu0 %vm298_vm9, %v2947_v52  ;;  %2824 = vmatpush.msk.msra.mxu2 %vm75_vm0, %v2947_v52 }
0x16dd   :  { %2224 = vmatpush.msra.mxu2 %v2945_v49 }
0x16df   :  { %2225 = vmatpush.msra.mxu2 %v2943_v44 }
0x1748   :  { %v1985_v55 = vpop.f32.mrf.mxu0 }
0x1749   :  { %v1986_v56 = vadd.f32 %v3670_v42, %v1985_v55 }
0x174b   :  { %v1994_v60 = vsub.f32 %v2772_v53, %v1986_v56  ;;  %v3805_v56 = vld [vmem:[%s3961_s5] sm:$0xff] }
0x174d   :  { %v1997_v61 = vmul.f32 %v1994_v60, %v1994_v60 }
0x174f   :  { %v2000_v62 = vsel %vm388_vm11, %v1997_v61, 0.0 }
0x1750   :  { %2001 = vadd.xlane.f32.xlu1 %v2000_v62  ;;  %v1988_v1 = vpop.f32.mrf.mxu0 }
0x1751   :  { %v1989_v2 = vadd.f32 %v3670_v42, %v1988_v1 }
0x1753   :  { %v1995_v13 = vsub.f32 %v2773_v0, %v1989_v2  ;;  %v3813_v0 = vld [vmem:[%s3961_s5 + $0x8] sm:$0xff] }
0x1755   :  { %v1998_v14 = vmul.f32 %v1995_v13, %v1995_v13 }
0x1757   :  { %v2003_v15 = vsel %vm388_vm11, %v1998_v14, 0.0 }
0x1758   :  { %2004 = vadd.xlane.f32.xlu1 %v2003_v15  ;;  %v1991_v16 = vpop.f32.mrf.mxu0 }
0x1759   :  { %v1992_v17 = vadd.f32 %v3670_v42, %v1991_v16 }
0x175b   :  { %v1996_v18 = vsub.f32 %v2774_v26, %v1992_v17 }
0x175d   :  { %v1999_v20 = vmul.f32 %v1996_v18, %v1996_v18 }
0x175f   :  { %v2006_v21 = vsel %vm395_vm12, %v1999_v20, 0.0 }
0x1760   :  { %2007 = vadd.xlane.f32.xlu2 %v2006_v21 }
0x17c3   :  { %v2002_v22 = vpop.xlane.xlu1 %2001 }
0x17c4   :  { %v2009_v25 = vmul.f32 -1.0, %v2002_v22 }
0x17cb   :  { %v2005_v23 = vpop.xlane.xlu1 %2004 }
0x17cc   :  { %v2010_v24 = vmul.f32 -1.0, %v2005_v23 }
0x17ce   :  { %v2013_v59 = vmax.f32 %v2009_v25, %v2010_v24 }
0x17d3   :  { %v2008_v27 = vpop.xlane.xlu2 %2007 }
0x17d4   :  { %v2011_v58 = vmul.f32 -1.0, %v2008_v27 }
0x17d6   :  { %v2012_v63 = vsel %vm75_vm0, %v2011_v58, -inf }
0x17d7   :  { %v2014_v11 = vmax.f32 %v2013_v59, %v2012_v63  ;;  %v3830_v59 = vld [vmem:[%s3961_s5 + $0x10] sm:$0xf] }
0x17d9   :  { %v2015_v12 = vrot.slane %v2014_v11, 4 }
0x17db   :  { %v2016_v35 = vmax.f32 %v2014_v11, %v2015_v12 }
0x17dd   :  { %v2017_v5 = vrot.slane %v2016_v35, 2 }
0x17df   :  { %v2018_v36 = vmax.f32 %v2016_v35, %v2017_v5 }
0x17e1   :  { %v2019_v37 = vrot.slane %v2018_v36, 1 }
0x17e3   :  { %v2020_v38 = vmax.f32 %v2018_v36, %v2019_v37 }
0x17e5   :  { %v2022_v39 = vsub.f32 %v2010_v24, %v2020_v38  ;;  %v2023_v40 = vsub.f32 %v2011_v58, %v2020_v38  ;;  %v2021_v41 = vsub.f32 %v2009_v25, %v2020_v38  ;;  %v2803_v38 = vld [vmem:[%s3968_s0 + $0x90] sm:$0xff] }
0x17e7   :  { %v2028_v8 = vmul.f32 1.442695, %v2023_v40  ;;  %v2026_v43 = vmul.f32 1.442695, %v2022_v39  ;;  %v2024_v44 = vmul.f32 1.442695, %v2021_v41 }
0x17e8   :  { %v2804_v41 = vld [vmem:[%s3968_s0 + $0x98] sm:$0xff] }
0x17e9   :  { %2948 = vpow2.f32 %v2028_v8 }
0x17ea   :  { %2950 = vpow2.f32 %v2026_v43 }
0x17eb   :  { %2952 = vpow2.f32 %v2024_v44 }
0x17ef   :  { %v2949_v45 = vpop.eup %2948 }
0x17f0   :  { %2810 = vmatpush.msk.msrb.mxu1 %vm75_vm0, %v2949_v45  ;;  %2814 = vmatpush.msk.msra.mxu3 %vm75_vm0, %v2949_v45  ;;  %v2951_v46 = vpop.eup %2950  ;;  %v2805_v45 = vld [vmem:[%s3968_s0 + $0xa0] sm:$0xf] }
0x17f1   :  { %v2953_v47 = vpop.eup %2952 }
0x17f2   :  { %2057 = vmatpush.msrb.mxu1 %v2951_v46  ;;  %2083 = vmatpush.msra.mxu3 %v2951_v46 }
0x17f4   :  { %2058 = vmatpush.msrb.mxu1 %v2953_v47  ;;  %2084 = vmatpush.msra.mxu3 %v2953_v47 }
0x17f5   :  { %2811 = vmatmul.msk.f32.vlgmr.msrb.gmra.mxu1 %vm65_vm1, %v3435_v32  ;;  %2815 = vmatmul.msk.f32.vlgmr.msra.gmra.mxu3 %vm65_vm1, %v3442_v33 }
0x17f6   :  { %2302 = vmatpush.msra.mxu1 %v3559_v4 }
0x17f8   :  { %2303 = vmatpush.msra.mxu1 %v3565_v28 }
0x17fa   :  { %2304 = vmatpush.msra.mxu1 %v3571_v7 }
0x17fc   :  { %2305 = vmatpush.msra.mxu1 %v3577_v29 }
0x17fd   :  { %2816 = vmatmul.msk.f32.gmra.mxu3 %vm65_vm1, %v3460_v34  ;;  %2812 = vmatmul.msk.f32.gmra.mxu1 %vm65_vm1, %v3453_v6 }
0x17fe   :  { %2575 = vmatpush.msrb.mxu1 %v3587_v9 }
0x1800   :  { %2576 = vmatpush.msrb.mxu1 %v3593_v30  ;;  %v2880_v30 = vld [vmem:[%s3963_s2 + $0x6] ss:$0 sm:$0xff] }
0x1802   :  { %2577 = vmatpush.msrb.mxu1 %v3599_v31 }
0x1804   :  { %2578 = vmatpush.msrb.mxu1 %v3605_v57 }
0x1805   :  { %2817 = vmatmul.msk.f32.gmra.mxu3 %vm65_vm1, %v3471_v3  ;;  %2813 = vmatmul.msk.f32.gmra.mxu1 %vm65_vm1, %v3478_v10 }
0x1872   :  { %v2060_v32 = vpop.f32.mrf.mxu1 }
0x1873   :  { %2118 = vperm.xlu1 %2871, %v2060_v32  }
0x1878   :  { %v2086_v33 = vpop.f32.mrf.mxu3 }
0x187a   :  { %v2063_v34 = vpop.f32.mrf.mxu1 }
0x187b   :  { %2100 = vperm.xlu1 %2871, %v2086_v33  }
0x1880   :  { %v2089_v6 = vpop.f32.mrf.mxu3 }
0x1881   :  { %2105 = vperm.xlu0 %2870, %v2089_v6  }
0x1882   :  { %v2066_v4 = vpop.f32.mrf.mxu1 }
0x1888   :  { %v2092_v28 = vpop.f32.mrf.mxu3 }
0x1889   :  { %2110 = vperm.xlu1 %2871, %v2092_v28   ;;  %2128 = vperm.xlu0 %2870, %v2066_v4  }
0x1891   :  { %2123 = vperm.xlu1 %2871, %v2063_v34   ;;  %v2806_v34 = vld [vmem:[%s3970_s1 + $0x90] sm:$0xff] }
0x18e5   :  { %v2119_v7 = vpop.permute.xlu1 %2118 }
0x18ed   :  { %v2101_v29 = vpop.permute.xlu1 %2100 }
0x18ee   :  { %v2113_v10 = vmul.f32 %v2880_v30, %v2101_v29 }
0x18f0   :  { %vm2131_vm2 = vcmp.le.f32.partialorder %v2119_v7, %v2113_v10 }
0x18f1   :  { %v2818_v50 = vsel %vm2131_vm2, 1.0, %v2994_v19 }
0x18f2   :  { %v2140_v60 = vmul.f32 %v3805_v56, %v2818_v50  ;;  %v2808_v50 = vld [vmem:[%s3970_s1 + $0xa0] sm:$0xf] }
0x18f3   :  { %v2106_v9 = vpop.permute.xlu0 %2105 }
0x18f4   :  { %v2114_v52 = vmul.f32 %v2880_v30, %v2106_v9  ;;  %v2143_v2 = vsel %vm65_vm1, %v2140_v60, 0.0  ;;  %v2807_v9 = vld [vmem:[%s3970_s1 + $0x98] sm:$0xff] }
0x18fb   :  { %v2111_v31 = vpop.permute.xlu1 %2110  ;;  %v2129_v49 = vpop.permute.xlu0 %2128 }
0x18fc   :  { %v2115_v57 = vmul.f32 %v2880_v30, %v2111_v31 }
0x18fe   :  { %vm2133_vm3 = vcmp.le.f32.partialorder %v2129_v49, %v2115_v57 }
0x18ff   :  { %v2820_v53 = vsel %vm2133_vm3, 1.0, %v2994_v19 }
0x1900   :  { %v2142_v62 = vmul.f32 %v3471_v3, %v2820_v53 }
0x1902   :  { %v2146_v15 = vsel %vm191_vm5, %v2142_v62, 0.0 }
0x1903   :  { %v2124_v55 = vpop.permute.xlu1 %2123 }
0x1904   :  { %vm2132_vm4 = vcmp.le.f32.partialorder %v2124_v55, %v2114_v52 }
0x1905   :  { %v2819_v61 = vsel %vm2132_vm4, 1.0, %v2994_v19 }
0x1906   :  { %v2141_v1 = vmul.f32 %v3813_v0, %v2819_v61 }
0x1908   :  { %v2144_v13 = vsel %vm65_vm1, %v2141_v1, 0.0 }
0x1909   :  { %v2145_v14 = vadd.f32 %v2144_v13, %v2143_v2 }
0x190b   :  { %v2147_v26 = vadd.f32 %v2146_v15, %v2145_v14 }
0x190d   :  { %v2148_v16 = vrot.slane %v2147_v26, 4 }
0x190f   :  { %v2149_v17 = vadd.f32 %v2148_v16, %v2147_v26 }
0x1911   :  { %v2150_v18 = vrot.slane %v2149_v17, 2 }
0x1913   :  { %v2151_v20 = vadd.f32 %v2150_v18, %v2149_v17 }
0x1915   :  { %v2152_v3 = vrot.slane %v2151_v20, 1 }
0x1917   :  { %v2153_v21 = vadd.f32 %v2152_v3, %v2151_v20 }
0x1919   :  { %v2154_v22 = vmin.f32 %v2153_v21, 9.0 }
0x191b   :  { %vm2155_vm6 = vcmp.eq.f32.partialorder %v3131_v48, %v2154_v22  ;;  %vm2156_vm7 = vcmp.eq.f32.partialorder %v3136_v51, %v2154_v22  ;;  %vm2157_vm8 = vcmp.eq.f32.partialorder %v3141_v54, %v2154_v22 }
0x191c   :  { %v2821_v23 = vsel %vm2155_vm6, 1.0, %v2994_v19  ;;  %v2822_v25 = vsel %vm2156_vm7, 1.0, %v2994_v19  ;;  %v2823_v58 = vsel %vm2157_vm8, 1.0, %v2994_v19 }
0x191d   :  { %v2164_v24 = vmul.f32 %v3805_v56, %v2821_v23  ;;  %v2165_v27 = vmul.f32 %v3813_v0, %v2822_v25  ;;  %v2166_v63 = vmul.f32 %v3830_v59, %v2823_v58 }
0x191f   :  { %2167 = vxpose.xlu1.b32.start [1/3] (short) (narrow) %v2164_v24, 24 }
0x1927   :  { %2168 = vxpose.xlu1.b32.cont [2/3] (short) (narrow) %v2165_v27, 24 }
0x192f   :  { %2169 = vxpose.xlu1.b32.end [3/3] (short) (narrow) %v2166_v63, 24 }
0x19c3   :  { %v2183_v11 = vpop.trf.xlu1 }
0x19c4   :  { %2825 = vmatmul.msk.f32.vlgmr.msra.gmra.mxu2 %vm65_vm1, %v2183_v11 }
0x19cb   :  { %v2184_v12 = vpop.trf.xlu1 }
0x19cc   :  { %2826 = vmatmul.msk.f32.gmra.mxu2 %vm65_vm1, %v2184_v12 }
0x19d3   :  { %v2185_v35 = vpop.trf.xlu1 }
0x19d4   :  { %2827 = vmatmul.msk.f32.gmra.mxu2 %vm65_vm1, %v2185_v35 }
0x1a47   :  { %v2227_v5 = vpop.f32.mrf.mxu2 }
0x1a48   :  { %2828 = vmatmul.msk.f32.vlgmr.msra.gmra.mxu0 %vm298_vm9, %v2227_v5  ;;  %v2990_v5 = vld [vmem:[%s3962_s4] sm:$0xff] }
0x1a4f   :  { %v2230_v36 = vpop.f32.mrf.mxu2 }
0x1a50   :  { %2829 = vmatmul.msk.f32.gmra.mxu0 %vm298_vm9, %v2230_v36  ;;  %v2991_v36 = vld [vmem:[%s3962_s4 + $0x8] sm:$0xff] }
0x1a57   :  { %v2233_v37 = vpop.f32.mrf.mxu2 }
0x1a58   :  { %2830 = vmatmul.msk.f32.gmra.mxu0 %vm298_vm9, %v2233_v37  ;;  %v2992_v37 = vld [vmem:[%s3962_s4 + $0x10] sm:$0xf] }
0x1ac5   :  { %v2262_v39 = vpop.f32.mrf.mxu0 }
0x1ac6   :  { %v2271_v40 = vadd.f32 %v2803_v38, %v2262_v39 }
0x1ac8   :  { %2954 = vtanh.f32 %v2271_v40 }
0x1acd   :  { %v2265_v8 = vpop.f32.mrf.mxu0 }
0x1ace   :  { %v2955_v43 = vpop.eup %2954  ;;  %v2272_v44 = vadd.f32 %v2804_v41, %v2265_v8 }
0x1acf   :  { %2831 = vst.msk [vmem:[%s3969_s10 + $0x90] sm:$0xff] %vm298_vm9, %v2955_v43  ;;  %2834 = vmatmul.msk.f32.vlgmr.msra.gmra.mxu1 %vm298_vm9, %v2955_v43 }
0x1ad0   :  { %2956 = vtanh.f32 %v2272_v44 }
0x1ad5   :  { %v2268_v46 = vpop.f32.mrf.mxu0 }
0x1ad6   :  { %v2957_v47 = vpop.eup %2956  ;;  %v2273_v32 = vadd.f32 %v2805_v45, %v2268_v46  ;;  %v2881_v46 = vld [vmem:[%s3963_s2 + $0x7] ss:$0 sm:$0xff] }
0x1ad7   :  { %2832 = vst.msk [vmem:[%s3969_s10 + $0x98] sm:$0xff] %vm298_vm9, %v2957_v47  ;;  %2835 = vmatmul.msk.f32.gmra.mxu1 %vm298_vm9, %v2957_v47 }
0x1ad8   :  { %2958 = vtanh.f32 %v2273_v32 }
0x1ade   :  { %v2959_v33 = vpop.eup %2958 }
0x1adf   :  { %2833 = vst.msk [vmem:[%s3969_s10 + $0xa0] sm:$0xf] %vm342_vm10, %v2959_v33  ;;  %2836 = vmatmul.msk.f32.gmra.mxu1 %vm298_vm9, %v2959_v33  ;;  %2855 = vmatpush.msk.msrb.mxu0 %vm75_vm0, %v2959_v33 }
0x1ae1   :  { %2542 = vmatpush.msrb.mxu0 %v2957_v47 }
0x1ae3   :  { %2543 = vmatpush.msrb.mxu0 %v2955_v43 }
0x1b4c   :  { %v2307_v6 = vpop.f32.mrf.mxu1 }
0x1b4d   :  { %v2308_v4 = vadd.f32 %v3670_v42, %v2307_v6 }
0x1b4f   :  { %v2316_v28 = vsub.f32 %v2806_v34, %v2308_v4 }
0x1b51   :  { %v2319_v7 = vmul.f32 %v2316_v28, %v2316_v28 }
0x1b53   :  { %v2322_v29 = vsel %vm388_vm11, %v2319_v7, 0.0 }
0x1b54   :  { %2323 = vadd.xlane.f32.xlu0 %v2322_v29  ;;  %v2310_v30 = vpop.f32.mrf.mxu1 }
0x1b55   :  { %v2311_v10 = vadd.f32 %v3670_v42, %v2310_v30 }
0x1b57   :  { %v2317_v31 = vsub.f32 %v2807_v9, %v2311_v10 }
0x1b59   :  { %v2320_v57 = vmul.f32 %v2317_v31, %v2317_v31 }
0x1b5b   :  { %v2325_v49 = vsel %vm388_vm11, %v2320_v57, 0.0 }
0x1b5c   :  { %2326 = vadd.xlane.f32.xlu0 %v2325_v49  ;;  %v2313_v52 = vpop.f32.mrf.mxu1 }
0x1b5d   :  { %v2314_v53 = vadd.f32 %v3670_v42, %v2313_v52 }
0x1b5f   :  { %v2318_v55 = vsub.f32 %v2808_v50, %v2314_v53 }
0x1b61   :  { %v2321_v60 = vmul.f32 %v2318_v55, %v2318_v55 }
0x1b63   :  { %v2328_v61 = vsel %vm395_vm12, %v2321_v60, 0.0 }
0x1b64   :  { %2329 = vadd.xlane.f32.xlu0 %v2328_v61 }
0x1bc7   :  { %v2324_v62 = vpop.xlane.xlu0 %2323 }
0x1bc8   :  { %v2331_v13 = vmul.f32 -1.0, %v2324_v62 }
0x1bcf   :  { %v2327_v1 = vpop.xlane.xlu0 %2326 }
0x1bd0   :  { %v2332_v2 = vmul.f32 -1.0, %v2327_v1 }
0x1bd2   :  { %v2335_v26 = vmax.f32 %v2331_v13, %v2332_v2 }
0x1bd7   :  { %v2330_v14 = vpop.xlane.xlu0 %2329 }
0x1bd8   :  { %v2333_v15 = vmul.f32 -1.0, %v2330_v14 }
0x1bda   :  { %v2334_v16 = vsel %vm75_vm0, %v2333_v15, -inf }
0x1bdb   :  { %v2336_v17 = vmax.f32 %v2335_v26, %v2334_v16 }
0x1bdd   :  { %v2337_v18 = vrot.slane %v2336_v17, 4 }
0x1bdf   :  { %v2338_v20 = vmax.f32 %v2336_v17, %v2337_v18 }
0x1be1   :  { %v2339_v3 = vrot.slane %v2338_v20, 2 }
0x1be3   :  { %v2340_v21 = vmax.f32 %v2338_v20, %v2339_v3 }
0x1be5   :  { %v2341_v42 = vrot.slane %v2340_v21, 1 }
0x1be7   :  { %v2342_v22 = vmax.f32 %v2340_v21, %v2341_v42  ;;  %v2838_v21 = vld [vmem:[%s3968_s0 + $0xb0] sm:$0xff] }
0x1be9   :  { %v2344_v23 = vsub.f32 %v2332_v2, %v2342_v22  ;;  %v2345_v24 = vsub.f32 %v2333_v15, %v2342_v22  ;;  %v2343_v25 = vsub.f32 %v2331_v13, %v2342_v22 }
0x1beb   :  { %v2350_v27 = vmul.f32 1.442695, %v2345_v24  ;;  %v2348_v58 = vmul.f32 1.442695, %v2344_v23  ;;  %v2346_v63 = vmul.f32 1.442695, %v2343_v25 }
0x1bec   :  { %v2839_v24 = vld [vmem:[%s3968_s0 + $0xb8] sm:$0xf] }
0x1bed   :  { %2960 = vpow2.f32 %v2350_v27 }
0x1bee   :  { %2962 = vpow2.f32 %v2348_v58 }
0x1bef   :  { %2964 = vpow2.f32 %v2346_v63 }
0x1bf3   :  { %v2961_v11 = vpop.eup %2960 }
0x1bf4   :  { %2841 = vmatpush.msk.msrb.mxu3 %vm75_vm0, %v2961_v11  ;;  %2845 = vmatpush.msk.msrb.mxu2 %vm75_vm0, %v2961_v11  ;;  %v2963_v12 = vpop.eup %2962 }
0x1bf5   :  { %v2965_v35 = vpop.eup %2964 }
0x1bf6   :  { %2375 = vmatpush.msrb.mxu3 %v2963_v12  ;;  %2401 = vmatpush.msrb.mxu2 %v2963_v12 }
0x1bf8   :  { %2376 = vmatpush.msrb.mxu3 %v2965_v35  ;;  %2402 = vmatpush.msrb.mxu2 %v2965_v35 }
0x1bf9   :  { %2842 = vmatmul.msk.f32.vlgmr.msrb.gmra.mxu3 %vm65_vm1, %v2990_v5  ;;  %2846 = vmatmul.msk.f32.vlgmr.msrb.gmra.mxu2 %vm65_vm1, %v3805_v56 }
0x1c01   :  { %2843 = vmatmul.msk.f32.gmra.mxu3 %vm65_vm1, %v2991_v36  ;;  %2847 = vmatmul.msk.f32.gmra.mxu2 %vm65_vm1, %v3813_v0 }
0x1c09   :  { %2844 = vmatmul.msk.f32.gmra.mxu3 %vm65_vm1, %v2992_v37  ;;  %2848 = vmatmul.msk.f32.gmra.mxu2 %vm65_vm1, %v3830_v59 }
0x1c7c   :  { %v2378_v38 = vpop.f32.mrf.mxu3  ;;  %v2404_v39 = vpop.f32.mrf.mxu2 }
0x1c7d   :  { %2418 = vperm.xlu0 %2870, %v2404_v39  }
0x1c84   :  { %v2381_v40 = vpop.f32.mrf.mxu3  ;;  %v2407_v41 = vpop.f32.mrf.mxu2 }
0x1c85   :  { %2423 = vperm.xlu2 %2872, %v2407_v41   ;;  %2436 = vperm.xlu0 %2870, %v2378_v38  }
0x1c8c   :  { %v2384_v8 = vpop.f32.mrf.mxu3  ;;  %v2410_v43 = vpop.f32.mrf.mxu2 }
0x1c8d   :  { %2428 = vperm.xlu1 %2871, %v2410_v43   ;;  %2441 = vperm.xlu2 %2872, %v2381_v40  }
0x1c8e   :  { %2446 = vperm.xlu0 %2870, %v2384_v8  }
0x1cdf   :  { %v2424_v44 = vpop.permute.xlu2 %2423 }
0x1ce0   :  { %v2432_v34 = vmul.f32 %v2881_v46, %v2424_v44 }
0x1ce7   :  { %v2442_v32 = vpop.permute.xlu2 %2441 }
0x1ce8   :  { %vm2450_vm11 = vcmp.le.f32.partialorder %v2442_v32, %v2432_v34 }
0x1ce9   :  { %v2850_v4 = vsel %vm2450_vm11, 1.0, %v2994_v19 }
0x1cea   :  { %v2459_v29 = vmul.f32 %v3813_v0, %v2850_v4 }
0x1cec   :  { %v2462_v57 = vsel %vm65_vm1, %v2459_v29, 0.0 }
0x1cef   :  { %v2419_v45 = vpop.permute.xlu0 %2418 }
0x1cf0   :  { %v2431_v47 = vmul.f32 %v2881_v46, %v2419_v45 }
0x1cf7   :  { %v2437_v33 = vpop.permute.xlu0 %2436 }
0x1cf8   :  { %vm2449_vm0 = vcmp.le.f32.partialorder %v2437_v33, %v2431_v47 }
0x1cf9   :  { %v2849_v6 = vsel %vm2449_vm0, 1.0, %v2994_v19 }
0x1cfa   :  { %v2458_v28 = vmul.f32 %v3805_v56, %v2849_v6 }
0x1cfc   :  { %v2461_v10 = vsel %vm65_vm1, %v2458_v28, 0.0 }
0x1cfd   :  { %v2463_v50 = vadd.f32 %v2462_v57, %v2461_v10 }
0x1cff   :  { %v2429_v7 = vpop.permute.xlu1 %2428 }
0x1d00   :  { %v2433_v9 = vmul.f32 %v2881_v46, %v2429_v7  ;;  %v2447_v30 = vpop.permute.xlu0 %2446 }
0x1d02   :  { %vm2451_vm12 = vcmp.le.f32.partialorder %v2447_v30, %v2433_v9 }
0x1d03   :  { %v2851_v31 = vsel %vm2451_vm12, 1.0, %v2994_v19 }
0x1d04   :  { %v2460_v49 = vmul.f32 %v3830_v59, %v2851_v31 }
0x1d06   :  { %v2464_v52 = vsel %vm191_vm5, %v2460_v49, 0.0 }
0x1d07   :  { %v2465_v53 = vadd.f32 %v2464_v52, %v2463_v50 }
0x1d09   :  { %v2466_v55 = vrot.slane %v2465_v53, 4 }
0x1d0b   :  { %v2467_v60 = vadd.f32 %v2466_v55, %v2465_v53 }
0x1d0d   :  { %v2468_v61 = vrot.slane %v2467_v60, 2 }
0x1d0f   :  { %v2469_v62 = vadd.f32 %v2468_v61, %v2467_v60 }
0x1d11   :  { %v2470_v1 = vrot.slane %v2469_v62, 1 }
0x1d13   :  { %v2471_v2 = vadd.f32 %v2470_v1, %v2469_v62 }
0x1d15   :  { %v2472_v13 = vmin.f32 %v2471_v2, 9.0 }
0x1d17   :  { %vm2473_vm13 = vcmp.eq.f32.partialorder %v3131_v48, %v2472_v13  ;;  %vm2474_vm14 = vcmp.eq.f32.partialorder %v3136_v51, %v2472_v13  ;;  %vm2475_vm5 = vcmp.eq.f32.partialorder %v3141_v54, %v2472_v13 }
0x1d18   :  { %v2852_v14 = vsel %vm2473_vm13, 1.0, %v2994_v19  ;;  %v2853_v26 = vsel %vm2474_vm14, 1.0, %v2994_v19  ;;  %v2854_v17 = vsel %vm2475_vm5, 1.0, %v2994_v19  ;;  %v2837_v19 = vld [vmem:[%s3968_s0 + $0xa8] sm:$0xff] }
0x1d19   :  { %v2482_v15 = vmul.f32 %v3805_v56, %v2852_v14  ;;  %v2483_v16 = vmul.f32 %v3813_v0, %v2853_v26  ;;  %v2484_v18 = vmul.f32 %v3830_v59, %v2854_v17 }
0x1d1b   :  { %2485 = vxpose.xlu2.b32.start [1/3] (short) (narrow) %v2482_v15, 24 }
0x1d23   :  { %2486 = vxpose.xlu2.b32.cont [2/3] (short) (narrow) %v2483_v16, 24 }
0x1d2b   :  { %2487 = vxpose.xlu2.b32.end [3/3] (short) (narrow) %v2484_v18, 24 }
0x1db4   :  { %v2501_v48 = vpop.trf.xlu2 }
0x1db5   :  { %2856 = vmatmul.msk.f32.vlgmr.msrb.gmra.mxu0 %vm65_vm1, %v2501_v48 }
0x1dbc   :  { %v2502_v20 = vpop.trf.xlu2 }
0x1dbd   :  { %2857 = vmatmul.msk.f32.gmra.mxu0 %vm65_vm1, %v2502_v20 }
0x1dc4   :  { %v2503_v56 = vpop.trf.xlu2 }
0x1dc5   :  { %2858 = vmatmul.msk.f32.gmra.mxu0 %vm65_vm1, %v2503_v56 }
0x1e32   :  { %v2545_v51 = vpop.f32.mrf.mxu0 }
0x1e33   :  { %2859 = vmatmul.msk.f32.vlgmr.msrb.gmra.mxu1 %vm298_vm9, %v2545_v51 }
0x1e3a   :  { %v2548_v0 = vpop.f32.mrf.mxu0 }
0x1e3b   :  { %2860 = vmatmul.msk.f32.gmra.mxu1 %vm298_vm9, %v2548_v0 }
0x1e42   :  { %v2551_v54 = vpop.f32.mrf.mxu0 }
0x1e43   :  { %2861 = vmatmul.msk.f32.gmra.mxu1 %vm298_vm9, %v2551_v54 }
0x1eb0   :  { %v2580_v59 = vpop.f32.mrf.mxu1 }
0x1eb1   :  { %v2589_v3 = vadd.f32 %v2837_v19, %v2580_v59 }
0x1eb3   :  { %2966 = vtanh.f32 %v2589_v3 }
0x1eb8   :  { %v2583_v42 = vpop.f32.mrf.mxu1 }
0x1eb9   :  { %v2967_v22 = vpop.eup %2966  ;;  %v2590_v23 = vadd.f32 %v2838_v21, %v2583_v42 }
0x1eba   :  { %2862 = vst.msk [vmem:[%s3969_s10 + $0xa8] sm:$0xff] %vm298_vm9, %v2967_v22 }
0x1ebb   :  { %2599 = vst.msk [vmem:[%s3971_s11] sm:$0xff] %vm298_vm9, %v2967_v22  ;;  %2968 = vtanh.f32 %v2590_v23 }
0x1ec0   :  { %v2586_v25 = vpop.f32.mrf.mxu1 }
0x1ec1   :  { %v2969_v27 = vpop.eup %2968  ;;  %v2591_v58 = vadd.f32 %v2839_v24, %v2586_v25 }
0x1ec2   :  { %2863 = vst.msk [vmem:[%s3969_s10 + $0xb0] sm:$0xff] %vm298_vm9, %v2969_v27 }
0x1ec3   :  { %2600 = vst.msk [vmem:[%s3971_s11 + $0x8] sm:$0xff] %vm298_vm9, %v2969_v27  ;;  %2970 = vtanh.f32 %v2591_v58 }
0x1ec9   :  { %v2971_v63 = vpop.eup %2970 }
0x1eca   :  { %2864 = vst.msk [vmem:[%s3969_s10 + $0xb8] sm:$0xf] %vm342_vm10, %v2971_v63 }
0x1ecb   :  { %2601 = vst.msk [vmem:[%s3971_s11 + $0x10] sm:$0xf] %vm342_vm10, %v2971_v63 }

</bundles_post_ra>
